<compile_context>
chip_gen: v7x
topology: tpu7x:2x2x1
jax: 0.10.0
libtpu: 0.0.40
codegen_flags: <defaults>
</compile_context>

<pallas_src>
import functools

import jax
import jax.numpy as jnp
from jax import lax
from jax.experimental import pallas as pl
from jax.experimental.pallas import tpu as pltpu

HPAD = 128  # lane-aligned padded hidden size (one lane-tile per gate)


def _sigmoid(x):
    # exp on EUP + approximate reciprocal on EUP (vrcp) -> keeps the divide off the VPU.
    return pl.reciprocal(1.0 + jnp.exp(-x), approx=True)


def lstm_kernel(
    x_ref,       # (T, B, 1)
    wih0_ref,    # (1, 4*Hp)   row of W_ih0 (I == 1), gate-lane padded
    whh0_ref,    # (Hp, 4*Hp)
    b0_ref,      # (1, 4*Hp)   b_ih0 + b_hh0, gate-lane padded
    w1_ref,      # (2*Hp, 4*Hp)  concat([W_ih1; W_hh1]) pre-transposed + padded
    b1_ref,      # (1, 4*Hp)
    wout_ref,    # (1, Hp)     W_out (O == 1), lane padded
    bout_ref,    # (1, 1)
    o_ref,       # (T, B, 1)
    hfin_ref,    # (2, B, H)
    cfin_ref,    # (2, B, H)
    xw0_s,       # VMEM (T, B, 4*Hp)   precomputed layer-0 input projection
    h1_all_s,    # VMEM (T, B, Hp)     per-step layer-1 hidden states
    *, hidden: int, hpad: int, seqlen: int, batch: int,
):
    H, Hp, T, B = hidden, hpad, seqlen, batch
    G4 = 4 * Hp

    # --- time-parallel precompute: layer-0 input projection + bias (I == 1 => broadcast mul)
    xw0_s[...] = (x_ref[...] * wih0_ref[...].reshape(1, 1, G4)
                  + b0_ref[...].reshape(1, 1, G4))

    # --- hoist loop-invariant loads / broadcasts out of the unrolled loop
    whh0 = whh0_ref[...]                                   # (Hp, 4*Hp)
    w1 = w1_ref[...]                                       # (2*Hp, 4*Hp)
    b1_b = jnp.broadcast_to(b1_ref[...], (B, G4))          # (B, 4*Hp)

    def gate_split(g):
        # lane-tile aligned slices: gate k occupies lanes [k*Hp, (k+1)*Hp)
        i_g = _sigmoid(g[:, 0 * Hp:1 * Hp])
        f_g = _sigmoid(g[:, 1 * Hp:2 * Hp])
        g_g = jnp.tanh(g[:, 2 * Hp:3 * Hp])
        o_g = _sigmoid(g[:, 3 * Hp:4 * Hp])
        return i_g, f_g, g_g, o_g

    def step(t, carry):
        h0, c0, h1, c1 = carry

        # layer 0: only the recurrent matmul is on the critical path
        g0 = xw0_s[t] + jnp.dot(h0, whh0, preferred_element_type=jnp.float32)
        i0, f0, gg0, og0 = gate_split(g0)
        c0n = f0 * c0 + i0 * gg0
        h0n = og0 * jnp.tanh(c0n)

        # layer 1: fused input+recurrent matmul (lane/sublane aligned concat)
        g1 = jnp.dot(jnp.concatenate([h0n, h1], axis=-1), w1,
                     preferred_element_type=jnp.float32) + b1_b
        i1, f1, gg1, og1 = gate_split(g1)
        c1n = f1 * c1 + i1 * gg1
        h1n = og1 * jnp.tanh(c1n)

        h1_all_s[t] = h1n          # stash for the deferred output projection
        return (h0n, c0n, h1n, c1n)

    z = jnp.zeros((B, Hp), jnp.float32)   # initial h/c are zeros (as in PyTorch forward)
    # T=7: full unroll is fine; switch to a partial unroll factor if seqlen grows large.
    h0f, c0f, h1f, c1f = lax.fori_loop(0, T, step, (z, z, z, z), unroll=True)

    # --- deferred output projection (O == 1 => lane-reduce), single bulk store
    wout_b = wout_ref[...].reshape(1, 1, Hp)               # padded cols are zero
    o_ref[...] = (jnp.sum(h1_all_s[...] * wout_b, axis=-1, keepdims=True)
                  + bout_ref[...].reshape(1, 1, 1))

    # --- final states: slice the real H lanes back out of the padded state
    hfin_ref[0] = h0f[:, :H]
    hfin_ref[1] = h1f[:, :H]
    cfin_ref[0] = c0f[:, :H]
    cfin_ref[1] = c1f[:, :H]


def _pad_gate_cols(w, H, Hp):
    """(in_dim, 4H) -> (in_dim, 4*Hp); gate g occupies columns [g*Hp, g*Hp + H)."""
    parts = [jnp.pad(w[:, g * H:(g + 1) * H], ((0, 0), (0, Hp - H))) for g in range(4)]
    return jnp.concatenate(parts, axis=1)


def _pad_rows(w, rows, Rp):
    return jnp.pad(w, ((0, Rp - rows), (0, 0)))


def lstmnet_forward(x, params, *, hidden: int):
    """x: (B, T, I) float32 -> (o (B, T, O), (h_ (2, B, H), c_ (2, B, H)))."""
    B, T, I = x.shape
    H = hidden
    Hp = HPAD
    O = params["w_out"].shape[0]
    # TODO(synk): the broadcast/reduce fast paths below assume input_size == 1 and
    # output_size == 1 (as in the original module); general I/O would use matmuls.
    assert I == 1 and O == 1 and H <= Hp

    f32 = jnp.float32
    x_tm = jnp.transpose(x, (1, 0, 2)).astype(f32)                              # (T, B, 1)

    wih0_row = _pad_gate_cols(params["w_ih0"].T.astype(f32), H, Hp)             # (1, 4Hp)
    whh0_pad = _pad_rows(_pad_gate_cols(params["w_hh0"].T.astype(f32), H, Hp), H, Hp)
    b0_pad = _pad_gate_cols((params["b_ih0"] + params["b_hh0"]).reshape(1, 4 * H).astype(f32), H, Hp)
    wih1_pad = _pad_rows(_pad_gate_cols(params["w_ih1"].T.astype(f32), H, Hp), H, Hp)
    whh1_pad = _pad_rows(_pad_gate_cols(params["w_hh1"].T.astype(f32), H, Hp), H, Hp)
    w1cat = jnp.concatenate([wih1_pad, whh1_pad], axis=0)                       # (2Hp, 4Hp)
    b1_pad = _pad_gate_cols((params["b_ih1"] + params["b_hh1"]).reshape(1, 4 * H).astype(f32), H, Hp)
    wout_pad = jnp.pad(params["w_out"].astype(f32), ((0, 0), (0, Hp - H)))      # (1, Hp)
    bout = params["b_out"].reshape(1, O).astype(f32)                            # (1, 1)

    inputs = (x_tm, wih0_row, whh0_pad, b0_pad, w1cat, b1_pad, wout_pad, bout)

    def full_spec(a):
        return pl.BlockSpec(a.shape, lambda: tuple(0 for _ in a.shape))

    out_shapes = (
        jax.ShapeDtypeStruct((T, B, O), f32),
        jax.ShapeDtypeStruct((2, B, H), f32),
        jax.ShapeDtypeStruct((2, B, H), f32),
    )
    out_specs = (
        pl.BlockSpec((T, B, O), lambda: (0, 0, 0)),
        pl.BlockSpec((2, B, H), lambda: (0, 0, 0)),
        pl.BlockSpec((2, B, H), lambda: (0, 0, 0)),
    )

    o_tm, h_fin, c_fin = pl.pallas_call(
        functools.partial(lstm_kernel, hidden=H, hpad=Hp, seqlen=T, batch=B),
        out_shape=out_shapes,
        grid=(),
        in_specs=[full_spec(a) for a in inputs],
        out_specs=out_specs,
        scratch_shapes=[
            pltpu.VMEM((T, B, 4 * Hp), f32),   # precomputed layer-0 input projection
            pltpu.VMEM((T, B, Hp), f32),       # per-step layer-1 hidden states
        ],
        # Total VMEM footprint < 1 MiB; no tiling/pipelining needed on any TPU gen.
    )(*inputs)

    o = jnp.transpose(o_tm, (1, 0, 2))  # (B, T, O)
    return o, (h_fin, c_fin)


def init_params(key, input_size, hidden, output_size):
    """Deterministic parameter init matching nn.LSTM / nn.Linear shapes."""
    H = hidden
    ks = jax.random.split(key, 10)
    bound = 1.0 / jnp.sqrt(jnp.float32(H))
    u = lambda k, shape: jax.random.uniform(
        k, shape, jnp.float32, minval=-bound, maxval=bound)
    return {
        "w_ih0": u(ks[0], (4 * H, input_size)),
        "w_hh0": u(ks[1], (4 * H, H)),
        "b_ih0": u(ks[2], (4 * H,)),
        "b_hh0": u(ks[3], (4 * H,)),
        "w_ih1": u(ks[4], (4 * H, H)),
        "w_hh1": u(ks[5], (4 * H, H)),
        "b_ih1": u(ks[6], (4 * H,)),
        "b_hh1": u(ks[7], (4 * H,)),
        "w_out": u(ks[8], (output_size, H)),
        "b_out": u(ks[9], (output_size,)),
    }


if __name__ == "__main__":
    input_size = 1
    hidden_size = 20
    num_layers = 2       # fixed at 2 in the kernel (matches the module config)
    output_size = 1
    batch = 2
    seqlen = 7

    key = jax.random.PRNGKey(0)
    k_x, k_p = jax.random.split(key)
    x = jax.random.normal(k_x, (batch, seqlen, input_size), jnp.float32)
    params = init_params(k_p, input_size, hidden_size, output_size)

    o, (h_, c_) = lstmnet_forward(x, params, hidden=hidden_size)
    jax.block_until_ready((o, h_, c_))

    assert o.shape == (batch, seqlen, output_size)
    assert h_.shape == (num_layers, batch, hidden_size)
    assert c_.shape == (num_layers, batch, hidden_size)
    print("KERNEL_OK")
</pallas_src>

<mosaic_0001>
module attributes {stable_mosaic.version = 11 : i64} {
  func.func @lstm_kernel(%arg0: memref<7x2x1xf32, #tpu.memory_space<vmem>>, %arg1: memref<1x512xf32, #tpu.memory_space<vmem>>, %arg2: memref<128x512xf32, #tpu.memory_space<vmem>>, %arg3: memref<1x512xf32, #tpu.memory_space<vmem>>, %arg4: memref<256x512xf32, #tpu.memory_space<vmem>>, %arg5: memref<1x512xf32, #tpu.memory_space<vmem>>, %arg6: memref<1x128xf32, #tpu.memory_space<vmem>>, %arg7: memref<1x1xf32, #tpu.memory_space<vmem>>, %arg8: memref<7x2x1xf32, #tpu.memory_space<vmem>>, %arg9: memref<2x2x20xf32, #tpu.memory_space<vmem>>, %arg10: memref<2x2x20xf32, #tpu.memory_space<vmem>>, %arg11: memref<7x2x512xf32, #tpu.memory_space<vmem>>, %arg12: memref<7x2x128xf32, #tpu.memory_space<vmem>>) attributes {dimension_semantics = [], scalar_prefetch = 0 : i64, scratch_operands = 2 : i64, tpu.core_type = #tpu.core_type<tc>} {
    %c0 = arith.constant 0 : index
    %c0_0 = arith.constant 0 : index
    %c0_1 = arith.constant 0 : index
    %0 = vector.load %arg0[%c0, %c0_0, %c0_1] : memref<7x2x1xf32, #tpu.memory_space<vmem>>, vector<7x2x1xf32>
    %c0_2 = arith.constant 0 : index
    %c0_3 = arith.constant 0 : index
    %1 = vector.load %arg1[%c0_2, %c0_3] : memref<1x512xf32, #tpu.memory_space<vmem>>, vector<1x512xf32>
    %2 = vector.shape_cast %1 : vector<1x512xf32> to vector<1x1x512xf32>
    %3 = vector.broadcast %0 : vector<7x2x1xf32> to vector<7x2x512xf32>
    %4 = vector.broadcast %2 : vector<1x1x512xf32> to vector<7x2x512xf32>
    %5 = arith.mulf %3, %4 : vector<7x2x512xf32>
    %c0_4 = arith.constant 0 : index
    %c0_5 = arith.constant 0 : index
    %6 = vector.load %arg3[%c0_4, %c0_5] : memref<1x512xf32, #tpu.memory_space<vmem>>, vector<1x512xf32>
    %7 = vector.shape_cast %6 : vector<1x512xf32> to vector<1x1x512xf32>
    %8 = vector.broadcast %7 : vector<1x1x512xf32> to vector<7x2x512xf32>
    %9 = arith.addf %5, %8 : vector<7x2x512xf32>
    %c0_6 = arith.constant 0 : index
    %c0_7 = arith.constant 0 : index
    %c0_8 = arith.constant 0 : index
    %10 = vector.load %arg11[%c0_6, %c0_7, %c0_8] : memref<7x2x512xf32, #tpu.memory_space<vmem>>, vector<7x2x512xf32>
    tpu.vector_store %arg11[%c0_6, %c0_7, %c0_8], %9 {strides = array<i32>} : memref<7x2x512xf32, #tpu.memory_space<vmem>>, vector<7x2x512xf32>,
    %c0_9 = arith.constant 0 : index
    %c0_10 = arith.constant 0 : index
    %11 = vector.load %arg2[%c0_9, %c0_10] : memref<128x512xf32, #tpu.memory_space<vmem>>, vector<128x512xf32>
    %c0_11 = arith.constant 0 : index
    %c0_12 = arith.constant 0 : index
    %12 = vector.load %arg4[%c0_11, %c0_12] : memref<256x512xf32, #tpu.memory_space<vmem>>, vector<256x512xf32>
    %c0_13 = arith.constant 0 : index
    %c0_14 = arith.constant 0 : index
    %13 = vector.load %arg5[%c0_13, %c0_14] : memref<1x512xf32, #tpu.memory_space<vmem>>, vector<1x512xf32>
    %14 = vector.shape_cast %13 : vector<1x512xf32> to vector<1x512xf32>
    %15 = vector.broadcast %14 : vector<1x512xf32> to vector<2x512xf32>
    %cst = arith.constant 0.000000e+00 : f32
    %16 = vector.broadcast %cst : f32 to vector<2x128xf32>
    %c0_i32 = arith.constant 0 : i32
    %17 = arith.index_cast %c0_i32 : i32 to index
    %c0_15 = arith.constant 0 : index
    %c0_16 = arith.constant 0 : index
    %18 = vector.load %arg11[%17, %c0_15, %c0_16] : memref<7x2x512xf32, #tpu.memory_space<vmem>>, vector<1x2x512xf32>
    %19 = vector.shape_cast %18 : vector<1x2x512xf32> to vector<2x512xf32>
    %cst_17 = arith.constant dense<0.000000e+00> : vector<2x512xf32>
    %20 = tpu.matmul %16, %11, %cst_17 {dimension_numbers = #tpu.dot_dimension_numbers<[1], [0], [0], [1], [0, 0, 1, 1], [], []>} : vector<2x128xf32>, vector<128x512xf32>, vector<2x512xf32> -> vector<2x512xf32>
    %21 = arith.addf %19, %20 : vector<2x512xf32>
    %22 = vector.extract_strided_slice %21 {offsets = [0, 0], sizes = [2, 128], strides = [1, 1]} : vector<2x512xf32> to vector<2x128xf32>
    %cst_18 = arith.constant 0.000000e+00 : f32
    %23 = vector.broadcast %cst_18 : f32 to vector<2x128xf32>
    %24 = arith.subf %23, %22 : vector<2x128xf32>
    %25 = math.exp %24 : vector<2x128xf32>
    %cst_19 = arith.constant 1.000000e+00 : f32
    %26 = vector.broadcast %cst_19 : f32 to vector<2x128xf32>
    %27 = arith.addf %26, %25 : vector<2x128xf32>
    %28 = tpu.reciprocal %27 {approx = true} : vector<2x128xf32> -> vector<2x128xf32>
    %29 = vector.extract_strided_slice %21 {offsets = [0, 128], sizes = [2, 128], strides = [1, 1]} : vector<2x512xf32> to vector<2x128xf32>
    %cst_20 = arith.constant 0.000000e+00 : f32
    %30 = vector.broadcast %cst_20 : f32 to vector<2x128xf32>
    %31 = arith.subf %30, %29 : vector<2x128xf32>
    %32 = math.exp %31 : vector<2x128xf32>
    %cst_21 = arith.constant 1.000000e+00 : f32
    %33 = vector.broadcast %cst_21 : f32 to vector<2x128xf32>
    %34 = arith.addf %33, %32 : vector<2x128xf32>
    %35 = tpu.reciprocal %34 {approx = true} : vector<2x128xf32> -> vector<2x128xf32>
    %36 = vector.extract_strided_slice %21 {offsets = [0, 256], sizes = [2, 128], strides = [1, 1]} : vector<2x512xf32> to vector<2x128xf32>
    %37 = math.tanh %36 : vector<2x128xf32>
    %38 = vector.extract_strided_slice %21 {offsets = [0, 384], sizes = [2, 128], strides = [1, 1]} : vector<2x512xf32> to vector<2x128xf32>
    %cst_22 = arith.constant 0.000000e+00 : f32
    %39 = vector.broadcast %cst_22 : f32 to vector<2x128xf32>
    %40 = arith.subf %39, %38 : vector<2x128xf32>
    %41 = math.exp %40 : vector<2x128xf32>
    %cst_23 = arith.constant 1.000000e+00 : f32
    %42 = vector.broadcast %cst_23 : f32 to vector<2x128xf32>
    %43 = arith.addf %42, %41 : vector<2x128xf32>
    %44 = tpu.reciprocal %43 {approx = true} : vector<2x128xf32> -> vector<2x128xf32>
    %45 = arith.mulf %35, %16 : vector<2x128xf32>
    %46 = arith.mulf %28, %37 : vector<2x128xf32>
    %47 = arith.addf %45, %46 : vector<2x128xf32>
    %48 = math.tanh %47 : vector<2x128xf32>
    %49 = arith.mulf %44, %48 : vector<2x128xf32>
    %50 = tpu.concatenate %49, %16 in 1 : vector<2x128xf32>, vector<2x128xf32> -> vector<2x256xf32>
    %cst_24 = arith.constant dense<0.000000e+00> : vector<2x512xf32>
    %51 = tpu.matmul %50, %12, %cst_24 {dimension_numbers = #tpu.dot_dimension_numbers<[1], [0], [0], [1], [0, 0, 1, 1], [], []>} : vector<2x256xf32>, vector<256x512xf32>, vector<2x512xf32> -> vector<2x512xf32>
    %52 = arith.addf %51, %15 : vector<2x512xf32>
    %53 = vector.extract_strided_slice %52 {offsets = [0, 0], sizes = [2, 128], strides = [1, 1]} : vector<2x512xf32> to vector<2x128xf32>
    %cst_25 = arith.constant 0.000000e+00 : f32
    %54 = vector.broadcast %cst_25 : f32 to vector<2x128xf32>
    %55 = arith.subf %54, %53 : vector<2x128xf32>
    %56 = math.exp %55 : vector<2x128xf32>
    %cst_26 = arith.constant 1.000000e+00 : f32
    %57 = vector.broadcast %cst_26 : f32 to vector<2x128xf32>
    %58 = arith.addf %57, %56 : vector<2x128xf32>
    %59 = tpu.reciprocal %58 {approx = true} : vector<2x128xf32> -> vector<2x128xf32>
    %60 = vector.extract_strided_slice %52 {offsets = [0, 128], sizes = [2, 128], strides = [1, 1]} : vector<2x512xf32> to vector<2x128xf32>
    %cst_27 = arith.constant 0.000000e+00 : f32
    %61 = vector.broadcast %cst_27 : f32 to vector<2x128xf32>
    %62 = arith.subf %61, %60 : vector<2x128xf32>
    %63 = math.exp %62 : vector<2x128xf32>
    %cst_28 = arith.constant 1.000000e+00 : f32
    %64 = vector.broadcast %cst_28 : f32 to vector<2x128xf32>
    %65 = arith.addf %64, %63 : vector<2x128xf32>
    %66 = tpu.reciprocal %65 {approx = true} : vector<2x128xf32> -> vector<2x128xf32>
    %67 = vector.extract_strided_slice %52 {offsets = [0, 256], sizes = [2, 128], strides = [1, 1]} : vector<2x512xf32> to vector<2x128xf32>
    %68 = math.tanh %67 : vector<2x128xf32>
    %69 = vector.extract_strided_slice %52 {offsets = [0, 384], sizes = [2, 128], strides = [1, 1]} : vector<2x512xf32> to vector<2x128xf32>
    %cst_29 = arith.constant 0.000000e+00 : f32
    %70 = vector.broadcast %cst_29 : f32 to vector<2x128xf32>
    %71 = arith.subf %70, %69 : vector<2x128xf32>
    %72 = math.exp %71 : vector<2x128xf32>
    %cst_30 = arith.constant 1.000000e+00 : f32
    %73 = vector.broadcast %cst_30 : f32 to vector<2x128xf32>
    %74 = arith.addf %73, %72 : vector<2x128xf32>
    %75 = tpu.reciprocal %74 {approx = true} : vector<2x128xf32> -> vector<2x128xf32>
    %76 = arith.mulf %66, %16 : vector<2x128xf32>
    %77 = arith.mulf %59, %68 : vector<2x128xf32>
    %78 = arith.addf %76, %77 : vector<2x128xf32>
    %79 = math.tanh %78 : vector<2x128xf32>
    %80 = arith.mulf %75, %79 : vector<2x128xf32>
    %81 = arith.index_cast %c0_i32 : i32 to index
    %c0_31 = arith.constant 0 : index
    %c0_32 = arith.constant 0 : index
    %82 = vector.load %arg12[%81, %c0_31, %c0_32] : memref<7x2x128xf32, #tpu.memory_space<vmem>>, vector<1x2x128xf32>
    %83 = vector.shape_cast %82 : vector<1x2x128xf32> to vector<2x128xf32>
    %84 = vector.shape_cast %80 : vector<2x128xf32> to vector<1x2x128xf32>
    tpu.vector_store %arg12[%81, %c0_31, %c0_32], %84 {strides = array<i32>} : memref<7x2x128xf32, #tpu.memory_space<vmem>>, vector<1x2x128xf32>,
    %c1_i32 = arith.constant 1 : i32
    %85 = arith.index_cast %c1_i32 : i32 to index
    %c0_33 = arith.constant 0 : index
    %c0_34 = arith.constant 0 : index
    %86 = vector.load %arg11[%85, %c0_33, %c0_34] : memref<7x2x512xf32, #tpu.memory_space<vmem>>, vector<1x2x512xf32>
    %87 = vector.shape_cast %86 : vector<1x2x512xf32> to vector<2x512xf32>
    %cst_35 = arith.constant dense<0.000000e+00> : vector<2x512xf32>
    %88 = tpu.matmul %49, %11, %cst_35 {dimension_numbers = #tpu.dot_dimension_numbers<[1], [0], [0], [1], [0, 0, 1, 1], [], []>} : vector<2x128xf32>, vector<128x512xf32>, vector<2x512xf32> -> vector<2x512xf32>
    %89 = arith.addf %87, %88 : vector<2x512xf32>
    %90 = vector.extract_strided_slice %89 {offsets = [0, 0], sizes = [2, 128], strides = [1, 1]} : vector<2x512xf32> to vector<2x128xf32>
    %cst_36 = arith.constant 0.000000e+00 : f32
    %91 = vector.broadcast %cst_36 : f32 to vector<2x128xf32>
    %92 = arith.subf %91, %90 : vector<2x128xf32>
    %93 = math.exp %92 : vector<2x128xf32>
    %cst_37 = arith.constant 1.000000e+00 : f32
    %94 = vector.broadcast %cst_37 : f32 to vector<2x128xf32>
    %95 = arith.addf %94, %93 : vector<2x128xf32>
    %96 = tpu.reciprocal %95 {approx = true} : vector<2x128xf32> -> vector<2x128xf32>
    %97 = vector.extract_strided_slice %89 {offsets = [0, 128], sizes = [2, 128], strides = [1, 1]} : vector<2x512xf32> to vector<2x128xf32>
    %cst_38 = arith.constant 0.000000e+00 : f32
    %98 = vector.broadcast %cst_38 : f32 to vector<2x128xf32>
    %99 = arith.subf %98, %97 : vector<2x128xf32>
    %100 = math.exp %99 : vector<2x128xf32>
    %cst_39 = arith.constant 1.000000e+00 : f32
    %101 = vector.broadcast %cst_39 : f32 to vector<2x128xf32>
    %102 = arith.addf %101, %100 : vector<2x128xf32>
    %103 = tpu.reciprocal %102 {approx = true} : vector<2x128xf32> -> vector<2x128xf32>
    %104 = vector.extract_strided_slice %89 {offsets = [0, 256], sizes = [2, 128], strides = [1, 1]} : vector<2x512xf32> to vector<2x128xf32>
    %105 = math.tanh %104 : vector<2x128xf32>
    %106 = vector.extract_strided_slice %89 {offsets = [0, 384], sizes = [2, 128], strides = [1, 1]} : vector<2x512xf32> to vector<2x128xf32>
    %cst_40 = arith.constant 0.000000e+00 : f32
    %107 = vector.broadcast %cst_40 : f32 to vector<2x128xf32>
    %108 = arith.subf %107, %106 : vector<2x128xf32>
    %109 = math.exp %108 : vector<2x128xf32>
    %cst_41 = arith.constant 1.000000e+00 : f32
    %110 = vector.broadcast %cst_41 : f32 to vector<2x128xf32>
    %111 = arith.addf %110, %109 : vector<2x128xf32>
    %112 = tpu.reciprocal %111 {approx = true} : vector<2x128xf32> -> vector<2x128xf32>
    %113 = arith.mulf %103, %47 : vector<2x128xf32>
    %114 = arith.mulf %96, %105 : vector<2x128xf32>
    %115 = arith.addf %113, %114 : vector<2x128xf32>
    %116 = math.tanh %115 : vector<2x128xf32>
    %117 = arith.mulf %112, %116 : vector<2x128xf32>
    %118 = tpu.concatenate %117, %80 in 1 : vector<2x128xf32>, vector<2x128xf32> -> vector<2x256xf32>
    %cst_42 = arith.constant dense<0.000000e+00> : vector<2x512xf32>
    %119 = tpu.matmul %118, %12, %cst_42 {dimension_numbers = #tpu.dot_dimension_numbers<[1], [0], [0], [1], [0, 0, 1, 1], [], []>} : vector<2x256xf32>, vector<256x512xf32>, vector<2x512xf32> -> vector<2x512xf32>
    %120 = arith.addf %119, %15 : vector<2x512xf32>
    %121 = vector.extract_strided_slice %120 {offsets = [0, 0], sizes = [2, 128], strides = [1, 1]} : vector<2x512xf32> to vector<2x128xf32>
    %cst_43 = arith.constant 0.000000e+00 : f32
    %122 = vector.broadcast %cst_43 : f32 to vector<2x128xf32>
    %123 = arith.subf %122, %121 : vector<2x128xf32>
    %124 = math.exp %123 : vector<2x128xf32>
    %cst_44 = arith.constant 1.000000e+00 : f32
    %125 = vector.broadcast %cst_44 : f32 to vector<2x128xf32>
    %126 = arith.addf %125, %124 : vector<2x128xf32>
    %127 = tpu.reciprocal %126 {approx = true} : vector<2x128xf32> -> vector<2x128xf32>
    %128 = vector.extract_strided_slice %120 {offsets = [0, 128], sizes = [2, 128], strides = [1, 1]} : vector<2x512xf32> to vector<2x128xf32>
    %cst_45 = arith.constant 0.000000e+00 : f32
    %129 = vector.broadcast %cst_45 : f32 to vector<2x128xf32>
    %130 = arith.subf %129, %128 : vector<2x128xf32>
    %131 = math.exp %130 : vector<2x128xf32>
    %cst_46 = arith.constant 1.000000e+00 : f32
    %132 = vector.broadcast %cst_46 : f32 to vector<2x128xf32>
    %133 = arith.addf %132, %131 : vector<2x128xf32>
    %134 = tpu.reciprocal %133 {approx = true} : vector<2x128xf32> -> vector<2x128xf32>
    %135 = vector.extract_strided_slice %120 {offsets = [0, 256], sizes = [2, 128], strides = [1, 1]} : vector<2x512xf32> to vector<2x128xf32>
    %136 = math.tanh %135 : vector<2x128xf32>
    %137 = vector.extract_strided_slice %120 {offsets = [0, 384], sizes = [2, 128], strides = [1, 1]} : vector<2x512xf32> to vector<2x128xf32>
    %cst_47 = arith.constant 0.000000e+00 : f32
    %138 = vector.broadcast %cst_47 : f32 to vector<2x128xf32>
    %139 = arith.subf %138, %137 : vector<2x128xf32>
    %140 = math.exp %139 : vector<2x128xf32>
    %cst_48 = arith.constant 1.000000e+00 : f32
    %141 = vector.broadcast %cst_48 : f32 to vector<2x128xf32>
    %142 = arith.addf %141, %140 : vector<2x128xf32>
    %143 = tpu.reciprocal %142 {approx = true} : vector<2x128xf32> -> vector<2x128xf32>
    %144 = arith.mulf %134, %78 : vector<2x128xf32>
    %145 = arith.mulf %127, %136 : vector<2x128xf32>
    %146 = arith.addf %144, %145 : vector<2x128xf32>
    %147 = math.tanh %146 : vector<2x128xf32>
    %148 = arith.mulf %143, %147 : vector<2x128xf32>
    %149 = arith.index_cast %c1_i32 : i32 to index
    %c0_49 = arith.constant 0 : index
    %c0_50 = arith.constant 0 : index
    %150 = vector.load %arg12[%149, %c0_49, %c0_50] : memref<7x2x128xf32, #tpu.memory_space<vmem>>, vector<1x2x128xf32>
    %151 = vector.shape_cast %150 : vector<1x2x128xf32> to vector<2x128xf32>
    %152 = vector.shape_cast %148 : vector<2x128xf32> to vector<1x2x128xf32>
    tpu.vector_store %arg12[%149, %c0_49, %c0_50], %152 {strides = array<i32>} : memref<7x2x128xf32, #tpu.memory_space<vmem>>, vector<1x2x128xf32>,
    %c2_i32 = arith.constant 2 : i32
    %153 = arith.index_cast %c2_i32 : i32 to index
    %c0_51 = arith.constant 0 : index
    %c0_52 = arith.constant 0 : index
    %154 = vector.load %arg11[%153, %c0_51, %c0_52] : memref<7x2x512xf32, #tpu.memory_space<vmem>>, vector<1x2x512xf32>
    %155 = vector.shape_cast %154 : vector<1x2x512xf32> to vector<2x512xf32>
    %cst_53 = arith.constant dense<0.000000e+00> : vector<2x512xf32>
    %156 = tpu.matmul %117, %11, %cst_53 {dimension_numbers = #tpu.dot_dimension_numbers<[1], [0], [0], [1], [0, 0, 1, 1], [], []>} : vector<2x128xf32>, vector<128x512xf32>, vector<2x512xf32> -> vector<2x512xf32>
    %157 = arith.addf %155, %156 : vector<2x512xf32>
    %158 = vector.extract_strided_slice %157 {offsets = [0, 0], sizes = [2, 128], strides = [1, 1]} : vector<2x512xf32> to vector<2x128xf32>
    %cst_54 = arith.constant 0.000000e+00 : f32
    %159 = vector.broadcast %cst_54 : f32 to vector<2x128xf32>
    %160 = arith.subf %159, %158 : vector<2x128xf32>
    %161 = math.exp %160 : vector<2x128xf32>
    %cst_55 = arith.constant 1.000000e+00 : f32
    %162 = vector.broadcast %cst_55 : f32 to vector<2x128xf32>
    %163 = arith.addf %162, %161 : vector<2x128xf32>
    %164 = tpu.reciprocal %163 {approx = true} : vector<2x128xf32> -> vector<2x128xf32>
    %165 = vector.extract_strided_slice %157 {offsets = [0, 128], sizes = [2, 128], strides = [1, 1]} : vector<2x512xf32> to vector<2x128xf32>
    %cst_56 = arith.constant 0.000000e+00 : f32
    %166 = vector.broadcast %cst_56 : f32 to vector<2x128xf32>
    %167 = arith.subf %166, %165 : vector<2x128xf32>
    %168 = math.exp %167 : vector<2x128xf32>
    %cst_57 = arith.constant 1.000000e+00 : f32
    %169 = vector.broadcast %cst_57 : f32 to vector<2x128xf32>
    %170 = arith.addf %169, %168 : vector<2x128xf32>
    %171 = tpu.reciprocal %170 {approx = true} : vector<2x128xf32> -> vector<2x128xf32>
    %172 = vector.extract_strided_slice %157 {offsets = [0, 256], sizes = [2, 128], strides = [1, 1]} : vector<2x512xf32> to vector<2x128xf32>
    %173 = math.tanh %172 : vector<2x128xf32>
    %174 = vector.extract_strided_slice %157 {offsets = [0, 384], sizes = [2, 128], strides = [1, 1]} : vector<2x512xf32> to vector<2x128xf32>
    %cst_58 = arith.constant 0.000000e+00 : f32
    %175 = vector.broadcast %cst_58 : f32 to vector<2x128xf32>
    %176 = arith.subf %175, %174 : vector<2x128xf32>
    %177 = math.exp %176 : vector<2x128xf32>
    %cst_59 = arith.constant 1.000000e+00 : f32
    %178 = vector.broadcast %cst_59 : f32 to vector<2x128xf32>
    %179 = arith.addf %178, %177 : vector<2x128xf32>
    %180 = tpu.reciprocal %179 {approx = true} : vector<2x128xf32> -> vector<2x128xf32>
    %181 = arith.mulf %171, %115 : vector<2x128xf32>
    %182 = arith.mulf %164, %173 : vector<2x128xf32>
    %183 = arith.addf %181, %182 : vector<2x128xf32>
    %184 = math.tanh %183 : vector<2x128xf32>
    %185 = arith.mulf %180, %184 : vector<2x128xf32>
    %186 = tpu.concatenate %185, %148 in 1 : vector<2x128xf32>, vector<2x128xf32> -> vector<2x256xf32>
    %cst_60 = arith.constant dense<0.000000e+00> : vector<2x512xf32>
    %187 = tpu.matmul %186, %12, %cst_60 {dimension_numbers = #tpu.dot_dimension_numbers<[1], [0], [0], [1], [0, 0, 1, 1], [], []>} : vector<2x256xf32>, vector<256x512xf32>, vector<2x512xf32> -> vector<2x512xf32>
    %188 = arith.addf %187, %15 : vector<2x512xf32>
    %189 = vector.extract_strided_slice %188 {offsets = [0, 0], sizes = [2, 128], strides = [1, 1]} : vector<2x512xf32> to vector<2x128xf32>
    %cst_61 = arith.constant 0.000000e+00 : f32
    %190 = vector.broadcast %cst_61 : f32 to vector<2x128xf32>
    %191 = arith.subf %190, %189 : vector<2x128xf32>
    %192 = math.exp %191 : vector<2x128xf32>
    %cst_62 = arith.constant 1.000000e+00 : f32
    %193 = vector.broadcast %cst_62 : f32 to vector<2x128xf32>
    %194 = arith.addf %193, %192 : vector<2x128xf32>
    %195 = tpu.reciprocal %194 {approx = true} : vector<2x128xf32> -> vector<2x128xf32>
    %196 = vector.extract_strided_slice %188 {offsets = [0, 128], sizes = [2, 128], strides = [1, 1]} : vector<2x512xf32> to vector<2x128xf32>
    %cst_63 = arith.constant 0.000000e+00 : f32
    %197 = vector.broadcast %cst_63 : f32 to vector<2x128xf32>
    %198 = arith.subf %197, %196 : vector<2x128xf32>
    %199 = math.exp %198 : vector<2x128xf32>
    %cst_64 = arith.constant 1.000000e+00 : f32
    %200 = vector.broadcast %cst_64 : f32 to vector<2x128xf32>
    %201 = arith.addf %200, %199 : vector<2x128xf32>
    %202 = tpu.reciprocal %201 {approx = true} : vector<2x128xf32> -> vector<2x128xf32>
    %203 = vector.extract_strided_slice %188 {offsets = [0, 256], sizes = [2, 128], strides = [1, 1]} : vector<2x512xf32> to vector<2x128xf32>
    %204 = math.tanh %203 : vector<2x128xf32>
    %205 = vector.extract_strided_slice %188 {offsets = [0, 384], sizes = [2, 128], strides = [1, 1]} : vector<2x512xf32> to vector<2x128xf32>
    %cst_65 = arith.constant 0.000000e+00 : f32
    %206 = vector.broadcast %cst_65 : f32 to vector<2x128xf32>
    %207 = arith.subf %206, %205 : vector<2x128xf32>
    %208 = math.exp %207 : vector<2x128xf32>
    %cst_66 = arith.constant 1.000000e+00 : f32
    %209 = vector.broadcast %cst_66 : f32 to vector<2x128xf32>
    %210 = arith.addf %209, %208 : vector<2x128xf32>
    %211 = tpu.reciprocal %210 {approx = true} : vector<2x128xf32> -> vector<2x128xf32>
    %212 = arith.mulf %202, %146 : vector<2x128xf32>
    %213 = arith.mulf %195, %204 : vector<2x128xf32>
    %214 = arith.addf %212, %213 : vector<2x128xf32>
    %215 = math.tanh %214 : vector<2x128xf32>
    %216 = arith.mulf %211, %215 : vector<2x128xf32>
    %217 = arith.index_cast %c2_i32 : i32 to index
    %c0_67 = arith.constant 0 : index
    %c0_68 = arith.constant 0 : index
    %218 = vector.load %arg12[%217, %c0_67, %c0_68] : memref<7x2x128xf32, #tpu.memory_space<vmem>>, vector<1x2x128xf32>
    %219 = vector.shape_cast %218 : vector<1x2x128xf32> to vector<2x128xf32>
    %220 = vector.shape_cast %216 : vector<2x128xf32> to vector<1x2x128xf32>
    tpu.vector_store %arg12[%217, %c0_67, %c0_68], %220 {strides = array<i32>} : memref<7x2x128xf32, #tpu.memory_space<vmem>>, vector<1x2x128xf32>,
    %c3_i32 = arith.constant 3 : i32
    %221 = arith.index_cast %c3_i32 : i32 to index
    %c0_69 = arith.constant 0 : index
    %c0_70 = arith.constant 0 : index
    %222 = vector.load %arg11[%221, %c0_69, %c0_70] : memref<7x2x512xf32, #tpu.memory_space<vmem>>, vector<1x2x512xf32>
    %223 = vector.shape_cast %222 : vector<1x2x512xf32> to vector<2x512xf32>
    %cst_71 = arith.constant dense<0.000000e+00> : vector<2x512xf32>
    %224 = tpu.matmul %185, %11, %cst_71 {dimension_numbers = #tpu.dot_dimension_numbers<[1], [0], [0], [1], [0, 0, 1, 1], [], []>} : vector<2x128xf32>, vector<128x512xf32>, vector<2x512xf32> -> vector<2x512xf32>
    %225 = arith.addf %223, %224 : vector<2x512xf32>
    %226 = vector.extract_strided_slice %225 {offsets = [0, 0], sizes = [2, 128], strides = [1, 1]} : vector<2x512xf32> to vector<2x128xf32>
    %cst_72 = arith.constant 0.000000e+00 : f32
    %227 = vector.broadcast %cst_72 : f32 to vector<2x128xf32>
    %228 = arith.subf %227, %226 : vector<2x128xf32>
    %229 = math.exp %228 : vector<2x128xf32>
    %cst_73 = arith.constant 1.000000e+00 : f32
    %230 = vector.broadcast %cst_73 : f32 to vector<2x128xf32>
    %231 = arith.addf %230, %229 : vector<2x128xf32>
    %232 = tpu.reciprocal %231 {approx = true} : vector<2x128xf32> -> vector<2x128xf32>
    %233 = vector.extract_strided_slice %225 {offsets = [0, 128], sizes = [2, 128], strides = [1, 1]} : vector<2x512xf32> to vector<2x128xf32>
    %cst_74 = arith.constant 0.000000e+00 : f32
    %234 = vector.broadcast %cst_74 : f32 to vector<2x128xf32>
    %235 = arith.subf %234, %233 : vector<2x128xf32>
    %236 = math.exp %235 : vector<2x128xf32>
    %cst_75 = arith.constant 1.000000e+00 : f32
    %237 = vector.broadcast %cst_75 : f32 to vector<2x128xf32>
    %238 = arith.addf %237, %236 : vector<2x128xf32>
    %239 = tpu.reciprocal %238 {approx = true} : vector<2x128xf32> -> vector<2x128xf32>
    %240 = vector.extract_strided_slice %225 {offsets = [0, 256], sizes = [2, 128], strides = [1, 1]} : vector<2x512xf32> to vector<2x128xf32>
    %241 = math.tanh %240 : vector<2x128xf32>
    %242 = vector.extract_strided_slice %225 {offsets = [0, 384], sizes = [2, 128], strides = [1, 1]} : vector<2x512xf32> to vector<2x128xf32>
    %cst_76 = arith.constant 0.000000e+00 : f32
    %243 = vector.broadcast %cst_76 : f32 to vector<2x128xf32>
    %244 = arith.subf %243, %242 : vector<2x128xf32>
    %245 = math.exp %244 : vector<2x128xf32>
    %cst_77 = arith.constant 1.000000e+00 : f32
    %246 = vector.broadcast %cst_77 : f32 to vector<2x128xf32>
    %247 = arith.addf %246, %245 : vector<2x128xf32>
    %248 = tpu.reciprocal %247 {approx = true} : vector<2x128xf32> -> vector<2x128xf32>
    %249 = arith.mulf %239, %183 : vector<2x128xf32>
    %250 = arith.mulf %232, %241 : vector<2x128xf32>
    %251 = arith.addf %249, %250 : vector<2x128xf32>
    %252 = math.tanh %251 : vector<2x128xf32>
    %253 = arith.mulf %248, %252 : vector<2x128xf32>
    %254 = tpu.concatenate %253, %216 in 1 : vector<2x128xf32>, vector<2x128xf32> -> vector<2x256xf32>
    %cst_78 = arith.constant dense<0.000000e+00> : vector<2x512xf32>
    %255 = tpu.matmul %254, %12, %cst_78 {dimension_numbers = #tpu.dot_dimension_numbers<[1], [0], [0], [1], [0, 0, 1, 1], [], []>} : vector<2x256xf32>, vector<256x512xf32>, vector<2x512xf32> -> vector<2x512xf32>
    %256 = arith.addf %255, %15 : vector<2x512xf32>
    %257 = vector.extract_strided_slice %256 {offsets = [0, 0], sizes = [2, 128], strides = [1, 1]} : vector<2x512xf32> to vector<2x128xf32>
    %cst_79 = arith.constant 0.000000e+00 : f32
    %258 = vector.broadcast %cst_79 : f32 to vector<2x128xf32>
    %259 = arith.subf %258, %257 : vector<2x128xf32>
    %260 = math.exp %259 : vector<2x128xf32>
    %cst_80 = arith.constant 1.000000e+00 : f32
    %261 = vector.broadcast %cst_80 : f32 to vector<2x128xf32>
    %262 = arith.addf %261, %260 : vector<2x128xf32>
    %263 = tpu.reciprocal %262 {approx = true} : vector<2x128xf32> -> vector<2x128xf32>
    %264 = vector.extract_strided_slice %256 {offsets = [0, 128], sizes = [2, 128], strides = [1, 1]} : vector<2x512xf32> to vector<2x128xf32>
    %cst_81 = arith.constant 0.000000e+00 : f32
    %265 = vector.broadcast %cst_81 : f32 to vector<2x128xf32>
    %266 = arith.subf %265, %264 : vector<2x128xf32>
    %267 = math.exp %266 : vector<2x128xf32>
    %cst_82 = arith.constant 1.000000e+00 : f32
    %268 = vector.broadcast %cst_82 : f32 to vector<2x128xf32>
    %269 = arith.addf %268, %267 : vector<2x128xf32>
    %270 = tpu.reciprocal %269 {approx = true} : vector<2x128xf32> -> vector<2x128xf32>
    %271 = vector.extract_strided_slice %256 {offsets = [0, 256], sizes = [2, 128], strides = [1, 1]} : vector<2x512xf32> to vector<2x128xf32>
    %272 = math.tanh %271 : vector<2x128xf32>
    %273 = vector.extract_strided_slice %256 {offsets = [0, 384], sizes = [2, 128], strides = [1, 1]} : vector<2x512xf32> to vector<2x128xf32>
    %cst_83 = arith.constant 0.000000e+00 : f32
    %274 = vector.broadcast %cst_83 : f32 to vector<2x128xf32>
    %275 = arith.subf %274, %273 : vector<2x128xf32>
    %276 = math.exp %275 : vector<2x128xf32>
    %cst_84 = arith.constant 1.000000e+00 : f32
    %277 = vector.broadcast %cst_84 : f32 to vector<2x128xf32>
    %278 = arith.addf %277, %276 : vector<2x128xf32>
    %279 = tpu.reciprocal %278 {approx = true} : vector<2x128xf32> -> vector<2x128xf32>
    %280 = arith.mulf %270, %214 : vector<2x128xf32>
    %281 = arith.mulf %263, %272 : vector<2x128xf32>
    %282 = arith.addf %280, %281 : vector<2x128xf32>
    %283 = math.tanh %282 : vector<2x128xf32>
    %284 = arith.mulf %279, %283 : vector<2x128xf32>
    %285 = arith.index_cast %c3_i32 : i32 to index
    %c0_85 = arith.constant 0 : index
    %c0_86 = arith.constant 0 : index
    %286 = vector.load %arg12[%285, %c0_85, %c0_86] : memref<7x2x128xf32, #tpu.memory_space<vmem>>, vector<1x2x128xf32>
    %287 = vector.shape_cast %286 : vector<1x2x128xf32> to vector<2x128xf32>
    %288 = vector.shape_cast %284 : vector<2x128xf32> to vector<1x2x128xf32>
    tpu.vector_store %arg12[%285, %c0_85, %c0_86], %288 {strides = array<i32>} : memref<7x2x128xf32, #tpu.memory_space<vmem>>, vector<1x2x128xf32>,
    %c4_i32 = arith.constant 4 : i32
    %289 = arith.index_cast %c4_i32 : i32 to index
    %c0_87 = arith.constant 0 : index
    %c0_88 = arith.constant 0 : index
    %290 = vector.load %arg11[%289, %c0_87, %c0_88] : memref<7x2x512xf32, #tpu.memory_space<vmem>>, vector<1x2x512xf32>
    %291 = vector.shape_cast %290 : vector<1x2x512xf32> to vector<2x512xf32>
    %cst_89 = arith.constant dense<0.000000e+00> : vector<2x512xf32>
    %292 = tpu.matmul %253, %11, %cst_89 {dimension_numbers = #tpu.dot_dimension_numbers<[1], [0], [0], [1], [0, 0, 1, 1], [], []>} : vector<2x128xf32>, vector<128x512xf32>, vector<2x512xf32> -> vector<2x512xf32>
    %293 = arith.addf %291, %292 : vector<2x512xf32>
    %294 = vector.extract_strided_slice %293 {offsets = [0, 0], sizes = [2, 128], strides = [1, 1]} : vector<2x512xf32> to vector<2x128xf32>
    %cst_90 = arith.constant 0.000000e+00 : f32
    %295 = vector.broadcast %cst_90 : f32 to vector<2x128xf32>
    %296 = arith.subf %295, %294 : vector<2x128xf32>
    %297 = math.exp %296 : vector<2x128xf32>
    %cst_91 = arith.constant 1.000000e+00 : f32
    %298 = vector.broadcast %cst_91 : f32 to vector<2x128xf32>
    %299 = arith.addf %298, %297 : vector<2x128xf32>
    %300 = tpu.reciprocal %299 {approx = true} : vector<2x128xf32> -> vector<2x128xf32>
    %301 = vector.extract_strided_slice %293 {offsets = [0, 128], sizes = [2, 128], strides = [1, 1]} : vector<2x512xf32> to vector<2x128xf32>
    %cst_92 = arith.constant 0.000000e+00 : f32
    %302 = vector.broadcast %cst_92 : f32 to vector<2x128xf32>
    %303 = arith.subf %302, %301 : vector<2x128xf32>
    %304 = math.exp %303 : vector<2x128xf32>
    %cst_93 = arith.constant 1.000000e+00 : f32
    %305 = vector.broadcast %cst_93 : f32 to vector<2x128xf32>
    %306 = arith.addf %305, %304 : vector<2x128xf32>
    %307 = tpu.reciprocal %306 {approx = true} : vector<2x128xf32> -> vector<2x128xf32>
    %308 = vector.extract_strided_slice %293 {offsets = [0, 256], sizes = [2, 128], strides = [1, 1]} : vector<2x512xf32> to vector<2x128xf32>
    %309 = math.tanh %308 : vector<2x128xf32>
    %310 = vector.extract_strided_slice %293 {offsets = [0, 384], sizes = [2, 128], strides = [1, 1]} : vector<2x512xf32> to vector<2x128xf32>
    %cst_94 = arith.constant 0.000000e+00 : f32
    %311 = vector.broadcast %cst_94 : f32 to vector<2x128xf32>
    %312 = arith.subf %311, %310 : vector<2x128xf32>
    %313 = math.exp %312 : vector<2x128xf32>
    %cst_95 = arith.constant 1.000000e+00 : f32
    %314 = vector.broadcast %cst_95 : f32 to vector<2x128xf32>
    %315 = arith.addf %314, %313 : vector<2x128xf32>
    %316 = tpu.reciprocal %315 {approx = true} : vector<2x128xf32> -> vector<2x128xf32>
    %317 = arith.mulf %307, %251 : vector<2x128xf32>
    %318 = arith.mulf %300, %309 : vector<2x128xf32>
    %319 = arith.addf %317, %318 : vector<2x128xf32>
    %320 = math.tanh %319 : vector<2x128xf32>
    %321 = arith.mulf %316, %320 : vector<2x128xf32>
    %322 = tpu.concatenate %321, %284 in 1 : vector<2x128xf32>, vector<2x128xf32> -> vector<2x256xf32>
    %cst_96 = arith.constant dense<0.000000e+00> : vector<2x512xf32>
    %323 = tpu.matmul %322, %12, %cst_96 {dimension_numbers = #tpu.dot_dimension_numbers<[1], [0], [0], [1], [0, 0, 1, 1], [], []>} : vector<2x256xf32>, vector<256x512xf32>, vector<2x512xf32> -> vector<2x512xf32>
    %324 = arith.addf %323, %15 : vector<2x512xf32>
    %325 = vector.extract_strided_slice %324 {offsets = [0, 0], sizes = [2, 128], strides = [1, 1]} : vector<2x512xf32> to vector<2x128xf32>
    %cst_97 = arith.constant 0.000000e+00 : f32
    %326 = vector.broadcast %cst_97 : f32 to vector<2x128xf32>
    %327 = arith.subf %326, %325 : vector<2x128xf32>
    %328 = math.exp %327 : vector<2x128xf32>
    %cst_98 = arith.constant 1.000000e+00 : f32
    %329 = vector.broadcast %cst_98 : f32 to vector<2x128xf32>
    %330 = arith.addf %329, %328 : vector<2x128xf32>
    %331 = tpu.reciprocal %330 {approx = true} : vector<2x128xf32> -> vector<2x128xf32>
    %332 = vector.extract_strided_slice %324 {offsets = [0, 128], sizes = [2, 128], strides = [1, 1]} : vector<2x512xf32> to vector<2x128xf32>
    %cst_99 = arith.constant 0.000000e+00 : f32
    %333 = vector.broadcast %cst_99 : f32 to vector<2x128xf32>
    %334 = arith.subf %333, %332 : vector<2x128xf32>
    %335 = math.exp %334 : vector<2x128xf32>
    %cst_100 = arith.constant 1.000000e+00 : f32
    %336 = vector.broadcast %cst_100 : f32 to vector<2x128xf32>
    %337 = arith.addf %336, %335 : vector<2x128xf32>
    %338 = tpu.reciprocal %337 {approx = true} : vector<2x128xf32> -> vector<2x128xf32>
    %339 = vector.extract_strided_slice %324 {offsets = [0, 256], sizes = [2, 128], strides = [1, 1]} : vector<2x512xf32> to vector<2x128xf32>
    %340 = math.tanh %339 : vector<2x128xf32>
    %341 = vector.extract_strided_slice %324 {offsets = [0, 384], sizes = [2, 128], strides = [1, 1]} : vector<2x512xf32> to vector<2x128xf32>
    %cst_101 = arith.constant 0.000000e+00 : f32
    %342 = vector.broadcast %cst_101 : f32 to vector<2x128xf32>
    %343 = arith.subf %342, %341 : vector<2x128xf32>
    %344 = math.exp %343 : vector<2x128xf32>
    %cst_102 = arith.constant 1.000000e+00 : f32
    %345 = vector.broadcast %cst_102 : f32 to vector<2x128xf32>
    %346 = arith.addf %345, %344 : vector<2x128xf32>
    %347 = tpu.reciprocal %346 {approx = true} : vector<2x128xf32> -> vector<2x128xf32>
    %348 = arith.mulf %338, %282 : vector<2x128xf32>
    %349 = arith.mulf %331, %340 : vector<2x128xf32>
    %350 = arith.addf %348, %349 : vector<2x128xf32>
    %351 = math.tanh %350 : vector<2x128xf32>
    %352 = arith.mulf %347, %351 : vector<2x128xf32>
    %353 = arith.index_cast %c4_i32 : i32 to index
    %c0_103 = arith.constant 0 : index
    %c0_104 = arith.constant 0 : index
    %354 = vector.load %arg12[%353, %c0_103, %c0_104] : memref<7x2x128xf32, #tpu.memory_space<vmem>>, vector<1x2x128xf32>
    %355 = vector.shape_cast %354 : vector<1x2x128xf32> to vector<2x128xf32>
    %356 = vector.shape_cast %352 : vector<2x128xf32> to vector<1x2x128xf32>
    tpu.vector_store %arg12[%353, %c0_103, %c0_104], %356 {strides = array<i32>} : memref<7x2x128xf32, #tpu.memory_space<vmem>>, vector<1x2x128xf32>,
    %c5_i32 = arith.constant 5 : i32
    %357 = arith.index_cast %c5_i32 : i32 to index
    %c0_105 = arith.constant 0 : index
    %c0_106 = arith.constant 0 : index
    %358 = vector.load %arg11[%357, %c0_105, %c0_106] : memref<7x2x512xf32, #tpu.memory_space<vmem>>, vector<1x2x512xf32>
    %359 = vector.shape_cast %358 : vector<1x2x512xf32> to vector<2x512xf32>
    %cst_107 = arith.constant dense<0.000000e+00> : vector<2x512xf32>
    %360 = tpu.matmul %321, %11, %cst_107 {dimension_numbers = #tpu.dot_dimension_numbers<[1], [0], [0], [1], [0, 0, 1, 1], [], []>} : vector<2x128xf32>, vector<128x512xf32>, vector<2x512xf32> -> vector<2x512xf32>
    %361 = arith.addf %359, %360 : vector<2x512xf32>
    %362 = vector.extract_strided_slice %361 {offsets = [0, 0], sizes = [2, 128], strides = [1, 1]} : vector<2x512xf32> to vector<2x128xf32>
    %cst_108 = arith.constant 0.000000e+00 : f32
    %363 = vector.broadcast %cst_108 : f32 to vector<2x128xf32>
    %364 = arith.subf %363, %362 : vector<2x128xf32>
    %365 = math.exp %364 : vector<2x128xf32>
    %cst_109 = arith.constant 1.000000e+00 : f32
    %366 = vector.broadcast %cst_109 : f32 to vector<2x128xf32>
    %367 = arith.addf %366, %365 : vector<2x128xf32>
    %368 = tpu.reciprocal %367 {approx = true} : vector<2x128xf32> -> vector<2x128xf32>
    %369 = vector.extract_strided_slice %361 {offsets = [0, 128], sizes = [2, 128], strides = [1, 1]} : vector<2x512xf32> to vector<2x128xf32>
    %cst_110 = arith.constant 0.000000e+00 : f32
    %370 = vector.broadcast %cst_110 : f32 to vector<2x128xf32>
    %371 = arith.subf %370, %369 : vector<2x128xf32>
    %372 = math.exp %371 : vector<2x128xf32>
    %cst_111 = arith.constant 1.000000e+00 : f32
    %373 = vector.broadcast %cst_111 : f32 to vector<2x128xf32>
    %374 = arith.addf %373, %372 : vector<2x128xf32>
    %375 = tpu.reciprocal %374 {approx = true} : vector<2x128xf32> -> vector<2x128xf32>
    %376 = vector.extract_strided_slice %361 {offsets = [0, 256], sizes = [2, 128], strides = [1, 1]} : vector<2x512xf32> to vector<2x128xf32>
    %377 = math.tanh %376 : vector<2x128xf32>
    %378 = vector.extract_strided_slice %361 {offsets = [0, 384], sizes = [2, 128], strides = [1, 1]} : vector<2x512xf32> to vector<2x128xf32>
    %cst_112 = arith.constant 0.000000e+00 : f32
    %379 = vector.broadcast %cst_112 : f32 to vector<2x128xf32>
    %380 = arith.subf %379, %378 : vector<2x128xf32>
    %381 = math.exp %380 : vector<2x128xf32>
    %cst_113 = arith.constant 1.000000e+00 : f32
    %382 = vector.broadcast %cst_113 : f32 to vector<2x128xf32>
    %383 = arith.addf %382, %381 : vector<2x128xf32>
    %384 = tpu.reciprocal %383 {approx = true} : vector<2x128xf32> -> vector<2x128xf32>
    %385 = arith.mulf %375, %319 : vector<2x128xf32>
    %386 = arith.mulf %368, %377 : vector<2x128xf32>
    %387 = arith.addf %385, %386 : vector<2x128xf32>
    %388 = math.tanh %387 : vector<2x128xf32>
    %389 = arith.mulf %384, %388 : vector<2x128xf32>
    %390 = tpu.concatenate %389, %352 in 1 : vector<2x128xf32>, vector<2x128xf32> -> vector<2x256xf32>
    %cst_114 = arith.constant dense<0.000000e+00> : vector<2x512xf32>
    %391 = tpu.matmul %390, %12, %cst_114 {dimension_numbers = #tpu.dot_dimension_numbers<[1], [0], [0], [1], [0, 0, 1, 1], [], []>} : vector<2x256xf32>, vector<256x512xf32>, vector<2x512xf32> -> vector<2x512xf32>
    %392 = arith.addf %391, %15 : vector<2x512xf32>
    %393 = vector.extract_strided_slice %392 {offsets = [0, 0], sizes = [2, 128], strides = [1, 1]} : vector<2x512xf32> to vector<2x128xf32>
    %cst_115 = arith.constant 0.000000e+00 : f32
    %394 = vector.broadcast %cst_115 : f32 to vector<2x128xf32>
    %395 = arith.subf %394, %393 : vector<2x128xf32>
    %396 = math.exp %395 : vector<2x128xf32>
    %cst_116 = arith.constant 1.000000e+00 : f32
    %397 = vector.broadcast %cst_116 : f32 to vector<2x128xf32>
    %398 = arith.addf %397, %396 : vector<2x128xf32>
    %399 = tpu.reciprocal %398 {approx = true} : vector<2x128xf32> -> vector<2x128xf32>
    %400 = vector.extract_strided_slice %392 {offsets = [0, 128], sizes = [2, 128], strides = [1, 1]} : vector<2x512xf32> to vector<2x128xf32>
    %cst_117 = arith.constant 0.000000e+00 : f32
    %401 = vector.broadcast %cst_117 : f32 to vector<2x128xf32>
    %402 = arith.subf %401, %400 : vector<2x128xf32>
    %403 = math.exp %402 : vector<2x128xf32>
    %cst_118 = arith.constant 1.000000e+00 : f32
    %404 = vector.broadcast %cst_118 : f32 to vector<2x128xf32>
    %405 = arith.addf %404, %403 : vector<2x128xf32>
    %406 = tpu.reciprocal %405 {approx = true} : vector<2x128xf32> -> vector<2x128xf32>
    %407 = vector.extract_strided_slice %392 {offsets = [0, 256], sizes = [2, 128], strides = [1, 1]} : vector<2x512xf32> to vector<2x128xf32>
    %408 = math.tanh %407 : vector<2x128xf32>
    %409 = vector.extract_strided_slice %392 {offsets = [0, 384], sizes = [2, 128], strides = [1, 1]} : vector<2x512xf32> to vector<2x128xf32>
    %cst_119 = arith.constant 0.000000e+00 : f32
    %410 = vector.broadcast %cst_119 : f32 to vector<2x128xf32>
    %411 = arith.subf %410, %409 : vector<2x128xf32>
    %412 = math.exp %411 : vector<2x128xf32>
    %cst_120 = arith.constant 1.000000e+00 : f32
    %413 = vector.broadcast %cst_120 : f32 to vector<2x128xf32>
    %414 = arith.addf %413, %412 : vector<2x128xf32>
    %415 = tpu.reciprocal %414 {approx = true} : vector<2x128xf32> -> vector<2x128xf32>
    %416 = arith.mulf %406, %350 : vector<2x128xf32>
    %417 = arith.mulf %399, %408 : vector<2x128xf32>
    %418 = arith.addf %416, %417 : vector<2x128xf32>
    %419 = math.tanh %418 : vector<2x128xf32>
    %420 = arith.mulf %415, %419 : vector<2x128xf32>
    %421 = arith.index_cast %c5_i32 : i32 to index
    %c0_121 = arith.constant 0 : index
    %c0_122 = arith.constant 0 : index
    %422 = vector.load %arg12[%421, %c0_121, %c0_122] : memref<7x2x128xf32, #tpu.memory_space<vmem>>, vector<1x2x128xf32>
    %423 = vector.shape_cast %422 : vector<1x2x128xf32> to vector<2x128xf32>
    %424 = vector.shape_cast %420 : vector<2x128xf32> to vector<1x2x128xf32>
    tpu.vector_store %arg12[%421, %c0_121, %c0_122], %424 {strides = array<i32>} : memref<7x2x128xf32, #tpu.memory_space<vmem>>, vector<1x2x128xf32>,
    %c6_i32 = arith.constant 6 : i32
    %425 = arith.index_cast %c6_i32 : i32 to index
    %c0_123 = arith.constant 0 : index
    %c0_124 = arith.constant 0 : index
    %426 = vector.load %arg11[%425, %c0_123, %c0_124] : memref<7x2x512xf32, #tpu.memory_space<vmem>>, vector<1x2x512xf32>
    %427 = vector.shape_cast %426 : vector<1x2x512xf32> to vector<2x512xf32>
    %cst_125 = arith.constant dense<0.000000e+00> : vector<2x512xf32>
    %428 = tpu.matmul %389, %11, %cst_125 {dimension_numbers = #tpu.dot_dimension_numbers<[1], [0], [0], [1], [0, 0, 1, 1], [], []>} : vector<2x128xf32>, vector<128x512xf32>, vector<2x512xf32> -> vector<2x512xf32>
    %429 = arith.addf %427, %428 : vector<2x512xf32>
    %430 = vector.extract_strided_slice %429 {offsets = [0, 0], sizes = [2, 128], strides = [1, 1]} : vector<2x512xf32> to vector<2x128xf32>
    %cst_126 = arith.constant 0.000000e+00 : f32
    %431 = vector.broadcast %cst_126 : f32 to vector<2x128xf32>
    %432 = arith.subf %431, %430 : vector<2x128xf32>
    %433 = math.exp %432 : vector<2x128xf32>
    %cst_127 = arith.constant 1.000000e+00 : f32
    %434 = vector.broadcast %cst_127 : f32 to vector<2x128xf32>
    %435 = arith.addf %434, %433 : vector<2x128xf32>
    %436 = tpu.reciprocal %435 {approx = true} : vector<2x128xf32> -> vector<2x128xf32>
    %437 = vector.extract_strided_slice %429 {offsets = [0, 128], sizes = [2, 128], strides = [1, 1]} : vector<2x512xf32> to vector<2x128xf32>
    %cst_128 = arith.constant 0.000000e+00 : f32
    %438 = vector.broadcast %cst_128 : f32 to vector<2x128xf32>
    %439 = arith.subf %438, %437 : vector<2x128xf32>
    %440 = math.exp %439 : vector<2x128xf32>
    %cst_129 = arith.constant 1.000000e+00 : f32
    %441 = vector.broadcast %cst_129 : f32 to vector<2x128xf32>
    %442 = arith.addf %441, %440 : vector<2x128xf32>
    %443 = tpu.reciprocal %442 {approx = true} : vector<2x128xf32> -> vector<2x128xf32>
    %444 = vector.extract_strided_slice %429 {offsets = [0, 256], sizes = [2, 128], strides = [1, 1]} : vector<2x512xf32> to vector<2x128xf32>
    %445 = math.tanh %444 : vector<2x128xf32>
    %446 = vector.extract_strided_slice %429 {offsets = [0, 384], sizes = [2, 128], strides = [1, 1]} : vector<2x512xf32> to vector<2x128xf32>
    %cst_130 = arith.constant 0.000000e+00 : f32
    %447 = vector.broadcast %cst_130 : f32 to vector<2x128xf32>
    %448 = arith.subf %447, %446 : vector<2x128xf32>
    %449 = math.exp %448 : vector<2x128xf32>
    %cst_131 = arith.constant 1.000000e+00 : f32
    %450 = vector.broadcast %cst_131 : f32 to vector<2x128xf32>
    %451 = arith.addf %450, %449 : vector<2x128xf32>
    %452 = tpu.reciprocal %451 {approx = true} : vector<2x128xf32> -> vector<2x128xf32>
    %453 = arith.mulf %443, %387 : vector<2x128xf32>
    %454 = arith.mulf %436, %445 : vector<2x128xf32>
    %455 = arith.addf %453, %454 : vector<2x128xf32>
    %456 = math.tanh %455 : vector<2x128xf32>
    %457 = arith.mulf %452, %456 : vector<2x128xf32>
    %458 = tpu.concatenate %457, %420 in 1 : vector<2x128xf32>, vector<2x128xf32> -> vector<2x256xf32>
    %cst_132 = arith.constant dense<0.000000e+00> : vector<2x512xf32>
    %459 = tpu.matmul %458, %12, %cst_132 {dimension_numbers = #tpu.dot_dimension_numbers<[1], [0], [0], [1], [0, 0, 1, 1], [], []>} : vector<2x256xf32>, vector<256x512xf32>, vector<2x512xf32> -> vector<2x512xf32>
    %460 = arith.addf %459, %15 : vector<2x512xf32>
    %461 = vector.extract_strided_slice %460 {offsets = [0, 0], sizes = [2, 128], strides = [1, 1]} : vector<2x512xf32> to vector<2x128xf32>
    %cst_133 = arith.constant 0.000000e+00 : f32
    %462 = vector.broadcast %cst_133 : f32 to vector<2x128xf32>
    %463 = arith.subf %462, %461 : vector<2x128xf32>
    %464 = math.exp %463 : vector<2x128xf32>
    %cst_134 = arith.constant 1.000000e+00 : f32
    %465 = vector.broadcast %cst_134 : f32 to vector<2x128xf32>
    %466 = arith.addf %465, %464 : vector<2x128xf32>
    %467 = tpu.reciprocal %466 {approx = true} : vector<2x128xf32> -> vector<2x128xf32>
    %468 = vector.extract_strided_slice %460 {offsets = [0, 128], sizes = [2, 128], strides = [1, 1]} : vector<2x512xf32> to vector<2x128xf32>
    %cst_135 = arith.constant 0.000000e+00 : f32
    %469 = vector.broadcast %cst_135 : f32 to vector<2x128xf32>
    %470 = arith.subf %469, %468 : vector<2x128xf32>
    %471 = math.exp %470 : vector<2x128xf32>
    %cst_136 = arith.constant 1.000000e+00 : f32
    %472 = vector.broadcast %cst_136 : f32 to vector<2x128xf32>
    %473 = arith.addf %472, %471 : vector<2x128xf32>
    %474 = tpu.reciprocal %473 {approx = true} : vector<2x128xf32> -> vector<2x128xf32>
    %475 = vector.extract_strided_slice %460 {offsets = [0, 256], sizes = [2, 128], strides = [1, 1]} : vector<2x512xf32> to vector<2x128xf32>
    %476 = math.tanh %475 : vector<2x128xf32>
    %477 = vector.extract_strided_slice %460 {offsets = [0, 384], sizes = [2, 128], strides = [1, 1]} : vector<2x512xf32> to vector<2x128xf32>
    %cst_137 = arith.constant 0.000000e+00 : f32
    %478 = vector.broadcast %cst_137 : f32 to vector<2x128xf32>
    %479 = arith.subf %478, %477 : vector<2x128xf32>
    %480 = math.exp %479 : vector<2x128xf32>
    %cst_138 = arith.constant 1.000000e+00 : f32
    %481 = vector.broadcast %cst_138 : f32 to vector<2x128xf32>
    %482 = arith.addf %481, %480 : vector<2x128xf32>
    %483 = tpu.reciprocal %482 {approx = true} : vector<2x128xf32> -> vector<2x128xf32>
    %484 = arith.mulf %474, %418 : vector<2x128xf32>
    %485 = arith.mulf %467, %476 : vector<2x128xf32>
    %486 = arith.addf %484, %485 : vector<2x128xf32>
    %487 = math.tanh %486 : vector<2x128xf32>
    %488 = arith.mulf %483, %487 : vector<2x128xf32>
    %489 = arith.index_cast %c6_i32 : i32 to index
    %c0_139 = arith.constant 0 : index
    %c0_140 = arith.constant 0 : index
    %490 = vector.load %arg12[%489, %c0_139, %c0_140] : memref<7x2x128xf32, #tpu.memory_space<vmem>>, vector<1x2x128xf32>
    %491 = vector.shape_cast %490 : vector<1x2x128xf32> to vector<2x128xf32>
    %492 = vector.shape_cast %488 : vector<2x128xf32> to vector<1x2x128xf32>
    tpu.vector_store %arg12[%489, %c0_139, %c0_140], %492 {strides = array<i32>} : memref<7x2x128xf32, #tpu.memory_space<vmem>>, vector<1x2x128xf32>,
    %c7_i32 = arith.constant 7 : i32
    %c0_141 = arith.constant 0 : index
    %c0_142 = arith.constant 0 : index
    %493 = vector.load %arg6[%c0_141, %c0_142] : memref<1x128xf32, #tpu.memory_space<vmem>>, vector<1x128xf32>
    %494 = vector.shape_cast %493 : vector<1x128xf32> to vector<1x1x128xf32>
    %c0_143 = arith.constant 0 : index
    %c0_144 = arith.constant 0 : index
    %c0_145 = arith.constant 0 : index
    %495 = vector.load %arg12[%c0_143, %c0_144, %c0_145] : memref<7x2x128xf32, #tpu.memory_space<vmem>>, vector<7x2x128xf32>
    %496 = vector.broadcast %494 : vector<1x1x128xf32> to vector<7x2x128xf32>
    %497 = arith.mulf %495, %496 : vector<7x2x128xf32>
    %cst_146 = arith.constant dense<0.000000e+00> : vector<7x2xf32>
    %498 = vector.multi_reduction <add>, %497, %cst_146 [2] : vector<7x2x128xf32> to vector<7x2xf32>
    %499 = vector.shape_cast %498 : vector<7x2xf32> to vector<7x2x1xf32>
    %c0_147 = arith.constant 0 : index
    %c0_148 = arith.constant 0 : index
    %500 = vector.load %arg7[%c0_147, %c0_148] : memref<1x1xf32, #tpu.memory_space<vmem>>, vector<1x1xf32>
    %501 = vector.shape_cast %500 : vector<1x1xf32> to vector<1x1x1xf32>
    %502 = vector.broadcast %501 : vector<1x1x1xf32> to vector<7x2x1xf32>
    %503 = arith.addf %499, %502 : vector<7x2x1xf32>
    %c0_149 = arith.constant 0 : index
    %c0_150 = arith.constant 0 : index
    %c0_151 = arith.constant 0 : index
    %504 = vector.load %arg8[%c0_149, %c0_150, %c0_151] : memref<7x2x1xf32, #tpu.memory_space<vmem>>, vector<7x2x1xf32>
    tpu.vector_store %arg8[%c0_149, %c0_150, %c0_151], %503 {strides = array<i32>} : memref<7x2x1xf32, #tpu.memory_space<vmem>>, vector<7x2x1xf32>,
    %505 = vector.extract_strided_slice %457 {offsets = [0, 0], sizes = [2, 20], strides = [1, 1]} : vector<2x128xf32> to vector<2x20xf32>
    %c0_152 = arith.constant 0 : index
    %c0_153 = arith.constant 0 : index
    %c0_154 = arith.constant 0 : index
    %506 = vector.load %arg9[%c0_152, %c0_153, %c0_154] : memref<2x2x20xf32, #tpu.memory_space<vmem>>, vector<1x2x20xf32>
    %507 = vector.shape_cast %506 : vector<1x2x20xf32> to vector<2x20xf32>
    %508 = vector.shape_cast %505 : vector<2x20xf32> to vector<1x2x20xf32>
    tpu.vector_store %arg9[%c0_152, %c0_153, %c0_154], %508 {strides = array<i32>} : memref<2x2x20xf32, #tpu.memory_space<vmem>>, vector<1x2x20xf32>,
    %509 = vector.extract_strided_slice %488 {offsets = [0, 0], sizes = [2, 20], strides = [1, 1]} : vector<2x128xf32> to vector<2x20xf32>
    %c1 = arith.constant 1 : index
    %c0_155 = arith.constant 0 : index
    %c0_156 = arith.constant 0 : index
    %510 = vector.load %arg9[%c1, %c0_155, %c0_156] : memref<2x2x20xf32, #tpu.memory_space<vmem>>, vector<1x2x20xf32>
    %511 = vector.shape_cast %510 : vector<1x2x20xf32> to vector<2x20xf32>
    %512 = vector.shape_cast %509 : vector<2x20xf32> to vector<1x2x20xf32>
    tpu.vector_store %arg9[%c1, %c0_155, %c0_156], %512 {strides = array<i32>} : memref<2x2x20xf32, #tpu.memory_space<vmem>>, vector<1x2x20xf32>,
    %513 = vector.extract_strided_slice %455 {offsets = [0, 0], sizes = [2, 20], strides = [1, 1]} : vector<2x128xf32> to vector<2x20xf32>
    %c0_157 = arith.constant 0 : index
    %c0_158 = arith.constant 0 : index
    %c0_159 = arith.constant 0 : index
    %514 = vector.load %arg10[%c0_157, %c0_158, %c0_159] : memref<2x2x20xf32, #tpu.memory_space<vmem>>, vector<1x2x20xf32>
    %515 = vector.shape_cast %514 : vector<1x2x20xf32> to vector<2x20xf32>
    %516 = vector.shape_cast %513 : vector<2x20xf32> to vector<1x2x20xf32>
    tpu.vector_store %arg10[%c0_157, %c0_158, %c0_159], %516 {strides = array<i32>} : memref<2x2x20xf32, #tpu.memory_space<vmem>>, vector<1x2x20xf32>,
    %517 = vector.extract_strided_slice %486 {offsets = [0, 0], sizes = [2, 20], strides = [1, 1]} : vector<2x128xf32> to vector<2x20xf32>
    %c1_160 = arith.constant 1 : index
    %c0_161 = arith.constant 0 : index
    %c0_162 = arith.constant 0 : index
    %518 = vector.load %arg10[%c1_160, %c0_161, %c0_162] : memref<2x2x20xf32, #tpu.memory_space<vmem>>, vector<1x2x20xf32>
    %519 = vector.shape_cast %518 : vector<1x2x20xf32> to vector<2x20xf32>
    %520 = vector.shape_cast %517 : vector<2x20xf32> to vector<1x2x20xf32>
    tpu.vector_store %arg10[%c1_160, %c0_161, %c0_162], %520 {strides = array<i32>} : memref<2x2x20xf32, #tpu.memory_space<vmem>>, vector<1x2x20xf32>,
    return
  }
}

</mosaic_0001>

<bundles_post_ra>
// kernel: tpu_custom_call.1
= control target key start
LH: loop header
LB: loop body
LE: loop exit
PB: predicated region body
PF: predicated region fallthrough
CT: control target
= control target key end

     0   :  { %s6220_s0 = inlined_call_operand.vmem [shape: f32[7,2,1], index: 0, kind: input, shape index: {}]   ;;  %s6221_s1 = inlined_call_operand.vmem [shape: f32[1,512], index: 1, kind: input, shape index: {}]   ;;  %s6222_s2 = inlined_call_operand.hbm [shape: f32[128,512], index: 2, kind: input, shape index: {}]   ;;  %s6223_s3 = inlined_call_operand.vmem [shape: f32[1,512], index: 3, kind: input, shape index: {}]   ;;  %s6224_s4 = inlined_call_operand.hbm [shape: f32[256,512], index: 4, kind: input, shape index: {}]   ;;  %s6225_s5 = inlined_call_operand.vmem [shape: f32[1,512], index: 5, kind: input, shape index: {}]   ;;  %s6226_s6 = inlined_call_operand.vmem [shape: f32[1,128], index: 6, kind: input, shape index: {}]   ;;  %s6227_s7 = inlined_call_operand.<no memory space> [shape: f32[1,1], index: 7, kind: input, shape index: {}]   ;;  %s6228_s8 = inlined_call_operand.vmem [shape: f32[7,2,1], index: 8, kind: output, shape index: {0}]   ;;  %s6229_s9 = inlined_call_operand.hbm [shape: f32[2,2,20], index: 9, kind: output, shape index: {1}]   ;;  %s6230_s10 = inlined_call_operand.hbm [shape: f32[2,2,20], index: 10, kind: output, shape index: {2}]  }
   0x1   :  { %v16_v0 = vstv %s6227_s7 }
   0x2   :  { %17 = vst [vmem:[#allocation4] sm:$0x1] %v16_v0 }
   0x3   :  { %18 = vsyncpa [#allocation6], 0 }
   0x4   :  { %19 = vsyncpa [#allocation9], 0 }
   0x5   :  { %20 = vsyncpa [#allocation7], 0 }
   0x6   :  { %21 = vsyncpa [#allocation12], 0  ;;  %s4889_s15 = smov [#allocation5]   ;;  %s4793_s19 = scalar_lea.hbm %s6222_s2, 8192 }
   0x7   :  { %s31_s16 = sshll.u32 %s4889_s15, 4  ;;  %p4794_p0 = scmp.ne.s32.totalorder %s6222_s2, %s4793_s19  ;;  %s32_s16 = int_to_ptr.vmem [resolvable:$true] %s31_s16 }
   0x8   :  { %p4797_p1 = scmp.lt.u32.totalorder %s4793_s19, %s6222_s2 }
   0xa   :  { %p4799_p2 = pnand %p4797_p1, %p4794_p0 }
   0xc   :  { %4802 = shalt.err (!%p4799_p2)
}
   0xd   :  { %s4803_s7 = scalar_lea.vmem %s32_s16, 8192  ;;  %p4808_p4 = scmp.lt.s32.totalorder %s32_s16, %s32_s16 }
   0xe   :  { %p4804_p3 = scmp.ne.s32.totalorder %s32_s16, %s4803_s7  ;;  %p4809_p5 = scmp.lt.s32.totalorder %s4803_s7, %s4803_s7 }
  0x10   :  { %p4810_p6 = por %p4809_p5, %p4808_p4 }
  0x12   :  { %p4811_p7 = pnand %p4810_p6, %p4804_p3 }
  0x14   :  { %4814 = shalt.err (!%p4811_p7)
}
  0x15   :  { %s4890_s24 = smov 512   ;;  %s4891_s25 = smov 32  }
  0x16   :  { %37 = dma.hbm_to_vmem [thread:$0]  %s6222_s2, 8192, %s32_s16, [#allocation6], %s4890_s24, %s4890_s24, %s4891_s25  }
  0x17   :  { %s4892_s28 = smov [#allocation8]   ;;  %s4815_s12 = scalar_lea.hbm %s6224_s4, 16384 }
  0x18   :  { %s45_s29 = sshll.u32 %s4892_s28, 4  ;;  %p4816_p8 = scmp.ne.s32.totalorder %s6224_s4, %s4815_s12  ;;  %s46_s29 = int_to_ptr.vmem [resolvable:$true] %s45_s29 }
  0x19   :  { %p4819_p9 = scmp.lt.u32.totalorder %s4815_s12, %s6224_s4 }
  0x1b   :  { %p4821_p10 = pnand %p4819_p9, %p4816_p8 }
  0x1d   :  { %4824 = shalt.err (!%p4821_p10)
}
  0x1e   :  { %s4825_s18 = scalar_lea.vmem %s46_s29, 16384  ;;  %p4830_p12 = scmp.lt.s32.totalorder %s46_s29, %s46_s29 }
  0x1f   :  { %p4826_p11 = scmp.ne.s32.totalorder %s46_s29, %s4825_s18  ;;  %p4831_p13 = scmp.lt.s32.totalorder %s4825_s18, %s4825_s18 }
  0x21   :  { %p4832_p0 = por %p4831_p13, %p4830_p12 }
  0x23   :  { %p4833_p1 = pnand %p4832_p0, %p4826_p11 }
  0x25   :  { %4836 = shalt.err (!%p4833_p1)
}
  0x26   :  { %51 = dma.hbm_to_vmem [thread:$0]  %s6224_s4, 16384, %s46_s29, [#allocation9], %s4890_s24, %s4890_s24, %s4891_s25  }
  0x27   :  { %4881 = dma.done.wait [#allocation6], 8192  }
  0x28   :  { %4882 = vsyncadd [#allocation6], 4294959104 }
  0x29   :  { %4883 = dma.done.wait [#allocation9], 16384  }
  0x2a   :  { %4884 = vsyncadd [#allocation9], 4294950912  ;;  %v6231_v1 = vmov 0.0   ;;  %v4894_v2 = vmov 0   ;;  %v368_v3 = vld [vmem:[#allocation5 + $0x8] sm:$0xff]  ;;  %v370_v5 = vld [vmem:[#allocation5 + $0x18] sm:$0xff] }
  0x2b   :  { %646 = vmatprep.mubr.f32.mxu0 %v6231_v1  ;;  %717 = vmatprep.mubr.f32.mxu1 %v6231_v1  ;;  %v372_v4 = vld [vmem:[#allocation5 + $0x28] sm:$0xff]  ;;  %v374_v7 = vld [vmem:[#allocation5 + $0x38] sm:$0xff]  ;;  %v367_v8 = vld [vmem:[#allocation5] sm:$0xff]  ;;  %vm3120_vm0 = vcmask 1041408   ;;  %vm3156_vm1 = vcmask 1024   ;;  %vm3164_vm2 = vcmask 156672  }
  0x2c   :  { %4565 = vset.pattern.permute.xlu0 %v4894_v2  ;;  %4566 = vset.pattern.permute.xlu1 %v4894_v2  ;;  %v4985_v6 = vpack.c.bf16 %v372_v4, %v368_v3  ;;  %v371_v9 = vld [vmem:[#allocation5 + $0x20] sm:$0xff]  ;;  %v4987_v10 = vpack.c.bf16 %v374_v7, %v370_v5  ;;  %v369_v12 = vld [vmem:[#allocation5 + $0x10] sm:$0xff]  ;;  %v376_v14 = vld [vmem:[#allocation5 + $0x48] sm:$0xff]  ;;  %s4896_s27 = smov [#allocation10]   ;;  %s4897_s29 = smov [#allocation11]  }
  0x2d   :  { %v4989_v11 = vpack.c.bf16 %v371_v9, %v367_v8  ;;  %v373_v13 = vld [vmem:[#allocation5 + $0x30] sm:$0xff]  ;;  %v380_v16 = vld [vmem:[#allocation5 + $0x68] sm:$0xff]  ;;  %v378_v17 = vld [vmem:[#allocation5 + $0x58] sm:$0xff]  ;;  %s3178_s28 = sshll.u32 %s4896_s27, 4  ;;  %s3179_s28 = int_to_ptr.vmem [resolvable:$true] %s3178_s28 }
  0x2e   :  { %6397 = vst [vmem:[#allocation17_spill] sm:$0xff] %v4985_v6  ;;  %6398 = vst [vmem:[#allocation18_spill] sm:$0xff] %v4987_v10  ;;  %3212 = vmatprep.subr.bf16.mxu0 %v4985_v6  ;;  %v4992_v15 = vpack.c.bf16 %v373_v13, %v369_v12  ;;  %v382_v18 = vld [vmem:[#allocation5 + $0x78] sm:$0xff]  ;;  %3244 = vmatprep.subr.bf16.mxu1 %v4987_v10  ;;  %v4996_v19 = vpack.c.bf16 %v380_v16, %v376_v14  ;;  %v375_v21 = vld [vmem:[#allocation5 + $0x40] sm:$0xff]  ;;  %p4842_p3 = scmp.lt.s32.totalorder %s3179_s28, %s3179_s28 }
  0x2f   :  { %3214 = vmatpush1.bf16.msra.mxu0 %v4989_v11  ;;  %v4998_v20 = vpack.c.bf16 %v382_v18, %v378_v17  ;;  %v379_v22 = vld [vmem:[#allocation5 + $0x60] sm:$0xff]  ;;  %v377_v23 = vld [vmem:[#allocation5 + $0x50] sm:$0xff]  ;;  %v384_v26 = vld [vmem:[#allocation5 + $0x88] sm:$0xff] }
  0x30   :  { %3246 = vmatpush1.bf16.msra.mxu1 %v4992_v15  ;;  %v5001_v24 = vpack.c.bf16 %v379_v22, %v375_v21  ;;  %v381_v25 = vld [vmem:[#allocation5 + $0x70] sm:$0xff]  ;;  %v388_v27 = vld [vmem:[#allocation5 + $0xa8] sm:$0xff]  ;;  %3216 = vmatprep.subr.bf16.mxu0 %v4996_v19  ;;  %v386_v30 = vld [vmem:[#allocation5 + $0x98] sm:$0xff] }
  0x31   :  { %3248 = vmatprep.subr.bf16.mxu1 %v4998_v20  ;;  %v5005_v28 = vpack.c.bf16 %v381_v25, %v377_v23  ;;  %v5007_v29 = vpack.c.bf16 %v388_v27, %v384_v26  ;;  %v390_v31 = vld [vmem:[#allocation5 + $0xb8] sm:$0xff]  ;;  %v383_v32 = vld [vmem:[#allocation5 + $0x80] sm:$0xff]  ;;  %v385_v35 = vld [vmem:[#allocation5 + $0x90] sm:$0xff] }
  0x32   :  { %v5009_v33 = vpack.c.bf16 %v390_v31, %v386_v30  ;;  %v387_v34 = vld [vmem:[#allocation5 + $0xa0] sm:$0xff]  ;;  %v389_v36 = vld [vmem:[#allocation5 + $0xb0] sm:$0xff]  ;;  %v392_v38 = vld [vmem:[#allocation5 + $0xc8] sm:$0xff] }
  0x33   :  { %3218 = vmatpush1.bf16.msra.mxu0 %v5001_v24  ;;  %v5012_v37 = vpack.c.bf16 %v387_v34, %v383_v32  ;;  %v396_v39 = vld [vmem:[#allocation5 + $0xe8] sm:$0xff]  ;;  %v394_v40 = vld [vmem:[#allocation5 + $0xd8] sm:$0xff]  ;;  %v5016_v41 = vpack.c.bf16 %v389_v36, %v385_v35  ;;  %v391_v44 = vld [vmem:[#allocation5 + $0xc0] sm:$0xff] }
  0x34   :  { %3250 = vmatpush1.bf16.msra.mxu1 %v5005_v28  ;;  %3220 = vmatprep.subr.bf16.mxu0 %v5007_v29  ;;  %v5018_v42 = vpack.c.bf16 %v396_v39, %v392_v38  ;;  %v398_v43 = vld [vmem:[#allocation5 + $0xf8] sm:$0xff]  ;;  %v395_v45 = vld [vmem:[#allocation5 + $0xe0] sm:$0xff]  ;;  %v393_v47 = vld [vmem:[#allocation5 + $0xd0] sm:$0xff] }
  0x35   :  { %3252 = vmatprep.subr.bf16.mxu1 %v5009_v33  ;;  %v5021_v46 = vpack.c.bf16 %v398_v43, %v394_v40  ;;  %v397_v48 = vld [vmem:[#allocation5 + $0xf0] sm:$0xff]  ;;  %v400_v49 = vld [vmem:[#allocation5 + $0x108] sm:$0xff]  ;;  %v402_v51 = vld [vmem:[#allocation5 + $0x118] sm:$0xff]  ;;  %v5024_v53 = vpack.c.bf16 %v395_v45, %v391_v44 }
  0x36   :  { %v404_v50 = vld [vmem:[#allocation5 + $0x128] sm:$0xff]  ;;  %v406_v52 = vld [vmem:[#allocation5 + $0x138] sm:$0xff]  ;;  %v5028_v54 = vpack.c.bf16 %v397_v48, %v393_v47  ;;  %v399_v56 = vld [vmem:[#allocation5 + $0x100] sm:$0xff] }
  0x37   :  { %3222 = vmatpush1.bf16.msra.mxu0 %v5012_v37  ;;  %v5030_v55 = vpack.c.bf16 %v404_v50, %v400_v49  ;;  %v403_v57 = vld [vmem:[#allocation5 + $0x120] sm:$0xff]  ;;  %v401_v58 = vld [vmem:[#allocation5 + $0x110] sm:$0xff]  ;;  %v5033_v59 = vpack.c.bf16 %v406_v52, %v402_v51  ;;  %v408_v61 = vld [vmem:[#allocation5 + $0x148] sm:$0xff] }
  0x38   :  { %3254 = vmatpush1.bf16.msra.mxu1 %v5016_v41  ;;  %3224 = vmatprep.subr.bf16.mxu0 %v5018_v42  ;;  %v405_v60 = vld [vmem:[#allocation5 + $0x130] sm:$0xff]  ;;  %v412_v62 = vld [vmem:[#allocation5 + $0x168] sm:$0xff]  ;;  %v410_v63 = vld [vmem:[#allocation5 + $0x158] sm:$0xff]  ;;  %v5036_v2 = vpack.c.bf16 %v403_v57, %v399_v56 }
  0x39   :  { %3256 = vmatprep.subr.bf16.mxu1 %v5021_v46  ;;  %v414_v0 = vld [vmem:[#allocation5 + $0x178] sm:$0xff]  ;;  %v5040_v3 = vpack.c.bf16 %v405_v60, %v401_v58  ;;  %v5042_v4 = vpack.c.bf16 %v412_v62, %v408_v61  ;;  %v407_v5 = vld [vmem:[#allocation5 + $0x140] sm:$0xff]  ;;  %v409_v8 = vld [vmem:[#allocation5 + $0x150] sm:$0xff] }
  0x3a   :  { %v411_v7 = vld [vmem:[#allocation5 + $0x160] sm:$0xff]  ;;  %v5045_v9 = vpack.c.bf16 %v414_v0, %v410_v63  ;;  %v413_v12 = vld [vmem:[#allocation5 + $0x170] sm:$0xff]  ;;  %v416_v13 = vld [vmem:[#allocation5 + $0x188] sm:$0xff] }
  0x3b   :  { %3226 = vmatpush1.bf16.msra.mxu0 %v5024_v53  ;;  %v420_v14 = vld [vmem:[#allocation5 + $0x1a8] sm:$0xff]  ;;  %v418_v16 = vld [vmem:[#allocation5 + $0x198] sm:$0xff]  ;;  %v5048_v18 = vpack.c.bf16 %v411_v7, %v407_v5  ;;  %v415_v21 = vld [vmem:[#allocation5 + $0x180] sm:$0xff]  ;;  %v5052_v22 = vpack.c.bf16 %v413_v12, %v409_v8 }
  0x3c   :  { %3258 = vmatpush1.bf16.msra.mxu1 %v5028_v54  ;;  %3228 = vmatprep.subr.bf16.mxu0 %v5030_v55  ;;  %v422_v17 = vld [vmem:[#allocation5 + $0x1b8] sm:$0xff]  ;;  %v5054_v23 = vpack.c.bf16 %v420_v14, %v416_v13  ;;  %v419_v25 = vld [vmem:[#allocation5 + $0x1a0] sm:$0xff]  ;;  %v417_v26 = vld [vmem:[#allocation5 + $0x190] sm:$0xff] }
  0x3d   :  { %3260 = vmatprep.subr.bf16.mxu1 %v5033_v59  ;;  %v64_v27 = vld [vmem:[%s6220_s0] sm:$0x3]  ;;  %v5060_v30 = vpack.c.bf16 %v422_v17, %v418_v16  ;;  %v424_v32 = vld [vmem:[#allocation5 + $0x1c8] sm:$0xff]  ;;  %v426_v35 = vld [vmem:[#allocation5 + $0x1d8] sm:$0xff]  ;;  %v5066_v39 = vpack.c.bf16 %v419_v25, %v415_v21 }
  0x3e   :  { %v421_v31 = vld [vmem:[#allocation5 + $0x1b0] sm:$0xff]  ;;  %v428_v34 = vld [vmem:[#allocation5 + $0x1e8] sm:$0xff]  ;;  %74 = vperm.xlu0 %4565, %v64_v27   ;;  %v430_v36 = vld [vmem:[#allocation5 + $0x1f8] sm:$0xff] }
  0x3f   :  { %3230 = vmatpush1.bf16.msra.mxu0 %v5036_v2  ;;  %v65_v38 = vld [vmem:[%s6220_s0 + $0x2] sm:$0x3]  ;;  %v5070_v40 = vpack.c.bf16 %v421_v31, %v417_v26  ;;  %v5072_v43 = vpack.c.bf16 %v428_v34, %v424_v32  ;;  %v423_v44 = vld [vmem:[#allocation5 + $0x1c0] sm:$0xff]  ;;  %v5075_v47 = vpack.c.bf16 %v430_v36, %v426_v35  ;;  %v68_v50 = vld [vmem:[%s6220_s0 + $0x8] sm:$0x3] }
  0x40   :  { %3262 = vmatpush1.bf16.msra.mxu1 %v5040_v3  ;;  %3232 = vmatprep.subr.bf16.mxu0 %v5042_v4  ;;  %v427_v45 = vld [vmem:[#allocation5 + $0x1e0] sm:$0xff]  ;;  %v425_v48 = vld [vmem:[#allocation5 + $0x1d0] sm:$0xff]  ;;  %v70_v56 = vld [vmem:[%s6220_s0 + $0xc] sm:$0x3] }
  0x41   :  { %3264 = vmatprep.subr.bf16.mxu1 %v5045_v9  ;;  %v429_v49 = vld [vmem:[#allocation5 + $0x1f0] sm:$0xff]  ;;  %v5081_v51 = vpack.c.bf16 %v427_v45, %v423_v44  ;;  %v432_v57 = vld [vmem:[#allocation8 + $0x8] sm:$0xff]  ;;  %v434_v60 = vld [vmem:[#allocation8 + $0x18] sm:$0xff] }
  0x42   :  { %79 = vperm.xlu0 %4565, %v65_v38   ;;  %v5085_v52 = vpack.c.bf16 %v429_v49, %v425_v48  ;;  %v436_v58 = vld [vmem:[#allocation8 + $0x28] sm:$0xff]  ;;  %v438_v62 = vld [vmem:[#allocation8 + $0x38] sm:$0xff]  ;;  %v431_v63 = vld [vmem:[#allocation8] sm:$0xff] }
  0x43   :  { %3234 = vmatpush1.bf16.msra.mxu0 %v5048_v18  ;;  %v5092_v61 = vpack.c.bf16 %v436_v58, %v432_v57  ;;  %v435_v0 = vld [vmem:[#allocation8 + $0x20] sm:$0xff]  ;;  %v5095_v5 = vpack.c.bf16 %v438_v62, %v434_v60  ;;  %v433_v8 = vld [vmem:[#allocation8 + $0x10] sm:$0xff]  ;;  %v440_v14 = vld [vmem:[#allocation8 + $0x48] sm:$0xff] }
  0x44   :  { %3266 = vmatpush1.bf16.msra.mxu1 %v5052_v22  ;;  %3236 = vmatprep.subr.bf16.mxu0 %v5054_v23  ;;  %v5097_v7 = vpack.c.bf16 %v435_v0, %v431_v63  ;;  %v437_v12 = vld [vmem:[#allocation8 + $0x30] sm:$0xff]  ;;  %v444_v16 = vld [vmem:[#allocation8 + $0x68] sm:$0xff]  ;;  %v442_v17 = vld [vmem:[#allocation8 + $0x58] sm:$0xff] }
  0x45   :  { %3268 = vmatprep.subr.bf16.mxu1 %v5060_v30  ;;  %v5100_v13 = vpack.c.bf16 %v437_v12, %v433_v8  ;;  %v5106_v21 = vpack.c.bf16 %v444_v16, %v440_v14  ;;  %v446_v25 = vld [vmem:[#allocation8 + $0x78] sm:$0xff]  ;;  %v439_v26 = vld [vmem:[#allocation8 + $0x40] sm:$0xff]  ;;  %v441_v34 = vld [vmem:[#allocation8 + $0x50] sm:$0xff] }
  0x46   :  { %94 = vperm.xlu0 %4565, %v68_v50   ;;  %v443_v27 = vld [vmem:[#allocation8 + $0x60] sm:$0xff]  ;;  %v5109_v31 = vpack.c.bf16 %v446_v25, %v442_v17  ;;  %v445_v35 = vld [vmem:[#allocation8 + $0x70] sm:$0xff]  ;;  %v448_v38 = vld [vmem:[#allocation8 + $0x88] sm:$0xff] }
  0x47   :  { %3238 = vmatpush1.bf16.msra.mxu0 %v5066_v39  ;;  %6399 = vst [vmem:[#allocation19_spill] sm:$0xff] %v5106_v21  ;;  %v5111_v32 = vpack.c.bf16 %v443_v27, %v439_v26  ;;  %v5115_v36 = vpack.c.bf16 %v445_v35, %v441_v34  ;;  %v452_v44 = vld [vmem:[#allocation8 + $0xa8] sm:$0xff]  ;;  %v450_v45 = vld [vmem:[#allocation8 + $0x98] sm:$0xff]  ;;  %v451_v57 = vld [vmem:[#allocation8 + $0xa0] sm:$0xff] }
  0x48   :  { %3270 = vmatpush1.bf16.msra.mxu1 %v5070_v40  ;;  %3240 = vmatprep.subr.bf16.mxu0 %v5072_v43  ;;  %6400 = vst [vmem:[#allocation20_spill] sm:$0xff] %v5109_v31  ;;  %v5121_v48 = vpack.c.bf16 %v452_v44, %v448_v38  ;;  %v454_v49 = vld [vmem:[#allocation8 + $0xb8] sm:$0xff]  ;;  %v449_v58 = vld [vmem:[#allocation8 + $0x90] sm:$0xff]  ;;  %v456_v0 = vld [vmem:[#allocation8 + $0xc8] sm:$0xff] }
  0x49   :  { %3272 = vmatprep.subr.bf16.mxu1 %v5075_v47  ;;  %6401 = vst [vmem:[#allocation21_spill] sm:$0xff] %v5111_v32  ;;  %6402 = vst [vmem:[#allocation22_spill] sm:$0xff] %v5115_v36  ;;  %v5123_v50 = vpack.c.bf16 %v454_v49, %v450_v45  ;;  %v453_v62 = vld [vmem:[#allocation8 + $0xb0] sm:$0xff]  ;;  %v460_v8 = vld [vmem:[#allocation8 + $0xe8] sm:$0xff] }
  0x4a   :  { %104 = vperm.xlu0 %4565, %v70_v56   ;;  %6403 = vst [vmem:[#allocation23_spill] sm:$0xff] %v5121_v48  ;;  %v447_v56 = vld [vmem:[#allocation8 + $0x80] sm:$0xff]  ;;  %v5129_v63 = vpack.c.bf16 %v453_v62, %v449_v58  ;;  %v458_v12 = vld [vmem:[#allocation8 + $0xd8] sm:$0xff]  ;;  %v5133_v14 = vpack.c.bf16 %v460_v8, %v456_v0  ;;  %v457_v34 = vld [vmem:[#allocation8 + $0xd0] sm:$0xff] }
  0x4b   :  { %3242 = vmatpush1.bf16.msra.mxu0 %v5081_v51  ;;  %6404 = vst [vmem:[#allocation24_spill] sm:$0xff] %v5123_v50  ;;  %v5126_v60 = vpack.c.bf16 %v451_v57, %v447_v56  ;;  %v462_v16 = vld [vmem:[#allocation8 + $0xf8] sm:$0xff]  ;;  %v455_v17 = vld [vmem:[#allocation8 + $0xc0] sm:$0xff]  ;;  %v461_v35 = vld [vmem:[#allocation8 + $0xf0] sm:$0xff] }
  0x4c   :  { %3274 = vmatpush1.bf16.msra.mxu1 %v5085_v52  ;;  %3276 = vmatprep.subr.bf16.mxu0 %v5092_v61  ;;  %6406 = vst [vmem:[#allocation26_spill] sm:$0xff] %v5129_v63  ;;  %6407 = vst [vmem:[#allocation27_spill] sm:$0xff] %v5133_v14  ;;  %v459_v25 = vld [vmem:[#allocation8 + $0xe0] sm:$0xff]  ;;  %v5135_v26 = vpack.c.bf16 %v462_v16, %v458_v12  ;;  %v5140_v38 = vpack.c.bf16 %v461_v35, %v457_v34  ;;  %v464_v44 = vld [vmem:[#allocation8 + $0x108] sm:$0xff] }
  0x4d   :  { %3340 = vmatprep.subr.bf16.mxu1 %v5095_v5  ;;  %6405 = vst [vmem:[#allocation25_spill] sm:$0xff] %v5126_v60  ;;  %v5137_v27 = vpack.c.bf16 %v459_v25, %v455_v17  ;;  %v468_v45 = vld [vmem:[#allocation8 + $0x128] sm:$0xff]  ;;  %v466_v49 = vld [vmem:[#allocation8 + $0x118] sm:$0xff]  ;;  %v463_v58 = vld [vmem:[#allocation8 + $0x100] sm:$0xff] }
  0x4e   :  { %647 = vmatmul.mubr.f32.vlgmr.msra.gmra.mrb[0].mxu0 %v6231_v1  ;;  %6408 = vst [vmem:[#allocation28_spill] sm:$0xff] %v5135_v26  ;;  %6410 = vst [vmem:[#allocation30_spill] sm:$0xff] %v5140_v38  ;;  %v5145_v56 = vpack.c.bf16 %v468_v45, %v464_v44  ;;  %v470_v57 = vld [vmem:[#allocation8 + $0x138] sm:$0xff]  ;;  %v467_v62 = vld [vmem:[#allocation8 + $0x120] sm:$0xff] }
  0x4f   :  { %718 = vmatmul.mubr.f32.vlgmr.msra.gmra.mrb[0].mxu1 %v6231_v1  ;;  %3278 = vmatpush1.bf16.msra.mxu0 %v5097_v7  ;;  %6409 = vst [vmem:[#allocation29_spill] sm:$0xff] %v5137_v27  ;;  %v5147_v0 = vpack.c.bf16 %v470_v57, %v466_v49  ;;  %v5149_v8 = vpack.c.bf16 %v467_v62, %v463_v58  ;;  %v465_v12 = vld [vmem:[#allocation8 + $0x110] sm:$0xff]  ;;  %v472_v25 = vld [vmem:[#allocation8 + $0x148] sm:$0xff]  ;;  %v474_v35 = vld [vmem:[#allocation8 + $0x158] sm:$0xff] }
  0x50   :  { %3342 = vmatpush1.bf16.msra.mxu1 %v5100_v13  ;;  %839 = vmatprep.mubr.f32.mxu0 %v6231_v1  ;;  %6411 = vst [vmem:[#allocation31_spill] sm:$0xff] %v5145_v56  ;;  %v469_v16 = vld [vmem:[#allocation8 + $0x130] sm:$0xff]  ;;  %v476_v34 = vld [vmem:[#allocation8 + $0x168] sm:$0xff]  ;;  %v478_v45 = vld [vmem:[#allocation8 + $0x178] sm:$0xff] }
  0x51   :  { %3280 = vmatprep.subr.bf16.mxu0 %v5106_v21  ;;  %910 = vmatprep.mubr.f32.mxu1 %v6231_v1  ;;  %6412 = vst [vmem:[#allocation32_spill] sm:$0xff] %v5147_v0  ;;  %6413 = vst [vmem:[#allocation33_spill] sm:$0xff] %v5149_v8  ;;  %v5152_v17 = vpack.c.bf16 %v469_v16, %v465_v12  ;;  %v5157_v44 = vpack.c.bf16 %v476_v34, %v472_v25  ;;  %v471_v49 = vld [vmem:[#allocation8 + $0x140] sm:$0xff]  ;;  %v473_v12 = vld [vmem:[#allocation8 + $0x150] sm:$0xff] }
  0x52   :  { %3344 = vmatprep.subr.bf16.mxu1 %v5109_v31  ;;  %v475_v57 = vld [vmem:[#allocation8 + $0x160] sm:$0xff]  ;;  %v5159_v58 = vpack.c.bf16 %v478_v45, %v474_v35  ;;  %v477_v16 = vld [vmem:[#allocation8 + $0x170] sm:$0xff]  ;;  %v484_v25 = vld [vmem:[#allocation8 + $0x1a8] sm:$0xff] }
  0x53   :  { %3282 = vmatpush1.bf16.msra.mxu0 %v5111_v32  ;;  %6414 = vst [vmem:[#allocation34_spill] sm:$0xff] %v5152_v17  ;;  %6415 = vst [vmem:[#allocation35_spill] sm:$0xff] %v5157_v44  ;;  %v5161_v62 = vpack.c.bf16 %v475_v57, %v471_v49  ;;  %v5164_v1 = vpack.c.bf16 %v477_v16, %v473_v12  ;;  %v482_v34 = vld [vmem:[#allocation8 + $0x198] sm:$0xff]  ;;  %v479_v45 = vld [vmem:[#allocation8 + $0x180] sm:$0xff] }
  0x54   :  { %3346 = vmatpush1.bf16.msra.mxu1 %v5115_v36  ;;  %3284 = vmatprep.subr.bf16.mxu0 %v5121_v48  ;;  %6416 = vst [vmem:[#allocation36_spill] sm:$0xff] %v5159_v58  ;;  %v486_v35 = vld [vmem:[#allocation8 + $0x1b8] sm:$0xff]  ;;  %v483_v49 = vld [vmem:[#allocation8 + $0x1a0] sm:$0xff]  ;;  %v481_v12 = vld [vmem:[#allocation8 + $0x190] sm:$0xff] }
  0x55   :  { %3348 = vmatprep.subr.bf16.mxu1 %v5123_v50  ;;  %6417 = vst [vmem:[#allocation37_spill] sm:$0xff] %v5161_v62  ;;  %6418 = vst [vmem:[#allocation38_spill] sm:$0xff] %v5164_v1  ;;  %v5171_v57 = vpack.c.bf16 %v486_v35, %v482_v34  ;;  %v485_v16 = vld [vmem:[#allocation8 + $0x1b0] sm:$0xff]  ;;  %v494_v34 = vld [vmem:[#allocation8 + $0x1f8] sm:$0xff] }
  0x56   :  { %v487_v35 = vld [vmem:[#allocation8 + $0x1c0] sm:$0xff] }
  0x57   :  { %3286 = vmatpush1.bf16.msra.mxu0 %v5126_v60  ;;  %6420 = vst [vmem:[#allocation40_spill] sm:$0xff] %v5171_v57  ;;  %v556_v60 = vld [vmem:[#allocation8 + $0x3e8] sm:$0xff] }
  0x58   :  { %3350 = vmatpush1.bf16.msra.mxu1 %v5129_v63  ;;  %3288 = vmatprep.subr.bf16.mxu0 %v5133_v14  ;;  %v542_v14 = vld [vmem:[#allocation8 + $0x378] sm:$0xff]  ;;  %v535_v63 = vld [vmem:[#allocation8 + $0x340] sm:$0xff] }
  0x59   :  { %3352 = vmatprep.subr.bf16.mxu1 %v5135_v26  ;;  %v538_v26 = vld [vmem:[#allocation8 + $0x358] sm:$0xff] }
  0x5b   :  { %3290 = vmatpush1.bf16.msra.mxu0 %v5137_v27  ;;  %v531_v27 = vld [vmem:[#allocation8 + $0x320] sm:$0xff] }
  0x5c   :  { %3354 = vmatpush1.bf16.msra.mxu1 %v5140_v38  ;;  %3292 = vmatprep.subr.bf16.mxu0 %v5145_v56  ;;  %v526_v56 = vld [vmem:[#allocation8 + $0x2f8] sm:$0xff]  ;;  %v527_v38 = vld [vmem:[#allocation8 + $0x300] sm:$0xff] }
  0x5d   :  { %3356 = vmatprep.subr.bf16.mxu1 %v5147_v0  ;;  %v5173_v0 = vpack.c.bf16 %v483_v49, %v479_v45  ;;  %v491_v45 = vld [vmem:[#allocation8 + $0x1e0] sm:$0xff] }
  0x5f   :  { %3294 = vmatpush1.bf16.msra.mxu0 %v5149_v8  ;;  %6421 = vst [vmem:[#allocation41_spill] sm:$0xff] %v5173_v0 }
  0x60   :  { %3358 = vmatpush1.bf16.msra.mxu1 %v5152_v17  ;;  %3296 = vmatprep.subr.bf16.mxu0 %v5157_v44  ;;  %v480_v17 = vld [vmem:[#allocation8 + $0x188] sm:$0xff]  ;;  %v5185_v44 = vpack.c.bf16 %v491_v45, %v487_v35  ;;  %v499_v35 = vld [vmem:[#allocation8 + $0x220] sm:$0xff] }
  0x61   :  { %3360 = vmatprep.subr.bf16.mxu1 %v5159_v58  ;;  %v5169_v8 = vpack.c.bf16 %v484_v25, %v480_v17  ;;  %v5176_v58 = vpack.c.bf16 %v485_v16, %v481_v12  ;;  %v492_v17 = vld [vmem:[#allocation8 + $0x1e8] sm:$0xff]  ;;  %v490_v25 = vld [vmem:[#allocation8 + $0x1d8] sm:$0xff]  ;;  %v489_v12 = vld [vmem:[#allocation8 + $0x1d0] sm:$0xff] }
  0x62   :  { %v5183_v49 = vpack.c.bf16 %v494_v34, %v490_v25  ;;  %6425 = vst [vmem:[#allocation45_spill] sm:$0xff] %v5185_v44  ;;  %v493_v16 = vld [vmem:[#allocation8 + $0x1f0] sm:$0xff]  ;;  %v502_v25 = vld [vmem:[#allocation8 + $0x238] sm:$0xff]  ;;  %v495_v34 = vld [vmem:[#allocation8 + $0x200] sm:$0xff] }
  0x63   :  { %3298 = vmatpush1.bf16.msra.mxu0 %v5161_v62  ;;  %6419 = vst [vmem:[#allocation39_spill] sm:$0xff] %v5169_v8  ;;  %6422 = vst [vmem:[#allocation42_spill] sm:$0xff] %v5176_v58 }
  0x64   :  { %3362 = vmatpush1.bf16.msra.mxu1 %v5164_v1  ;;  %3300 = vmatprep.subr.bf16.mxu0 %v5169_v8  ;;  %v488_v1 = vld [vmem:[#allocation8 + $0x1c8] sm:$0xff]  ;;  %6424 = vst [vmem:[#allocation44_spill] sm:$0xff] %v5183_v49  ;;  %v5197_v8 = vpack.c.bf16 %v499_v35, %v495_v34  ;;  %v507_v34 = vld [vmem:[#allocation8 + $0x260] sm:$0xff] }
  0x65   :  { %3364 = vmatprep.subr.bf16.mxu1 %v5171_v57  ;;  %v5181_v62 = vpack.c.bf16 %v492_v17, %v488_v1  ;;  %v5188_v57 = vpack.c.bf16 %v493_v16, %v489_v12  ;;  %v500_v1 = vld [vmem:[#allocation8 + $0x228] sm:$0xff]  ;;  %v498_v17 = vld [vmem:[#allocation8 + $0x218] sm:$0xff]  ;;  %v497_v12 = vld [vmem:[#allocation8 + $0x210] sm:$0xff] }
  0x66   :  { %v5195_v45 = vpack.c.bf16 %v502_v25, %v498_v17  ;;  %6429 = vst [vmem:[#allocation49_spill] sm:$0xff] %v5197_v8  ;;  %v501_v16 = vld [vmem:[#allocation8 + $0x230] sm:$0xff]  ;;  %v510_v17 = vld [vmem:[#allocation8 + $0x278] sm:$0xff]  ;;  %v503_v25 = vld [vmem:[#allocation8 + $0x240] sm:$0xff] }
  0x67   :  { %3302 = vmatpush1.bf16.msra.mxu0 %v5173_v0  ;;  %6423 = vst [vmem:[#allocation43_spill] sm:$0xff] %v5181_v62  ;;  %6426 = vst [vmem:[#allocation46_spill] sm:$0xff] %v5188_v57 }
  0x68   :  { %3366 = vmatpush1.bf16.msra.mxu1 %v5176_v58  ;;  %3304 = vmatprep.subr.bf16.mxu0 %v5181_v62  ;;  %v496_v58 = vld [vmem:[#allocation8 + $0x208] sm:$0xff]  ;;  %6428 = vst [vmem:[#allocation48_spill] sm:$0xff] %v5195_v45  ;;  %v5209_v62 = vpack.c.bf16 %v507_v34, %v503_v25 }
  0x69   :  { %3368 = vmatprep.subr.bf16.mxu1 %v5183_v49  ;;  %v5193_v0 = vpack.c.bf16 %v500_v1, %v496_v58  ;;  %v5200_v49 = vpack.c.bf16 %v501_v16, %v497_v12  ;;  %v508_v58 = vld [vmem:[#allocation8 + $0x268] sm:$0xff]  ;;  %v506_v1 = vld [vmem:[#allocation8 + $0x258] sm:$0xff]  ;;  %v505_v12 = vld [vmem:[#allocation8 + $0x250] sm:$0xff] }
  0x6a   :  { %v5207_v35 = vpack.c.bf16 %v510_v17, %v506_v1  ;;  %6433 = vst [vmem:[#allocation53_spill] sm:$0xff] %v5209_v62  ;;  %v509_v16 = vld [vmem:[#allocation8 + $0x270] sm:$0xff]  ;;  %v511_v1 = vld [vmem:[#allocation8 + $0x280] sm:$0xff] }
  0x6b   :  { %3306 = vmatpush1.bf16.msra.mxu0 %v5185_v44  ;;  %6427 = vst [vmem:[#allocation47_spill] sm:$0xff] %v5193_v0  ;;  %6430 = vst [vmem:[#allocation50_spill] sm:$0xff] %v5200_v49  ;;  %v515_v17 = vld [vmem:[#allocation8 + $0x2a0] sm:$0xff] }
  0x6c   :  { %3370 = vmatpush1.bf16.msra.mxu1 %v5188_v57  ;;  %3308 = vmatprep.subr.bf16.mxu0 %v5193_v0  ;;  %v504_v57 = vld [vmem:[#allocation8 + $0x248] sm:$0xff]  ;;  %6432 = vst [vmem:[#allocation52_spill] sm:$0xff] %v5207_v35  ;;  %v5221_v0 = vpack.c.bf16 %v515_v17, %v511_v1  ;;  %v521_v1 = vld [vmem:[#allocation8 + $0x2d0] sm:$0xff] }
  0x6d   :  { %3372 = vmatprep.subr.bf16.mxu1 %v5195_v45  ;;  %v5205_v44 = vpack.c.bf16 %v508_v58, %v504_v57  ;;  %v5212_v45 = vpack.c.bf16 %v509_v16, %v505_v12  ;;  %v516_v57 = vld [vmem:[#allocation8 + $0x2a8] sm:$0xff]  ;;  %v514_v58 = vld [vmem:[#allocation8 + $0x298] sm:$0xff]  ;;  %v513_v12 = vld [vmem:[#allocation8 + $0x290] sm:$0xff] }
  0x6e   :  { %6437 = vst [vmem:[#allocation57_spill] sm:$0xff] %v5221_v0  ;;  %v517_v16 = vld [vmem:[#allocation8 + $0x2b0] sm:$0xff] }
  0x6f   :  { %3310 = vmatpush1.bf16.msra.mxu0 %v5197_v8  ;;  %6431 = vst [vmem:[#allocation51_spill] sm:$0xff] %v5205_v44  ;;  %6434 = vst [vmem:[#allocation54_spill] sm:$0xff] %v5212_v45  ;;  %v518_v8 = vld [vmem:[#allocation8 + $0x2b8] sm:$0xff]  ;;  %v525_v17 = vld [vmem:[#allocation8 + $0x2f0] sm:$0xff] }
  0x70   :  { %3374 = vmatpush1.bf16.msra.mxu1 %v5200_v49  ;;  %3312 = vmatprep.subr.bf16.mxu0 %v5205_v44  ;;  %v512_v49 = vld [vmem:[#allocation8 + $0x288] sm:$0xff]  ;;  %v5219_v34 = vpack.c.bf16 %v518_v8, %v514_v58 }
  0x71   :  { %3376 = vmatprep.subr.bf16.mxu1 %v5207_v35  ;;  %v5217_v25 = vpack.c.bf16 %v516_v57, %v512_v49  ;;  %v520_v35 = vld [vmem:[#allocation8 + $0x2c8] sm:$0xff]  ;;  %v519_v49 = vld [vmem:[#allocation8 + $0x2c0] sm:$0xff] }
  0x72   :  { %6436 = vst [vmem:[#allocation56_spill] sm:$0xff] %v5219_v34  ;;  %v524_v44 = vld [vmem:[#allocation8 + $0x2e8] sm:$0xff]  ;;  %v523_v57 = vld [vmem:[#allocation8 + $0x2e0] sm:$0xff] }
  0x73   :  { %3314 = vmatpush1.bf16.msra.mxu0 %v5209_v62  ;;  %6435 = vst [vmem:[#allocation55_spill] sm:$0xff] %v5217_v25  ;;  %v5225_v62 = vpack.c.bf16 %v517_v16, %v513_v12  ;;  %v5229_v8 = vpack.c.bf16 %v524_v44, %v520_v35  ;;  %v5235_v12 = vpack.c.bf16 %v523_v57, %v519_v49  ;;  %v528_v16 = vld [vmem:[#allocation8 + $0x308] sm:$0xff] }
  0x74   :  { %3378 = vmatpush1.bf16.msra.mxu1 %v5212_v45  ;;  %3316 = vmatprep.subr.bf16.mxu0 %v5217_v25  ;;  %v522_v45 = vld [vmem:[#allocation8 + $0x2d8] sm:$0xff]  ;;  %v5238_v44 = vpack.c.bf16 %v525_v17, %v521_v1  ;;  %v5245_v57 = vpack.c.bf16 %v531_v27, %v527_v38  ;;  %v537_v1 = vld [vmem:[#allocation8 + $0x350] sm:$0xff]  ;;  %v5254_v38 = vpack.c.bf16 %v542_v14, %v538_v26 }
  0x75   :  { %3380 = vmatprep.subr.bf16.mxu1 %v5219_v34  ;;  %6438 = vst [vmem:[#allocation58_spill] sm:$0xff] %v5225_v62  ;;  %6439 = vst [vmem:[#allocation59_spill] sm:$0xff] %v5229_v8  ;;  %v5231_v58 = vpack.c.bf16 %v526_v56, %v522_v45  ;;  %v532_v34 = vld [vmem:[#allocation8 + $0x328] sm:$0xff]  ;;  %v534_v25 = vld [vmem:[#allocation8 + $0x338] sm:$0xff] }
  0x76   :  { %6441 = vst [vmem:[#allocation61_spill] sm:$0xff] %v5235_v12  ;;  %6442 = vst [vmem:[#allocation62_spill] sm:$0xff] %v5238_v44  ;;  %v529_v56 = vld [vmem:[#allocation8 + $0x310] sm:$0xff]  ;;  %v5240_v35 = vpack.c.bf16 %v532_v34, %v528_v16  ;;  %v544_v34 = vld [vmem:[#allocation8 + $0x388] sm:$0xff] }
  0x77   :  { %3318 = vmatpush1.bf16.msra.mxu0 %v5221_v0  ;;  %6440 = vst [vmem:[#allocation60_spill] sm:$0xff] %v5231_v58  ;;  %v530_v0 = vld [vmem:[#allocation8 + $0x318] sm:$0xff]  ;;  %v533_v45 = vld [vmem:[#allocation8 + $0x330] sm:$0xff]  ;;  %6445 = vst [vmem:[#allocation65_spill] sm:$0xff] %v5245_v57 }
  0x78   :  { %3382 = vmatpush1.bf16.msra.mxu1 %v5225_v62  ;;  %3320 = vmatprep.subr.bf16.mxu0 %v5229_v8  ;;  %6443 = vst [vmem:[#allocation63_spill] sm:$0xff] %v5240_v35  ;;  %v536_v62 = vld [vmem:[#allocation8 + $0x348] sm:$0xff]  ;;  %v5243_v49 = vpack.c.bf16 %v534_v25, %v530_v0  ;;  %v541_v17 = vld [vmem:[#allocation8 + $0x370] sm:$0xff]  ;;  %v546_v25 = vld [vmem:[#allocation8 + $0x398] sm:$0xff] }
  0x79   :  { %3384 = vmatprep.subr.bf16.mxu1 %v5231_v58  ;;  %v540_v8 = vld [vmem:[#allocation8 + $0x368] sm:$0xff]  ;;  %v5247_v58 = vpack.c.bf16 %v533_v45, %v529_v56  ;;  %v550_v27 = vld [vmem:[#allocation8 + $0x3b8] sm:$0xff]  ;;  %6448 = vst [vmem:[#allocation68_spill] sm:$0xff] %v5254_v38  ;;  %v543_v56 = vld [vmem:[#allocation8 + $0x380] sm:$0xff] }
  0x7a   :  { %6444 = vst [vmem:[#allocation64_spill] sm:$0xff] %v5243_v49  ;;  %v5252_v16 = vpack.c.bf16 %v540_v8, %v536_v62  ;;  %v548_v0 = vld [vmem:[#allocation8 + $0x3a8] sm:$0xff]  ;;  %v547_v45 = vld [vmem:[#allocation8 + $0x3a0] sm:$0xff]  ;;  %v5265_v8 = vpack.c.bf16 %v550_v27, %v546_v25  ;;  %v545_v14 = vld [vmem:[#allocation8 + $0x390] sm:$0xff] }
  0x7b   :  { %3322 = vmatpush1.bf16.msra.mxu0 %v5235_v12  ;;  %6446 = vst [vmem:[#allocation66_spill] sm:$0xff] %v5247_v58  ;;  %v539_v12 = vld [vmem:[#allocation8 + $0x360] sm:$0xff]  ;;  %v5263_v62 = vpack.c.bf16 %v548_v0, %v544_v34  ;;  %v549_v26 = vld [vmem:[#allocation8 + $0x3b0] sm:$0xff] }
  0x7c   :  { %3386 = vmatpush1.bf16.msra.mxu1 %v5238_v44  ;;  %3324 = vmatprep.subr.bf16.mxu0 %v5240_v35  ;;  %6447 = vst [vmem:[#allocation67_spill] sm:$0xff] %v5252_v16  ;;  %v5258_v35 = vpack.c.bf16 %v539_v12, %v535_v63  ;;  %v5260_v44 = vpack.c.bf16 %v541_v17, %v537_v1  ;;  %6452 = vst [vmem:[#allocation72_spill] sm:$0xff] %v5265_v8  ;;  %v551_v12 = vld [vmem:[#allocation8 + $0x3c0] sm:$0xff]  ;;  %v553_v0 = vld [vmem:[#allocation8 + $0x3d0] sm:$0xff] }
  0x7d   :  { %3388 = vmatprep.subr.bf16.mxu1 %v5243_v49  ;;  %v552_v49 = vld [vmem:[#allocation8 + $0x3c8] sm:$0xff]  ;;  %6451 = vst [vmem:[#allocation71_spill] sm:$0xff] %v5263_v62  ;;  %v555_v1 = vld [vmem:[#allocation8 + $0x3e0] sm:$0xff]  ;;  %v5274_v17 = vpack.c.bf16 %v549_v26, %v545_v14  ;;  %v557_v25 = vld [vmem:[#allocation8 + $0x3f0] sm:$0xff] }
  0x7e   :  { %6449 = vst [vmem:[#allocation69_spill] sm:$0xff] %v5258_v35  ;;  %6450 = vst [vmem:[#allocation70_spill] sm:$0xff] %v5260_v44  ;;  %v5271_v63 = vpack.c.bf16 %v556_v60, %v552_v49  ;;  %v5280_v27 = vpack.c.bf16 %v555_v1, %v551_v12  ;;  %v5284_v60 = vpack.c.bf16 %v557_v25, %v553_v0  ;;  %v71_v26 = vld [vmem:[%s6221_s1] sm:$0xf]  ;;  %s3190_s1 = sshll.u32 %s4897_s29, 4  ;;  %s3191_s1 = int_to_ptr.vmem [resolvable:$true] %s3190_s1 }
  0x7f   :  { %3326 = vmatpush1.bf16.msra.mxu0 %v5245_v57  ;;  %v5268_v57 = vpack.c.bf16 %v547_v45, %v543_v56  ;;  %6455 = vst [vmem:[#allocation75_spill] sm:$0xff] %v5274_v17 }
  0x80   :  { %3390 = vmatpush1.bf16.msra.mxu1 %v5247_v58  ;;  %3328 = vmatprep.subr.bf16.mxu0 %v5252_v16  ;;  %v554_v58 = vld [vmem:[#allocation8 + $0x3d8] sm:$0xff]  ;;  %6454 = vst [vmem:[#allocation74_spill] sm:$0xff] %v5271_v63  ;;  %6457 = vst [vmem:[#allocation77_spill] sm:$0xff] %v5280_v27 }
  0x81   :  { %3392 = vmatprep.subr.bf16.mxu1 %v5254_v38  ;;  %6453 = vst [vmem:[#allocation73_spill] sm:$0xff] %v5268_v57  ;;  %v558_v16 = vld [vmem:[#allocation8 + $0x3f8] sm:$0xff]  ;;  %6458 = vst [vmem:[#allocation78_spill] sm:$0xff] %v5284_v60 }
  0x82   :  { %v5277_v34 = vpack.c.bf16 %v558_v16, %v554_v58  ;;  %v108_v58 = vlaneseq }
  0x83   :  { %3330 = vmatpush1.bf16.msra.mxu0 %v5258_v35 }
  0x84   :  { %3332 = vmatprep.subr.bf16.mxu0 %v5263_v62  ;;  %3394 = vmatpush1.bf16.msra.mxu1 %v5260_v44  ;;  %6456 = vst [vmem:[#allocation76_spill] sm:$0xff] %v5277_v34  ;;  %v109_v49 = vshrl.u32 %v108_v58, 7  ;;  %v156_v58 = vld [vmem:[%s6223_s3] sm:$0xf]  ;;  %s4837_s3 = scalar_lea.vmem %s3179_s28, 64 }
  0x85   :  { %3396 = vmatprep.subr.bf16.mxu1 %v5265_v8  ;;  %p4838_p2 = scmp.ne.s32.totalorder %s3179_s28, %s4837_s3  ;;  %p4843_p4 = scmp.lt.s32.totalorder %s4837_s3, %s4837_s3 }
  0x86   :  { %v5291_v16 = vsub.s32 0, %v109_v49  ;;  %v5293_v56 = vsub.s32 1, %v109_v49  ;;  %v5295_v45 = vsub.s32 2, %v109_v49  ;;  %v5297_v14 = vsub.s32 3, %v109_v49 }
  0x87   :  { %3334 = vmatpush1.bf16.msra.mxu0 %v5268_v57  ;;  %p4844_p5 = por %p4843_p4, %p4842_p3 }
  0x88   :  { %3336 = vmatprep.subr.bf16.mxu0 %v5271_v63  ;;  %3398 = vmatpush1.bf16.msra.mxu1 %v5274_v17  ;;  %6459 = vst [vmem:[#allocation79_spill] sm:$0xff] %v5291_v16  ;;  %6460 = vst [vmem:[#allocation80_spill] sm:$0xff] %v5293_v56  ;;  %v5303_v12 = vrot.slane %v71_v26, %v5291_v16  ;;  %v5306_v1 = vrot.slane %v71_v26, %v5293_v56 }
  0x89   :  { %3400 = vmatprep.subr.bf16.mxu1 %v5277_v34  ;;  %6461 = vst [vmem:[#allocation81_spill] sm:$0xff] %v5295_v45  ;;  %6462 = vst [vmem:[#allocation82_spill] sm:$0xff] %v5297_v14  ;;  %v5309_v0 = vrot.slane %v71_v26, %v5295_v45  ;;  %v5312_v25 = vrot.slane %v71_v26, %v5297_v14  ;;  %v5324_v34 = vrot.slane %v156_v58, %v5295_v45  ;;  %p4845_p6 = pnand %p4844_p5, %p4838_p2 }
  0x8a   :  { %6463 = vst [vmem:[#allocation83_spill] sm:$0xff] %v5303_v12  ;;  %6464 = vst [vmem:[#allocation84_spill] sm:$0xff] %v5306_v1  ;;  %v5327_v63 = vrot.slane %v156_v58, %v5297_v14 }
  0x8b   :  { %3338 = vmatpush1.bf16.msra.mxu0 %v5280_v27  ;;  %6465 = vst [vmem:[#allocation85_spill] sm:$0xff] %v5309_v0  ;;  %6466 = vst [vmem:[#allocation86_spill] sm:$0xff] %v5312_v25  ;;  %v5321_v27 = vrot.slane %v156_v58, %v5293_v56 }
  0x8c   :  { %3404 = vmatprep.subr.bf16.mxu0 %v4985_v6  ;;  %3402 = vmatpush1.bf16.msra.mxu1 %v5284_v60  ;;  %v5318_v60 = vrot.slane %v156_v58, %v5291_v16  ;;  %6469 = vst [vmem:[#allocation89_spill] sm:$0xff] %v5324_v34  ;;  %6470 = vst [vmem:[#allocation90_spill] sm:$0xff] %v5327_v63 }
  0x8d   :  { %3436 = vmatprep.subr.bf16.mxu1 %v4987_v10  ;;  %v4895_v10 = vmov 1983009808   ;;  %6468 = vst [vmem:[#allocation88_spill] sm:$0xff] %v5321_v27 }
  0x8e   :  { %v237_v6 = vunpack.c.l.s4 %v4895_v10  ;;  %6467 = vst [vmem:[#allocation87_spill] sm:$0xff] %v5318_v60 }
  0x90   :  { %v238_v16 = vunpack.c.0.s8 %v237_v6 }
  0x92   :  { %v5337_v58 = vsub.s32 %v238_v16, %v109_v49 }
  0xbd   :  { %v75_v26 = vpop.permute.xlu0 %74 }
  0xbe   :  { %v128_v17 = vmul.f32 %v5303_v12, %v75_v26  ;;  %v129_v57 = vmul.f32 %v5306_v1, %v75_v26  ;;  %v130_v8 = vmul.f32 %v5309_v0, %v75_v26  ;;  %v131_v10 = vmul.f32 %v5312_v25, %v75_v26 }
  0xc0   :  { %v178_v62 = vadd.f32 %v5318_v60, %v128_v17  ;;  %v179_v56 = vadd.f32 %v5321_v27, %v129_v57  ;;  %v180_v45 = vadd.f32 %v5324_v34, %v130_v8  ;;  %v181_v44 = vadd.f32 %v5327_v63, %v131_v10 }
  0xc2   :  { %v234_v14 = vcombine.low %v178_v62, %v179_v56  ;;  %v235_v35 = vcombine.low %v180_v45, %v181_v44 }
  0xc4   :  { %v242_v0 = vrot.slane %v234_v14, %v5337_v58  ;;  %v249_v26 = vrot.slane %v235_v35, %v5337_v58 }
  0xc6   :  { %v250_v27 = vcombine.low %v242_v0, %v249_v26 }
 0x121   :  { %v648_v12 = vpop.f32.mrb[0].mxu0 }
 0x122   :  { %v719_v38 = vpop.f32.mrb[0].mxu1  ;;  %v650_v1 = vpop.f32.mrb[1].mxu0 }
 0x123   :  { %v728_v6 = vcombine.low %v648_v12, %v650_v1  ;;  %v721_v25 = vpop.f32.mrb[1].mxu1 }
 0x124   :  { %v729_v17 = vcombine.low %v719_v38, %v721_v25 }
 0x125   :  { %v736_v57 = vrot.slane %v728_v6, %v5337_v58 }
 0x126   :  { %v743_v8 = vrot.slane %v729_v17, %v5337_v58 }
 0x128   :  { %v744_v10 = vcombine.low %v736_v57, %v743_v8 }
 0x12a   :  { %v746_v49 = vadd.f32 %v744_v10, %v250_v27 }
 0x12c   :  { %v747_v16 = vsub.f32 0.0, %v746_v49  ;;  %v753_v62 = vrot.slane %v746_v49, 2  ;;  %v763_v63 = vrot.slane %v746_v49, 6  ;;  %v760_v1 = vrot.slane %v746_v49, 4 }
 0x12e   :  { %v748_v44 = vmul.f32 1.442695, %v747_v16  ;;  %v755_v56 = vsub.f32 0.0, %v753_v62  ;;  %v765_v14 = vsub.f32 0.0, %v763_v63 }
 0x130   :  { %4567 = vpow2.f32 %v748_v44  ;;  %v756_v45 = vmul.f32 1.442695, %v755_v56  ;;  %v766_v35 = vmul.f32 1.442695, %v765_v14  ;;  %v6471_v44 = vmov 0.0   ;;  %v6472_v56 = vld [vmem:[#allocation25_spill] sm:$0xff] }
 0x131   :  { %v6474_v14 = vld [vmem:[#allocation27_spill] sm:$0xff] }
 0x132   :  { %4569 = vpow2.f32 %v756_v45  ;;  %v6473_v45 = vld [vmem:[#allocation26_spill] sm:$0xff] }
 0x133   :  { %4571 = vpow2.f32 %v766_v35  ;;  %v6475_v35 = vld [vmem:[#allocation28_spill] sm:$0xff] }
 0x13a   :  { %v4568_v12 = vpop.eup %4567 }
 0x13b   :  { %v750_v38 = vadd.f32 1.0, %v4568_v12  ;;  %v6476_v12 = vld [vmem:[#allocation29_spill] sm:$0xff] }
 0x13c   :  { %v4570_v25 = vpop.eup %4569 }
 0x13d   :  { %4573 = vrcp.f32 %v750_v38  ;;  %v758_v0 = vadd.f32 1.0, %v4570_v25  ;;  %v4572_v27 = vpop.eup %4571  ;;  %v6478_v38 = vld [vmem:[#allocation31_spill] sm:$0xff]  ;;  %v6479_v25 = vld [vmem:[#allocation32_spill] sm:$0xff] }
 0x13e   :  { %4575 = vtanh.f32 %v760_v1  ;;  %v768_v57 = vadd.f32 1.0, %v4572_v27  ;;  %v6477_v1 = vld [vmem:[#allocation30_spill] sm:$0xff] }
 0x13f   :  { %4577 = vrcp.f32 %v758_v0  ;;  %v6480_v0 = vld [vmem:[#allocation33_spill] sm:$0xff]  ;;  %v6481_v27 = vld [vmem:[#allocation34_spill] sm:$0xff] }
 0x140   :  { %4579 = vrcp.f32 %v768_v57  ;;  %v6485_v57 = vld [vmem:[#allocation38_spill] sm:$0xff] }
 0x147   :  { %v4574_v26 = vpop.eup %4573 }
 0x148   :  { %v4576_v6 = vpop.eup %4575 }
 0x149   :  { %v4578_v17 = vpop.eup %4577  ;;  %v771_v10 = vmul.f32 %v4576_v6, %v4574_v26  ;;  %v6482_v26 = vld [vmem:[#allocation35_spill] sm:$0xff]  ;;  %v6483_v6 = vld [vmem:[#allocation36_spill] sm:$0xff] }
 0x14a   :  { %v770_v8 = vmul.f32 0.0, %v4578_v17  ;;  %v4580_v63 = vpop.eup %4579  ;;  %v6484_v17 = vld [vmem:[#allocation37_spill] sm:$0xff] }
 0x14c   :  { %v5343_v16 = vadd.f32 %v771_v10, %v770_v8  ;;  %v6486_v8 = vld [vmem:[#allocation39_spill] sm:$0xff]  ;;  %v6487_v10 = vld [vmem:[#allocation40_spill] sm:$0xff] }
 0x14e   :  { %4581 = vtanh.f32 %v5343_v16 }
 0x158   :  { %v4582_v49 = vpop.eup %4581 }
 0x159   :  { %v774_v62 = vmul.f32 %v4582_v49, %v4580_v63  ;;  %v6488_v63 = vld [vmem:[#allocation41_spill] sm:$0xff]  ;;  %v6489_v49 = vld [vmem:[#allocation42_spill] sm:$0xff] }
 0x15b   :  { %840 = vmatmul.mubr.f32.vlgmr.msra.gmra.mrb[2].mxu0 %v774_v62  ;;  %911 = vmatmul.mubr.f32.vlgmr.msra.gmra.mrb[2].mxu1 %v774_v62 }
 0x15c   :  { %3406 = vmatpush1.bf16.msra.mxu0 %v4989_v11  ;;  %3438 = vmatpush1.bf16.msra.mxu1 %v4992_v15 }
 0x15d   :  { %3408 = vmatprep.subr.bf16.mxu0 %v4996_v19  ;;  %3440 = vmatprep.subr.bf16.mxu1 %v4998_v20 }
 0x15e   :  { %1005 = vmatprep.mubr.f32.mxu0 %v6471_v44  ;;  %1076 = vmatprep.mubr.f32.mxu1 %v6471_v44 }
 0x160   :  { %3410 = vmatpush1.bf16.msra.mxu0 %v5001_v24  ;;  %3442 = vmatpush1.bf16.msra.mxu1 %v5005_v28 }
 0x161   :  { %3412 = vmatprep.subr.bf16.mxu0 %v5007_v29  ;;  %3444 = vmatprep.subr.bf16.mxu1 %v5009_v33 }
 0x164   :  { %3414 = vmatpush1.bf16.msra.mxu0 %v5012_v37  ;;  %3446 = vmatpush1.bf16.msra.mxu1 %v5016_v41 }
 0x165   :  { %3416 = vmatprep.subr.bf16.mxu0 %v5018_v42  ;;  %3448 = vmatprep.subr.bf16.mxu1 %v5021_v46 }
 0x168   :  { %3418 = vmatpush1.bf16.msra.mxu0 %v5024_v53  ;;  %3450 = vmatpush1.bf16.msra.mxu1 %v5028_v54 }
 0x169   :  { %3420 = vmatprep.subr.bf16.mxu0 %v5030_v55  ;;  %3452 = vmatprep.subr.bf16.mxu1 %v5033_v59 }
 0x16c   :  { %3422 = vmatpush1.bf16.msra.mxu0 %v5036_v2  ;;  %3454 = vmatpush1.bf16.msra.mxu1 %v5040_v3 }
 0x16d   :  { %3424 = vmatprep.subr.bf16.mxu0 %v5042_v4  ;;  %3456 = vmatprep.subr.bf16.mxu1 %v5045_v9 }
 0x170   :  { %3426 = vmatpush1.bf16.msra.mxu0 %v5048_v18  ;;  %3458 = vmatpush1.bf16.msra.mxu1 %v5052_v22 }
 0x171   :  { %3428 = vmatprep.subr.bf16.mxu0 %v5054_v23  ;;  %3460 = vmatprep.subr.bf16.mxu1 %v5060_v30 }
 0x174   :  { %3430 = vmatpush1.bf16.msra.mxu0 %v5066_v39  ;;  %3462 = vmatpush1.bf16.msra.mxu1 %v5070_v40 }
 0x175   :  { %3432 = vmatprep.subr.bf16.mxu0 %v5072_v43  ;;  %3464 = vmatprep.subr.bf16.mxu1 %v5075_v47 }
 0x178   :  { %3434 = vmatpush1.bf16.msra.mxu0 %v5081_v51  ;;  %3466 = vmatpush1.bf16.msra.mxu1 %v5085_v52 }
 0x179   :  { %3468 = vmatprep.subr.bf16.mxu0 %v5092_v61  ;;  %3532 = vmatprep.subr.bf16.mxu1 %v5095_v5 }
 0x17b   :  { %1006 = vmatmul.mubr.f32.vlgmr.msra.gmra.mrb[4].mxu0 %v774_v62  ;;  %1077 = vmatmul.mubr.f32.vlgmr.msra.gmra.mrb[4].mxu1 %v774_v62  ;;  %v6490_v62 = vld [vmem:[#allocation43_spill] sm:$0xff] }
 0x17c   :  { %3470 = vmatpush1.bf16.msra.mxu0 %v5097_v7  ;;  %3534 = vmatpush1.bf16.msra.mxu1 %v5100_v13 }
 0x17d   :  { %3472 = vmatprep.subr.bf16.mxu0 %v5106_v21  ;;  %3536 = vmatprep.subr.bf16.mxu1 %v5109_v31 }
 0x180   :  { %3474 = vmatpush1.bf16.msra.mxu0 %v5111_v32  ;;  %3538 = vmatpush1.bf16.msra.mxu1 %v5115_v36 }
 0x181   :  { %3476 = vmatprep.subr.bf16.mxu0 %v5121_v48  ;;  %3540 = vmatprep.subr.bf16.mxu1 %v5123_v50 }
 0x184   :  { %3478 = vmatpush1.bf16.msra.mxu0 %v6472_v56  ;;  %3542 = vmatpush1.bf16.msra.mxu1 %v6473_v45  ;;  %v6534_v45 = vld [vmem:[#allocation81_spill] sm:$0xff] }
 0x185   :  { %3480 = vmatprep.subr.bf16.mxu0 %v6474_v14  ;;  %3544 = vmatprep.subr.bf16.mxu1 %v6475_v35 }
 0x188   :  { %3482 = vmatpush1.bf16.msra.mxu0 %v6476_v12  ;;  %3546 = vmatpush1.bf16.msra.mxu1 %v6477_v1 }
 0x189   :  { %3484 = vmatprep.subr.bf16.mxu0 %v6478_v38  ;;  %3548 = vmatprep.subr.bf16.mxu1 %v6479_v25  ;;  %v6532_v38 = vld [vmem:[#allocation82_spill] sm:$0xff] }
 0x18c   :  { %3486 = vmatpush1.bf16.msra.mxu0 %v6480_v0  ;;  %3550 = vmatpush1.bf16.msra.mxu1 %v6481_v27  ;;  %v6491_v0 = vld [vmem:[#allocation44_spill] sm:$0xff]  ;;  %v6492_v27 = vld [vmem:[#allocation45_spill] sm:$0xff] }
 0x18d   :  { %3488 = vmatprep.subr.bf16.mxu0 %v6482_v26  ;;  %3552 = vmatprep.subr.bf16.mxu1 %v6483_v6  ;;  %v6493_v26 = vld [vmem:[#allocation46_spill] sm:$0xff]  ;;  %v6494_v6 = vld [vmem:[#allocation47_spill] sm:$0xff] }
 0x190   :  { %3490 = vmatpush1.bf16.msra.mxu0 %v6484_v17  ;;  %3554 = vmatpush1.bf16.msra.mxu1 %v6485_v57  ;;  %v6495_v17 = vld [vmem:[#allocation48_spill] sm:$0xff]  ;;  %v6496_v57 = vld [vmem:[#allocation49_spill] sm:$0xff] }
 0x191   :  { %3492 = vmatprep.subr.bf16.mxu0 %v6486_v8  ;;  %3556 = vmatprep.subr.bf16.mxu1 %v6487_v10  ;;  %v6497_v8 = vld [vmem:[#allocation50_spill] sm:$0xff]  ;;  %v6498_v10 = vld [vmem:[#allocation51_spill] sm:$0xff] }
 0x194   :  { %3494 = vmatpush1.bf16.msra.mxu0 %v6488_v63  ;;  %3558 = vmatpush1.bf16.msra.mxu1 %v6489_v49  ;;  %v6499_v63 = vld [vmem:[#allocation52_spill] sm:$0xff]  ;;  %v6500_v49 = vld [vmem:[#allocation53_spill] sm:$0xff] }
 0x195   :  { %3496 = vmatprep.subr.bf16.mxu0 %v6490_v62  ;;  %3560 = vmatprep.subr.bf16.mxu1 %v6491_v0  ;;  %v6501_v62 = vld [vmem:[#allocation54_spill] sm:$0xff]  ;;  %v6502_v0 = vld [vmem:[#allocation55_spill] sm:$0xff] }
 0x198   :  { %3498 = vmatpush1.bf16.msra.mxu0 %v6492_v27  ;;  %3562 = vmatpush1.bf16.msra.mxu1 %v6493_v26  ;;  %v6503_v27 = vld [vmem:[#allocation56_spill] sm:$0xff]  ;;  %v6504_v26 = vld [vmem:[#allocation57_spill] sm:$0xff] }
 0x199   :  { %3500 = vmatprep.subr.bf16.mxu0 %v6494_v6  ;;  %3564 = vmatprep.subr.bf16.mxu1 %v6495_v17  ;;  %v6505_v6 = vld [vmem:[#allocation58_spill] sm:$0xff]  ;;  %v6506_v17 = vld [vmem:[#allocation59_spill] sm:$0xff] }
 0x19c   :  { %3502 = vmatpush1.bf16.msra.mxu0 %v6496_v57  ;;  %3566 = vmatpush1.bf16.msra.mxu1 %v6497_v8  ;;  %v6507_v57 = vld [vmem:[#allocation60_spill] sm:$0xff]  ;;  %v6508_v8 = vld [vmem:[#allocation61_spill] sm:$0xff] }
 0x19d   :  { %3504 = vmatprep.subr.bf16.mxu0 %v6498_v10  ;;  %3568 = vmatprep.subr.bf16.mxu1 %v6499_v63  ;;  %v6509_v10 = vld [vmem:[#allocation62_spill] sm:$0xff]  ;;  %v6510_v63 = vld [vmem:[#allocation63_spill] sm:$0xff] }
 0x1a0   :  { %3506 = vmatpush1.bf16.msra.mxu0 %v6500_v49  ;;  %3570 = vmatpush1.bf16.msra.mxu1 %v6501_v62  ;;  %v6511_v49 = vld [vmem:[#allocation64_spill] sm:$0xff]  ;;  %v6512_v62 = vld [vmem:[#allocation65_spill] sm:$0xff] }
 0x1a1   :  { %3508 = vmatprep.subr.bf16.mxu0 %v6502_v0  ;;  %3572 = vmatprep.subr.bf16.mxu1 %v6503_v27  ;;  %v6513_v0 = vld [vmem:[#allocation66_spill] sm:$0xff]  ;;  %v6514_v27 = vld [vmem:[#allocation67_spill] sm:$0xff] }
 0x1a4   :  { %3510 = vmatpush1.bf16.msra.mxu0 %v6504_v26  ;;  %3574 = vmatpush1.bf16.msra.mxu1 %v6505_v6  ;;  %v6515_v26 = vld [vmem:[#allocation68_spill] sm:$0xff]  ;;  %v6516_v6 = vld [vmem:[#allocation69_spill] sm:$0xff] }
 0x1a5   :  { %3512 = vmatprep.subr.bf16.mxu0 %v6506_v17  ;;  %3576 = vmatprep.subr.bf16.mxu1 %v6507_v57  ;;  %v6517_v17 = vld [vmem:[#allocation70_spill] sm:$0xff]  ;;  %v6518_v57 = vld [vmem:[#allocation71_spill] sm:$0xff] }
 0x1a8   :  { %3514 = vmatpush1.bf16.msra.mxu0 %v6508_v8  ;;  %3578 = vmatpush1.bf16.msra.mxu1 %v6509_v10  ;;  %v6519_v8 = vld [vmem:[#allocation72_spill] sm:$0xff]  ;;  %v6520_v10 = vld [vmem:[#allocation73_spill] sm:$0xff] }
 0x1a9   :  { %3516 = vmatprep.subr.bf16.mxu0 %v6510_v63  ;;  %3580 = vmatprep.subr.bf16.mxu1 %v6511_v49  ;;  %v6521_v63 = vld [vmem:[#allocation75_spill] sm:$0xff]  ;;  %v6522_v49 = vld [vmem:[#allocation74_spill] sm:$0xff] }
 0x1ac   :  { %3518 = vmatpush1.bf16.msra.mxu0 %v6512_v62  ;;  %3582 = vmatpush1.bf16.msra.mxu1 %v6513_v0  ;;  %v6523_v62 = vld [vmem:[#allocation76_spill] sm:$0xff]  ;;  %v6524_v0 = vld [vmem:[#allocation77_spill] sm:$0xff] }
 0x1ad   :  { %3520 = vmatprep.subr.bf16.mxu0 %v6514_v27  ;;  %3584 = vmatprep.subr.bf16.mxu1 %v6515_v26  ;;  %v6525_v27 = vld [vmem:[#allocation78_spill] sm:$0xff]  ;;  %v6526_v26 = vld [vmem:[#allocation17_spill] sm:$0xff] }
 0x1b0   :  { %3522 = vmatpush1.bf16.msra.mxu0 %v6516_v6  ;;  %3586 = vmatpush1.bf16.msra.mxu1 %v6517_v17  ;;  %v6527_v6 = vld [vmem:[#allocation18_spill] sm:$0xff] }
 0x1b1   :  { %3524 = vmatprep.subr.bf16.mxu0 %v6518_v57  ;;  %3588 = vmatprep.subr.bf16.mxu1 %v6519_v8  ;;  %v66_v8 = vld [vmem:[%s6220_s0 + $0x4] sm:$0x3] }
 0x1b2   :  { %84 = vperm.xlu1 %4566, %v66_v8  }
 0x1b4   :  { %3526 = vmatpush1.bf16.msra.mxu0 %v6520_v10  ;;  %3590 = vmatpush1.bf16.msra.mxu1 %v6521_v63  ;;  %v67_v63 = vld [vmem:[%s6220_s0 + $0x6] sm:$0x3] }
 0x1b5   :  { %3528 = vmatprep.subr.bf16.mxu0 %v6522_v49  ;;  %3592 = vmatprep.subr.bf16.mxu1 %v6523_v62  ;;  %v6530_v62 = vld [vmem:[#allocation80_spill] sm:$0xff] }
 0x1b6   :  { %89 = vperm.xlu1 %4566, %v67_v63  }
 0x1b8   :  { %3530 = vmatpush1.bf16.msra.mxu0 %v6524_v0  ;;  %3594 = vmatpush1.bf16.msra.mxu1 %v6525_v27  ;;  %v69_v0 = vld [vmem:[%s6220_s0 + $0xa] sm:$0x3] }
 0x1b9   :  { %3596 = vmatprep.subr.bf16.mxu0 %v6526_v26  ;;  %3628 = vmatprep.subr.bf16.mxu1 %v6527_v6  ;;  %v559_v26 = vld [vmem:[%s6225_s5] sm:$0xf]  ;;  %v6528_v6 = vld [vmem:[#allocation79_spill] sm:$0xff] }
 0x1ba   :  { %99 = vperm.xlu1 %4566, %v69_v0   ;;  %v5457_v27 = vrot.slane %v559_v26, %v6528_v6  ;;  %v5460_v49 = vrot.slane %v559_v26, %v6530_v62  ;;  %v5465_v0 = vrot.slane %v559_v26, %v6532_v38  ;;  %v5469_v56 = vrot.slane %v559_v26, %v6534_v45  ;;  %v6539_v45 = vld [vmem:[#allocation86_spill] sm:$0xff] }
 0x1bc   :  { %6529 = vst [vmem:[#allocation79_spill] sm:$0xff] %v5457_v27  ;;  %6531 = vst [vmem:[#allocation80_spill] sm:$0xff] %v5460_v49 }
 0x1bd   :  { %6533 = vst [vmem:[#allocation82_spill] sm:$0xff] %v5465_v0  ;;  %6535 = vst [vmem:[#allocation81_spill] sm:$0xff] %v5469_v56 }
 0x22e   :  { %v841_v8 = vpop.f32.mrb[2].mxu0  ;;  %v912_v10 = vpop.f32.mrb[2].mxu1 }
 0x22f   :  { %v842_v57 = vadd.f32 %v841_v8, %v5457_v27  ;;  %v843_v63 = vpop.f32.mrb[3].mxu0  ;;  %v914_v17 = vpop.f32.mrb[3].mxu1  ;;  %v913_v27 = vadd.f32 %v912_v10, %v5469_v56  ;;  %v6540_v10 = vld [vmem:[#allocation88_spill] sm:$0xff] }
 0x230   :  { %v844_v25 = vadd.f32 %v843_v63, %v5460_v49  ;;  %v915_v6 = vadd.f32 %v914_v17, %v5465_v0  ;;  %v6537_v17 = vld [vmem:[#allocation84_spill] sm:$0xff] }
 0x231   :  { %v917_v1 = vsub.f32 0.0, %v842_v57 }
 0x232   :  { %v922_v12 = vsub.f32 0.0, %v844_v25  ;;  %v928_v62 = vsub.f32 0.0, %v915_v6  ;;  %v80_v25 = vpop.permute.xlu0 %79 }
 0x233   :  { %v918_v35 = vmul.f32 1.442695, %v917_v1  ;;  %v135_v26 = vmul.f32 %v6539_v45, %v80_v25 }
 0x234   :  { %v923_v14 = vmul.f32 1.442695, %v922_v12  ;;  %v929_v8 = vmul.f32 1.442695, %v928_v62  ;;  %v6536_v12 = vld [vmem:[#allocation83_spill] sm:$0xff] }
 0x235   :  { %4583 = vpow2.f32 %v918_v35  ;;  %v132_v1 = vmul.f32 %v6536_v12, %v80_v25  ;;  %v133_v35 = vmul.f32 %v6537_v17, %v80_v25 }
 0x236   :  { %4585 = vpow2.f32 %v923_v14  ;;  %v6538_v14 = vld [vmem:[#allocation85_spill] sm:$0xff] }
 0x237   :  { %4587 = vpow2.f32 %v929_v8  ;;  %v134_v57 = vmul.f32 %v6538_v14, %v80_v25  ;;  %v182_v6 = vadd.f32 %v5318_v60, %v132_v1  ;;  %v183_v62 = vadd.f32 %v6540_v10, %v133_v35  ;;  %v6541_v8 = vld [vmem:[#allocation90_spill] sm:$0xff] }
 0x238   :  { %4589 = vtanh.f32 %v913_v27  ;;  %v185_v27 = vadd.f32 %v6541_v8, %v135_v26 }
 0x23f   :  { %v4584_v50 = vpop.eup %4583 }
 0x240   :  { %v4586_v63 = vpop.eup %4585  ;;  %v920_v49 = vadd.f32 1.0, %v4584_v50  ;;  %v184_v50 = vadd.f32 %v5324_v34, %v134_v57 }
 0x241   :  { %v925_v38 = vadd.f32 1.0, %v4586_v63  ;;  %v4588_v63 = vpop.eup %4587 }
 0x242   :  { %4591 = vrcp.f32 %v920_v49  ;;  %v4590_v56 = vpop.eup %4589  ;;  %v251_v49 = vcombine.low %v182_v6, %v183_v62  ;;  %v252_v12 = vcombine.low %v184_v50, %v185_v27 }
 0x243   :  { %4593 = vrcp.f32 %v925_v38  ;;  %v931_v38 = vadd.f32 1.0, %v4588_v63 }
 0x244   :  { %v259_v1 = vrot.slane %v251_v49, %v5337_v58  ;;  %v266_v26 = vrot.slane %v252_v12, %v5337_v58 }
 0x245   :  { %4595 = vrcp.f32 %v931_v38 }
 0x24c   :  { %v4592_v0 = vpop.eup %4591 }
 0x24d   :  { %v4594_v48 = vpop.eup %4593  ;;  %v934_v17 = vmul.f32 %v4592_v0, %v4590_v56 }
 0x24e   :  { %v933_v36 = vmul.f32 0.0, %v4594_v48  ;;  %v1007_v14 = vpop.f32.mrb[4].mxu0  ;;  %v1078_v32 = vpop.f32.mrb[4].mxu1  ;;  %v267_v48 = vcombine.low %v259_v1, %v266_v26 }
 0x24f   :  { %v1009_v25 = vpop.f32.mrb[5].mxu0  ;;  %v1080_v60 = vpop.f32.mrb[5].mxu1 }
 0x250   :  { %v5481_v35 = vadd.f32 %v934_v17, %v933_v36  ;;  %v1087_v57 = vcombine.low %v1007_v14, %v1009_v25  ;;  %v1088_v8 = vcombine.low %v1078_v32, %v1080_v60  ;;  %v4596_v36 = vpop.eup %4595 }
 0x252   :  { %4597 = vtanh.f32 %v5481_v35  ;;  %v1095_v6 = vrot.slane %v1087_v57, %v5337_v58  ;;  %v1102_v56 = vrot.slane %v1088_v8, %v5337_v58  ;;  %v5490_v8 = vld [vmem:[%s6226_s6] ss:$0 sm:$0xff] }
 0x254   :  { %v1103_v0 = vcombine.low %v1095_v6, %v1102_v56 }
 0x256   :  { %v1105_v62 = vadd.f32 %v1103_v0, %v267_v48 }
 0x258   :  { %v1106_v50 = vsub.f32 0.0, %v1105_v62  ;;  %v1112_v27 = vrot.slane %v1105_v62, 2  ;;  %v1122_v12 = vrot.slane %v1105_v62, 6  ;;  %v1119_v1 = vrot.slane %v1105_v62, 4 }
 0x25a   :  { %v1107_v63 = vmul.f32 1.442695, %v1106_v50  ;;  %v1114_v49 = vsub.f32 0.0, %v1112_v27  ;;  %v1124_v60 = vsub.f32 0.0, %v1122_v12 }
 0x25c   :  { %v4598_v17 = vpop.eup %4597  ;;  %4599 = vpow2.f32 %v1107_v63  ;;  %v1115_v14 = vmul.f32 1.442695, %v1114_v49  ;;  %v1125_v38 = vmul.f32 1.442695, %v1124_v60 }
 0x25d   :  { %v937_v32 = vmul.f32 %v4598_v17, %v4596_v36 }
 0x25e   :  { %4601 = vpow2.f32 %v1115_v14 }
 0x25f   :  { %938 = vst [vmem:[#allocation3] sm:$0x3] %v937_v32  ;;  %1198 = vmatprep.mubr.f32.mxu0 %v937_v32  ;;  %1269 = vmatprep.mubr.f32.mxu1 %v937_v32  ;;  %4603 = vpow2.f32 %v1125_v38  ;;  %v6543_v38 = vld [vmem:[#allocation22_spill] sm:$0xff] }
 0x266   :  { %v4600_v25 = vpop.eup %4599  ;;  %v3100_v57 = vld [vmem:[#allocation3] sm:$0x3] }
 0x267   :  { %v1109_v26 = vadd.f32 1.0, %v4600_v25  ;;  %v3113_v6 = vmul.f32 %v5490_v8, %v3100_v57  ;;  %v6544_v25 = vld [vmem:[#allocation23_spill] sm:$0xff]  ;;  %v6546_v57 = vld [vmem:[#allocation25_spill] sm:$0xff] }
 0x268   :  { %v4602_v56 = vpop.eup %4601 }
 0x269   :  { %4605 = vrcp.f32 %v1109_v26  ;;  %v1117_v48 = vadd.f32 1.0, %v4602_v56  ;;  %v3121_v0 = vsel %vm3120_vm0, %v3113_v6, 0.0  ;;  %v4604_v50 = vpop.eup %4603  ;;  %v6547_v26 = vld [vmem:[#allocation26_spill] sm:$0xff]  ;;  %v6548_v6 = vld [vmem:[#allocation27_spill] sm:$0xff]  ;;  %v6549_v56 = vld [vmem:[#allocation28_spill] sm:$0xff] }
 0x26a   :  { %4607 = vtanh.f32 %v1119_v1  ;;  %3122 = vadd.xlane.f32.xlu1 %v3121_v0  ;;  %v1127_v36 = vadd.f32 1.0, %v4604_v50  ;;  %v6545_v1 = vld [vmem:[#allocation24_spill] sm:$0xff]  ;;  %v6551_v0 = vld [vmem:[#allocation30_spill] sm:$0xff]  ;;  %v6552_v50 = vld [vmem:[#allocation31_spill] sm:$0xff] }
 0x26b   :  { %4609 = vrcp.f32 %v1117_v48  ;;  %v6550_v48 = vld [vmem:[#allocation29_spill] sm:$0xff] }
 0x26c   :  { %4611 = vrcp.f32 %v1127_v36  ;;  %v6556_v36 = vld [vmem:[#allocation35_spill] sm:$0xff] }
 0x273   :  { %v4606_v27 = vpop.eup %4605 }
 0x274   :  { %v4608_v63 = vpop.eup %4607 }
 0x275   :  { %v4610_v49 = vpop.eup %4609  ;;  %v1130_v17 = vmul.f32 %v4608_v63, %v4606_v27  ;;  %v6553_v27 = vld [vmem:[#allocation32_spill] sm:$0xff]  ;;  %v6554_v63 = vld [vmem:[#allocation33_spill] sm:$0xff] }
 0x276   :  { %v1129_v62 = vmul.f32 %v4610_v49, %v5343_v16  ;;  %v4612_v12 = vpop.eup %4611  ;;  %v6542_v16 = vld [vmem:[#allocation21_spill] sm:$0xff]  ;;  %v6555_v49 = vld [vmem:[#allocation34_spill] sm:$0xff] }
 0x278   :  { %v5495_v14 = vadd.f32 %v1130_v17, %v1129_v62  ;;  %v6557_v62 = vld [vmem:[#allocation36_spill] sm:$0xff]  ;;  %v6558_v17 = vld [vmem:[#allocation37_spill] sm:$0xff] }
 0x27a   :  { %4613 = vtanh.f32 %v5495_v14 }
 0x284   :  { %v4614_v32 = vpop.eup %4613 }
 0x285   :  { %v1133_v60 = vmul.f32 %v4614_v32, %v4612_v12  ;;  %v6559_v12 = vld [vmem:[#allocation38_spill] sm:$0xff]  ;;  %v6560_v32 = vld [vmem:[#allocation39_spill] sm:$0xff] }
 0x287   :  { %1199 = vmatmul.mubr.f32.vlgmr.msra.gmra.mrb[6].mxu0 %v1133_v60  ;;  %1270 = vmatmul.mubr.f32.vlgmr.msra.gmra.mrb[6].mxu1 %v1133_v60 }
 0x288   :  { %3598 = vmatpush1.bf16.msra.mxu0 %v4989_v11  ;;  %3630 = vmatpush1.bf16.msra.mxu1 %v4992_v15 }
 0x289   :  { %3600 = vmatprep.subr.bf16.mxu0 %v4996_v19  ;;  %3632 = vmatprep.subr.bf16.mxu1 %v4998_v20 }
 0x28a   :  { %1365 = vmatprep.mubr.f32.mxu0 %v6471_v44  ;;  %1436 = vmatprep.mubr.f32.mxu1 %v6471_v44 }
 0x28c   :  { %3602 = vmatpush1.bf16.msra.mxu0 %v5001_v24  ;;  %3634 = vmatpush1.bf16.msra.mxu1 %v5005_v28 }
 0x28d   :  { %3604 = vmatprep.subr.bf16.mxu0 %v5007_v29  ;;  %3636 = vmatprep.subr.bf16.mxu1 %v5009_v33 }
 0x290   :  { %3606 = vmatpush1.bf16.msra.mxu0 %v5012_v37  ;;  %3638 = vmatpush1.bf16.msra.mxu1 %v5016_v41 }
 0x291   :  { %3608 = vmatprep.subr.bf16.mxu0 %v5018_v42  ;;  %3640 = vmatprep.subr.bf16.mxu1 %v5021_v46 }
 0x294   :  { %3610 = vmatpush1.bf16.msra.mxu0 %v5024_v53  ;;  %3642 = vmatpush1.bf16.msra.mxu1 %v5028_v54 }
 0x295   :  { %3612 = vmatprep.subr.bf16.mxu0 %v5030_v55  ;;  %3644 = vmatprep.subr.bf16.mxu1 %v5033_v59 }
 0x298   :  { %3614 = vmatpush1.bf16.msra.mxu0 %v5036_v2  ;;  %3646 = vmatpush1.bf16.msra.mxu1 %v5040_v3 }
 0x299   :  { %3616 = vmatprep.subr.bf16.mxu0 %v5042_v4  ;;  %3648 = vmatprep.subr.bf16.mxu1 %v5045_v9 }
 0x29c   :  { %3618 = vmatpush1.bf16.msra.mxu0 %v5048_v18  ;;  %3650 = vmatpush1.bf16.msra.mxu1 %v5052_v22 }
 0x29d   :  { %3620 = vmatprep.subr.bf16.mxu0 %v5054_v23  ;;  %3652 = vmatprep.subr.bf16.mxu1 %v5060_v30 }
 0x2a0   :  { %3622 = vmatpush1.bf16.msra.mxu0 %v5066_v39  ;;  %3654 = vmatpush1.bf16.msra.mxu1 %v5070_v40 }
 0x2a1   :  { %3624 = vmatprep.subr.bf16.mxu0 %v5072_v43  ;;  %3656 = vmatprep.subr.bf16.mxu1 %v5075_v47 }
 0x2a4   :  { %3626 = vmatpush1.bf16.msra.mxu0 %v5081_v51  ;;  %3658 = vmatpush1.bf16.msra.mxu1 %v5085_v52 }
 0x2a5   :  { %3660 = vmatprep.subr.bf16.mxu0 %v5092_v61  ;;  %3724 = vmatprep.subr.bf16.mxu1 %v5095_v5 }
 0x2a7   :  { %1366 = vmatmul.mubr.f32.vlgmr.msra.gmra.mrb[8].mxu0 %v1133_v60  ;;  %1437 = vmatmul.mubr.f32.vlgmr.msra.gmra.mrb[8].mxu1 %v1133_v60  ;;  %v6561_v60 = vld [vmem:[#allocation40_spill] sm:$0xff] }
 0x2a8   :  { %3662 = vmatpush1.bf16.msra.mxu0 %v5097_v7  ;;  %3726 = vmatpush1.bf16.msra.mxu1 %v5100_v13 }
 0x2a9   :  { %3664 = vmatprep.subr.bf16.mxu0 %v5106_v21  ;;  %3728 = vmatprep.subr.bf16.mxu1 %v5109_v31 }
 0x2ac   :  { %3666 = vmatpush1.bf16.msra.mxu0 %v6542_v16  ;;  %3730 = vmatpush1.bf16.msra.mxu1 %v6543_v38  ;;  %v6608_v38 = vld [vmem:[#allocation81_spill] sm:$0xff] }
 0x2ad   :  { %3668 = vmatprep.subr.bf16.mxu0 %v6544_v25  ;;  %3732 = vmatprep.subr.bf16.mxu1 %v6545_v1  ;;  %v6607_v1 = vld [vmem:[#allocation82_spill] sm:$0xff] }
 0x2b0   :  { %3670 = vmatpush1.bf16.msra.mxu0 %v6546_v57  ;;  %3734 = vmatpush1.bf16.msra.mxu1 %v6547_v26 }
 0x2b1   :  { %3672 = vmatprep.subr.bf16.mxu0 %v6548_v6  ;;  %3736 = vmatprep.subr.bf16.mxu1 %v6549_v56 }
 0x2b4   :  { %3674 = vmatpush1.bf16.msra.mxu0 %v6550_v48  ;;  %3738 = vmatpush1.bf16.msra.mxu1 %v6551_v0  ;;  %v6562_v0 = vld [vmem:[#allocation41_spill] sm:$0xff] }
 0x2b5   :  { %3676 = vmatprep.subr.bf16.mxu0 %v6552_v50  ;;  %3740 = vmatprep.subr.bf16.mxu1 %v6553_v27  ;;  %v6563_v50 = vld [vmem:[#allocation42_spill] sm:$0xff]  ;;  %v6564_v27 = vld [vmem:[#allocation43_spill] sm:$0xff] }
 0x2b8   :  { %3678 = vmatpush1.bf16.msra.mxu0 %v6554_v63  ;;  %3742 = vmatpush1.bf16.msra.mxu1 %v6555_v49  ;;  %v6565_v63 = vld [vmem:[#allocation44_spill] sm:$0xff]  ;;  %v6566_v49 = vld [vmem:[#allocation45_spill] sm:$0xff] }
 0x2b9   :  { %3680 = vmatprep.subr.bf16.mxu0 %v6556_v36  ;;  %3744 = vmatprep.subr.bf16.mxu1 %v6557_v62  ;;  %v6567_v36 = vld [vmem:[#allocation46_spill] sm:$0xff]  ;;  %v6568_v62 = vld [vmem:[#allocation47_spill] sm:$0xff] }
 0x2bc   :  { %3682 = vmatpush1.bf16.msra.mxu0 %v6558_v17  ;;  %3746 = vmatpush1.bf16.msra.mxu1 %v6559_v12  ;;  %v6569_v17 = vld [vmem:[#allocation48_spill] sm:$0xff]  ;;  %v6570_v12 = vld [vmem:[#allocation49_spill] sm:$0xff] }
 0x2bd   :  { %3684 = vmatprep.subr.bf16.mxu0 %v6560_v32  ;;  %3748 = vmatprep.subr.bf16.mxu1 %v6561_v60  ;;  %v6571_v32 = vld [vmem:[#allocation50_spill] sm:$0xff]  ;;  %v6572_v60 = vld [vmem:[#allocation51_spill] sm:$0xff] }
 0x2c0   :  { %3686 = vmatpush1.bf16.msra.mxu0 %v6562_v0  ;;  %3750 = vmatpush1.bf16.msra.mxu1 %v6563_v50  ;;  %v6573_v0 = vld [vmem:[#allocation52_spill] sm:$0xff]  ;;  %v6574_v50 = vld [vmem:[#allocation53_spill] sm:$0xff] }
 0x2c1   :  { %3688 = vmatprep.subr.bf16.mxu0 %v6564_v27  ;;  %3752 = vmatprep.subr.bf16.mxu1 %v6565_v63  ;;  %v6575_v27 = vld [vmem:[#allocation54_spill] sm:$0xff]  ;;  %v6576_v63 = vld [vmem:[#allocation55_spill] sm:$0xff] }
 0x2c4   :  { %3690 = vmatpush1.bf16.msra.mxu0 %v6566_v49  ;;  %3754 = vmatpush1.bf16.msra.mxu1 %v6567_v36  ;;  %v6577_v49 = vld [vmem:[#allocation56_spill] sm:$0xff]  ;;  %v6578_v36 = vld [vmem:[#allocation57_spill] sm:$0xff] }
 0x2c5   :  { %3692 = vmatprep.subr.bf16.mxu0 %v6568_v62  ;;  %3756 = vmatprep.subr.bf16.mxu1 %v6569_v17  ;;  %v6579_v62 = vld [vmem:[#allocation58_spill] sm:$0xff]  ;;  %v6580_v17 = vld [vmem:[#allocation59_spill] sm:$0xff] }
 0x2c8   :  { %3694 = vmatpush1.bf16.msra.mxu0 %v6570_v12  ;;  %3758 = vmatpush1.bf16.msra.mxu1 %v6571_v32  ;;  %v6581_v12 = vld [vmem:[#allocation60_spill] sm:$0xff]  ;;  %v6582_v32 = vld [vmem:[#allocation61_spill] sm:$0xff] }
 0x2c9   :  { %3696 = vmatprep.subr.bf16.mxu0 %v6572_v60  ;;  %3760 = vmatprep.subr.bf16.mxu1 %v6573_v0  ;;  %v6583_v60 = vld [vmem:[#allocation62_spill] sm:$0xff]  ;;  %v6584_v0 = vld [vmem:[#allocation63_spill] sm:$0xff] }
 0x2cc   :  { %3698 = vmatpush1.bf16.msra.mxu0 %v6574_v50  ;;  %3762 = vmatpush1.bf16.msra.mxu1 %v6575_v27  ;;  %v6585_v50 = vld [vmem:[#allocation64_spill] sm:$0xff]  ;;  %v6586_v27 = vld [vmem:[#allocation65_spill] sm:$0xff] }
 0x2cd   :  { %3700 = vmatprep.subr.bf16.mxu0 %v6576_v63  ;;  %3764 = vmatprep.subr.bf16.mxu1 %v6577_v49  ;;  %v6587_v63 = vld [vmem:[#allocation66_spill] sm:$0xff]  ;;  %v6588_v49 = vld [vmem:[#allocation67_spill] sm:$0xff] }
 0x2d0   :  { %3702 = vmatpush1.bf16.msra.mxu0 %v6578_v36  ;;  %3766 = vmatpush1.bf16.msra.mxu1 %v6579_v62  ;;  %v6589_v36 = vld [vmem:[#allocation68_spill] sm:$0xff]  ;;  %v6590_v62 = vld [vmem:[#allocation69_spill] sm:$0xff] }
 0x2d1   :  { %3704 = vmatprep.subr.bf16.mxu0 %v6580_v17  ;;  %3768 = vmatprep.subr.bf16.mxu1 %v6581_v12  ;;  %v6591_v17 = vld [vmem:[#allocation70_spill] sm:$0xff]  ;;  %v6592_v12 = vld [vmem:[#allocation71_spill] sm:$0xff] }
 0x2d4   :  { %3706 = vmatpush1.bf16.msra.mxu0 %v6582_v32  ;;  %3770 = vmatpush1.bf16.msra.mxu1 %v6583_v60  ;;  %v6593_v32 = vld [vmem:[#allocation72_spill] sm:$0xff]  ;;  %v6594_v60 = vld [vmem:[#allocation73_spill] sm:$0xff] }
 0x2d5   :  { %3708 = vmatprep.subr.bf16.mxu0 %v6584_v0  ;;  %3772 = vmatprep.subr.bf16.mxu1 %v6585_v50  ;;  %v6595_v0 = vld [vmem:[#allocation75_spill] sm:$0xff]  ;;  %v6596_v50 = vld [vmem:[#allocation74_spill] sm:$0xff] }
 0x2d8   :  { %3710 = vmatpush1.bf16.msra.mxu0 %v6586_v27  ;;  %3774 = vmatpush1.bf16.msra.mxu1 %v6587_v63  ;;  %v6597_v27 = vld [vmem:[#allocation76_spill] sm:$0xff]  ;;  %v6598_v63 = vld [vmem:[#allocation77_spill] sm:$0xff] }
 0x2d9   :  { %3712 = vmatprep.subr.bf16.mxu0 %v6588_v49  ;;  %3776 = vmatprep.subr.bf16.mxu1 %v6589_v36  ;;  %v6599_v49 = vld [vmem:[#allocation78_spill] sm:$0xff]  ;;  %v85_v36 = vpop.permute.xlu1 %84 }
 0x2dc   :  { %3714 = vmatpush1.bf16.msra.mxu0 %v6590_v62  ;;  %3778 = vmatpush1.bf16.msra.mxu1 %v6591_v17  ;;  %v6600_v62 = vld [vmem:[#allocation17_spill] sm:$0xff]  ;;  %v6601_v17 = vld [vmem:[#allocation18_spill] sm:$0xff] }
 0x2dd   :  { %3716 = vmatprep.subr.bf16.mxu0 %v6592_v12  ;;  %3780 = vmatprep.subr.bf16.mxu1 %v6593_v32  ;;  %v5596_v12 = vpop.permute.xlu1 %89 }
 0x2de   :  { %6602 = vst [vmem:[#allocation91_spill] sm:$0xff] %v5596_v12  ;;  %v6606_v12 = vld [vmem:[#allocation80_spill] sm:$0xff] }
 0x2e0   :  { %3718 = vmatpush1.bf16.msra.mxu0 %v6594_v60  ;;  %3782 = vmatpush1.bf16.msra.mxu1 %v6595_v0  ;;  %v5600_v60 = vld [vmem:[#allocation4] ss:$0 sm:$0xff] }
 0x2e1   :  { %3720 = vmatprep.subr.bf16.mxu0 %v6596_v50  ;;  %3784 = vmatprep.subr.bf16.mxu1 %v6597_v27  ;;  %v5598_v32 = vpop.permute.xlu1 %99  ;;  %6604 = vst [vmem:[#allocation93_spill] sm:$0xff] %v5600_v60 }
 0x2e2   :  { %6603 = vst [vmem:[#allocation92_spill] sm:$0xff] %v5598_v32 }
 0x2e4   :  { %3722 = vmatpush1.bf16.msra.mxu0 %v6598_v63  ;;  %3786 = vmatpush1.bf16.msra.mxu1 %v6599_v49 }
 0x2e5   :  { %3788 = vmatprep.subr.bf16.mxu0 %v6600_v62  ;;  %3820 = vmatprep.subr.bf16.mxu1 %v6601_v17  ;;  %v6605_v62 = vld [vmem:[#allocation79_spill] sm:$0xff] }
 0x2f7   :  { %v3123_v0 = vpop.xlane.xlu1 %3122 }
 0x2f8   :  { %v3149_v50 = vadd.f32 %v5600_v60, %v3123_v0 }
 0x2fa   :  { %3157 = vst.msk [vmem:[%s6228_s8] sm:$0x3] %vm3156_vm1, %v3149_v50 }
 0x35a   :  { %v1200_v49 = vpop.f32.mrb[6].mxu0  ;;  %v1271_v63 = vpop.f32.mrb[6].mxu1 }
 0x35b   :  { %v1201_v27 = vadd.f32 %v1200_v49, %v6605_v62  ;;  %v1202_v17 = vpop.f32.mrb[7].mxu0  ;;  %v1273_v48 = vpop.f32.mrb[7].mxu1  ;;  %v1272_v50 = vadd.f32 %v1271_v63, %v6608_v38  ;;  %v6609_v49 = vld [vmem:[#allocation83_spill] sm:$0xff] }
 0x35c   :  { %v1203_v56 = vadd.f32 %v1202_v17, %v6606_v12  ;;  %v1274_v25 = vadd.f32 %v1273_v48, %v6607_v1  ;;  %v136_v62 = vmul.f32 %v6609_v49, %v85_v36  ;;  %v139_v48 = vmul.f32 %v6539_v45, %v85_v36 }
 0x35d   :  { %v1276_v32 = vsub.f32 0.0, %v1201_v27  ;;  %v6610_v27 = vld [vmem:[#allocation84_spill] sm:$0xff] }
 0x35e   :  { %v1281_v6 = vsub.f32 0.0, %v1203_v56  ;;  %v1287_v0 = vsub.f32 0.0, %v1274_v25  ;;  %v137_v56 = vmul.f32 %v6610_v27, %v85_v36  ;;  %v6612_v25 = vld [vmem:[#allocation87_spill] sm:$0xff] }
 0x35f   :  { %v1277_v26 = vmul.f32 1.442695, %v1276_v32  ;;  %v6611_v32 = vld [vmem:[#allocation85_spill] sm:$0xff] }
 0x360   :  { %v1282_v57 = vmul.f32 1.442695, %v1281_v6  ;;  %v1288_v60 = vmul.f32 1.442695, %v1287_v0  ;;  %v138_v6 = vmul.f32 %v6611_v32, %v85_v36 }
 0x361   :  { %4615 = vpow2.f32 %v1277_v26  ;;  %v187_v26 = vadd.f32 %v6540_v10, %v137_v56 }
 0x362   :  { %4617 = vpow2.f32 %v1282_v57  ;;  %v186_v57 = vadd.f32 %v6612_v25, %v136_v62  ;;  %v188_v63 = vadd.f32 %v5324_v34, %v138_v6 }
 0x363   :  { %4619 = vpow2.f32 %v1288_v60 }
 0x364   :  { %4621 = vtanh.f32 %v1272_v50  ;;  %v268_v49 = vcombine.low %v186_v57, %v187_v26 }
 0x366   :  { %v276_v62 = vrot.slane %v268_v49, %v5337_v58 }
 0x36b   :  { %v4616_v16 = vpop.eup %4615 }
 0x36c   :  { %v4618_v31 = vpop.eup %4617  ;;  %v1279_v21 = vadd.f32 1.0, %v4616_v16  ;;  %v6613_v16 = vld [vmem:[#allocation90_spill] sm:$0xff] }
 0x36d   :  { %v1284_v17 = vadd.f32 1.0, %v4618_v31  ;;  %v189_v60 = vadd.f32 %v6613_v16, %v139_v48  ;;  %v4620_v0 = vpop.eup %4619 }
 0x36e   :  { %4623 = vrcp.f32 %v1279_v21  ;;  %v4622_v31 = vpop.eup %4621  ;;  %v1290_v32 = vadd.f32 1.0, %v4620_v0 }
 0x36f   :  { %4625 = vrcp.f32 %v1284_v17  ;;  %v269_v50 = vcombine.low %v188_v63, %v189_v60 }
 0x370   :  { %4627 = vrcp.f32 %v1290_v32 }
 0x371   :  { %v283_v56 = vrot.slane %v269_v50, %v5337_v58 }
 0x373   :  { %v284_v26 = vcombine.low %v276_v62, %v283_v56 }
 0x378   :  { %v4624_v38 = vpop.eup %4623 }
 0x379   :  { %v4626_v27 = vpop.eup %4625  ;;  %v1293_v1 = vmul.f32 %v4624_v38, %v4622_v31 }
 0x37a   :  { %v1292_v36 = vmul.f32 %v4626_v27, %v5481_v35  ;;  %v1367_v21 = vpop.f32.mrb[8].mxu0  ;;  %v1438_v17 = vpop.f32.mrb[8].mxu1 }
 0x37b   :  { %v1369_v10 = vpop.f32.mrb[9].mxu0  ;;  %v1440_v6 = vpop.f32.mrb[9].mxu1 }
 0x37c   :  { %v1447_v34 = vcombine.low %v1367_v21, %v1369_v10  ;;  %v1448_v48 = vcombine.low %v1438_v17, %v1440_v6  ;;  %v5622_v16 = vadd.f32 %v1293_v1, %v1292_v36  ;;  %v4628_v50 = vpop.eup %4627 }
 0x37e   :  { %v1455_v57 = vrot.slane %v1447_v34, %v5337_v58  ;;  %v1462_v38 = vrot.slane %v1448_v48, %v5337_v58  ;;  %4629 = vtanh.f32 %v5622_v16 }
 0x380   :  { %v1463_v35 = vcombine.low %v1455_v57, %v1462_v38 }
 0x382   :  { %v1465_v27 = vadd.f32 %v1463_v35, %v284_v26 }
 0x384   :  { %v1466_v63 = vsub.f32 0.0, %v1465_v27  ;;  %v1472_v49 = vrot.slane %v1465_v27, 2  ;;  %v1482_v1 = vrot.slane %v1465_v27, 6  ;;  %v1479_v17 = vrot.slane %v1465_v27, 4 }
 0x386   :  { %v1467_v60 = vmul.f32 1.442695, %v1466_v63  ;;  %v1474_v0 = vsub.f32 0.0, %v1472_v49  ;;  %v1484_v34 = vsub.f32 0.0, %v1482_v1 }
 0x388   :  { %v4630_v31 = vpop.eup %4629  ;;  %4631 = vpow2.f32 %v1467_v60  ;;  %v1475_v10 = vmul.f32 1.442695, %v1474_v0  ;;  %v1485_v32 = vmul.f32 1.442695, %v1484_v34  ;;  %v6616_v34 = vld [vmem:[#allocation21_spill] sm:$0xff] }
 0x389   :  { %v1296_v36 = vmul.f32 %v4630_v31, %v4628_v50 }
 0x38a   :  { %4633 = vpow2.f32 %v1475_v10 }
 0x38b   :  { %1298 = vst [vmem:[#allocation3 + $0x2] sm:$0x3] %v1296_v36  ;;  %1558 = vmatprep.mubr.f32.mxu0 %v1296_v36  ;;  %1629 = vmatprep.mubr.f32.mxu1 %v1296_v36  ;;  %4635 = vpow2.f32 %v1485_v32  ;;  %v6615_v36 = vld [vmem:[#allocation20_spill] sm:$0xff]  ;;  %v6617_v32 = vld [vmem:[#allocation22_spill] sm:$0xff] }
 0x392   :  { %v4632_v21 = vpop.eup %4631  ;;  %v3101_v62 = vld [vmem:[#allocation3 + $0x2] sm:$0x3] }
 0x393   :  { %v1469_v56 = vadd.f32 1.0, %v4632_v21  ;;  %v3114_v6 = vmul.f32 %v5490_v8, %v3101_v62  ;;  %v6618_v21 = vld [vmem:[#allocation23_spill] sm:$0xff]  ;;  %v6620_v62 = vld [vmem:[#allocation25_spill] sm:$0xff] }
 0x394   :  { %v4634_v48 = vpop.eup %4633 }
 0x395   :  { %4637 = vrcp.f32 %v1469_v56  ;;  %v1477_v57 = vadd.f32 1.0, %v4634_v48  ;;  %v3124_v26 = vsel %vm3120_vm0, %v3114_v6, 0.0  ;;  %v4636_v38 = vpop.eup %4635  ;;  %v6621_v56 = vld [vmem:[#allocation26_spill] sm:$0xff]  ;;  %v6622_v6 = vld [vmem:[#allocation27_spill] sm:$0xff]  ;;  %v6623_v48 = vld [vmem:[#allocation28_spill] sm:$0xff] }
 0x396   :  { %4639 = vtanh.f32 %v1479_v17  ;;  %3125 = vadd.xlane.f32.xlu0 %v3124_v26  ;;  %v1487_v60 = vadd.f32 1.0, %v4636_v38  ;;  %v6619_v17 = vld [vmem:[#allocation24_spill] sm:$0xff]  ;;  %v6625_v26 = vld [vmem:[#allocation30_spill] sm:$0xff]  ;;  %v6626_v38 = vld [vmem:[#allocation31_spill] sm:$0xff] }
 0x397   :  { %4641 = vrcp.f32 %v1477_v57  ;;  %v6624_v57 = vld [vmem:[#allocation29_spill] sm:$0xff] }
 0x398   :  { %4643 = vrcp.f32 %v1487_v60  ;;  %v6630_v60 = vld [vmem:[#allocation35_spill] sm:$0xff] }
 0x39f   :  { %v4638_v35 = vpop.eup %4637 }
 0x3a0   :  { %v4640_v63 = vpop.eup %4639 }
 0x3a1   :  { %v4642_v49 = vpop.eup %4641  ;;  %v1490_v0 = vmul.f32 %v4640_v63, %v4638_v35  ;;  %v6627_v35 = vld [vmem:[#allocation32_spill] sm:$0xff]  ;;  %v6628_v63 = vld [vmem:[#allocation33_spill] sm:$0xff] }
 0x3a2   :  { %v1489_v27 = vmul.f32 %v4642_v49, %v5495_v14  ;;  %v4644_v31 = vpop.eup %4643  ;;  %v6614_v14 = vld [vmem:[#allocation19_spill] sm:$0xff]  ;;  %v6629_v49 = vld [vmem:[#allocation34_spill] sm:$0xff] }
 0x3a4   :  { %v5630_v50 = vadd.f32 %v1490_v0, %v1489_v27  ;;  %v6631_v27 = vld [vmem:[#allocation36_spill] sm:$0xff]  ;;  %v6632_v0 = vld [vmem:[#allocation37_spill] sm:$0xff] }
 0x3a6   :  { %4645 = vtanh.f32 %v5630_v50 }
 0x3b0   :  { %v4646_v10 = vpop.eup %4645 }
 0x3b1   :  { %v1493_v1 = vmul.f32 %v4646_v10, %v4644_v31  ;;  %v6633_v31 = vld [vmem:[#allocation38_spill] sm:$0xff]  ;;  %v6634_v10 = vld [vmem:[#allocation39_spill] sm:$0xff] }
 0x3b3   :  { %1559 = vmatmul.mubr.f32.vlgmr.msra.gmra.mrb[10].mxu0 %v1493_v1  ;;  %1630 = vmatmul.mubr.f32.vlgmr.msra.gmra.mrb[10].mxu1 %v1493_v1 }
 0x3b4   :  { %3790 = vmatpush1.bf16.msra.mxu0 %v4989_v11  ;;  %3822 = vmatpush1.bf16.msra.mxu1 %v4992_v15 }
 0x3b5   :  { %3792 = vmatprep.subr.bf16.mxu0 %v4996_v19  ;;  %3824 = vmatprep.subr.bf16.mxu1 %v4998_v20 }
 0x3b6   :  { %1725 = vmatprep.mubr.f32.mxu0 %v6471_v44  ;;  %1796 = vmatprep.mubr.f32.mxu1 %v6471_v44 }
 0x3b8   :  { %3794 = vmatpush1.bf16.msra.mxu0 %v5001_v24  ;;  %3826 = vmatpush1.bf16.msra.mxu1 %v5005_v28 }
 0x3b9   :  { %3796 = vmatprep.subr.bf16.mxu0 %v5007_v29  ;;  %3828 = vmatprep.subr.bf16.mxu1 %v5009_v33 }
 0x3bc   :  { %3798 = vmatpush1.bf16.msra.mxu0 %v5012_v37  ;;  %3830 = vmatpush1.bf16.msra.mxu1 %v5016_v41 }
 0x3bd   :  { %3800 = vmatprep.subr.bf16.mxu0 %v5018_v42  ;;  %3832 = vmatprep.subr.bf16.mxu1 %v5021_v46 }
 0x3c0   :  { %3802 = vmatpush1.bf16.msra.mxu0 %v5024_v53  ;;  %3834 = vmatpush1.bf16.msra.mxu1 %v5028_v54 }
 0x3c1   :  { %3804 = vmatprep.subr.bf16.mxu0 %v5030_v55  ;;  %3836 = vmatprep.subr.bf16.mxu1 %v5033_v59 }
 0x3c4   :  { %3806 = vmatpush1.bf16.msra.mxu0 %v5036_v2  ;;  %3838 = vmatpush1.bf16.msra.mxu1 %v5040_v3 }
 0x3c5   :  { %3808 = vmatprep.subr.bf16.mxu0 %v5042_v4  ;;  %3840 = vmatprep.subr.bf16.mxu1 %v5045_v9 }
 0x3c8   :  { %3810 = vmatpush1.bf16.msra.mxu0 %v5048_v18  ;;  %3842 = vmatpush1.bf16.msra.mxu1 %v5052_v22 }
 0x3c9   :  { %3812 = vmatprep.subr.bf16.mxu0 %v5054_v23  ;;  %3844 = vmatprep.subr.bf16.mxu1 %v5060_v30 }
 0x3cc   :  { %3814 = vmatpush1.bf16.msra.mxu0 %v5066_v39  ;;  %3846 = vmatpush1.bf16.msra.mxu1 %v5070_v40 }
 0x3cd   :  { %3816 = vmatprep.subr.bf16.mxu0 %v5072_v43  ;;  %3848 = vmatprep.subr.bf16.mxu1 %v5075_v47 }
 0x3d0   :  { %3818 = vmatpush1.bf16.msra.mxu0 %v5081_v51  ;;  %3850 = vmatpush1.bf16.msra.mxu1 %v5085_v52 }
 0x3d1   :  { %3852 = vmatprep.subr.bf16.mxu0 %v5092_v61  ;;  %3916 = vmatprep.subr.bf16.mxu1 %v5095_v5 }
 0x3d3   :  { %1726 = vmatmul.mubr.f32.vlgmr.msra.gmra.mrb[12].mxu0 %v1493_v1  ;;  %1797 = vmatmul.mubr.f32.vlgmr.msra.gmra.mrb[12].mxu1 %v1493_v1  ;;  %v6635_v1 = vld [vmem:[#allocation40_spill] sm:$0xff] }
 0x3d4   :  { %3854 = vmatpush1.bf16.msra.mxu0 %v5097_v7  ;;  %3918 = vmatpush1.bf16.msra.mxu1 %v5100_v13 }
 0x3d5   :  { %3856 = vmatprep.subr.bf16.mxu0 %v6614_v14  ;;  %3920 = vmatprep.subr.bf16.mxu1 %v6615_v36 }
 0x3d8   :  { %3858 = vmatpush1.bf16.msra.mxu0 %v6616_v34  ;;  %3922 = vmatpush1.bf16.msra.mxu1 %v6617_v32 }
 0x3d9   :  { %3860 = vmatprep.subr.bf16.mxu0 %v6618_v21  ;;  %3924 = vmatprep.subr.bf16.mxu1 %v6619_v17  ;;  %v6681_v17 = vld [vmem:[#allocation81_spill] sm:$0xff] }
 0x3dc   :  { %3862 = vmatpush1.bf16.msra.mxu0 %v6620_v62  ;;  %3926 = vmatpush1.bf16.msra.mxu1 %v6621_v56  ;;  %v6680_v56 = vld [vmem:[#allocation82_spill] sm:$0xff] }
 0x3dd   :  { %3864 = vmatprep.subr.bf16.mxu0 %v6622_v6  ;;  %3928 = vmatprep.subr.bf16.mxu1 %v6623_v48 }
 0x3e0   :  { %3866 = vmatpush1.bf16.msra.mxu0 %v6624_v57  ;;  %3930 = vmatpush1.bf16.msra.mxu1 %v6625_v26  ;;  %v6636_v26 = vld [vmem:[#allocation41_spill] sm:$0xff] }
 0x3e1   :  { %3868 = vmatprep.subr.bf16.mxu0 %v6626_v38  ;;  %3932 = vmatprep.subr.bf16.mxu1 %v6627_v35  ;;  %v6637_v38 = vld [vmem:[#allocation42_spill] sm:$0xff]  ;;  %v6638_v35 = vld [vmem:[#allocation43_spill] sm:$0xff] }
 0x3e4   :  { %3870 = vmatpush1.bf16.msra.mxu0 %v6628_v63  ;;  %3934 = vmatpush1.bf16.msra.mxu1 %v6629_v49  ;;  %v6639_v63 = vld [vmem:[#allocation44_spill] sm:$0xff]  ;;  %v6640_v49 = vld [vmem:[#allocation45_spill] sm:$0xff] }
 0x3e5   :  { %3872 = vmatprep.subr.bf16.mxu0 %v6630_v60  ;;  %3936 = vmatprep.subr.bf16.mxu1 %v6631_v27  ;;  %v6641_v60 = vld [vmem:[#allocation46_spill] sm:$0xff]  ;;  %v6642_v27 = vld [vmem:[#allocation47_spill] sm:$0xff] }
 0x3e8   :  { %3874 = vmatpush1.bf16.msra.mxu0 %v6632_v0  ;;  %3938 = vmatpush1.bf16.msra.mxu1 %v6633_v31  ;;  %v6643_v0 = vld [vmem:[#allocation48_spill] sm:$0xff]  ;;  %v6644_v31 = vld [vmem:[#allocation49_spill] sm:$0xff] }
 0x3e9   :  { %3876 = vmatprep.subr.bf16.mxu0 %v6634_v10  ;;  %3940 = vmatprep.subr.bf16.mxu1 %v6635_v1  ;;  %v6645_v10 = vld [vmem:[#allocation50_spill] sm:$0xff]  ;;  %v6646_v1 = vld [vmem:[#allocation51_spill] sm:$0xff] }
 0x3ec   :  { %3878 = vmatpush1.bf16.msra.mxu0 %v6636_v26  ;;  %3942 = vmatpush1.bf16.msra.mxu1 %v6637_v38  ;;  %v6647_v26 = vld [vmem:[#allocation52_spill] sm:$0xff]  ;;  %v6648_v38 = vld [vmem:[#allocation53_spill] sm:$0xff] }
 0x3ed   :  { %3880 = vmatprep.subr.bf16.mxu0 %v6638_v35  ;;  %3944 = vmatprep.subr.bf16.mxu1 %v6639_v63  ;;  %v6649_v35 = vld [vmem:[#allocation54_spill] sm:$0xff]  ;;  %v6650_v63 = vld [vmem:[#allocation55_spill] sm:$0xff] }
 0x3f0   :  { %3882 = vmatpush1.bf16.msra.mxu0 %v6640_v49  ;;  %3946 = vmatpush1.bf16.msra.mxu1 %v6641_v60  ;;  %v6651_v49 = vld [vmem:[#allocation56_spill] sm:$0xff]  ;;  %v6652_v60 = vld [vmem:[#allocation57_spill] sm:$0xff] }
 0x3f1   :  { %3884 = vmatprep.subr.bf16.mxu0 %v6642_v27  ;;  %3948 = vmatprep.subr.bf16.mxu1 %v6643_v0  ;;  %v6653_v27 = vld [vmem:[#allocation58_spill] sm:$0xff]  ;;  %v6654_v0 = vld [vmem:[#allocation59_spill] sm:$0xff] }
 0x3f4   :  { %3886 = vmatpush1.bf16.msra.mxu0 %v6644_v31  ;;  %3950 = vmatpush1.bf16.msra.mxu1 %v6645_v10  ;;  %v6655_v31 = vld [vmem:[#allocation60_spill] sm:$0xff]  ;;  %v6656_v10 = vld [vmem:[#allocation61_spill] sm:$0xff] }
 0x3f5   :  { %3888 = vmatprep.subr.bf16.mxu0 %v6646_v1  ;;  %3952 = vmatprep.subr.bf16.mxu1 %v6647_v26  ;;  %v6657_v1 = vld [vmem:[#allocation62_spill] sm:$0xff]  ;;  %v6658_v26 = vld [vmem:[#allocation63_spill] sm:$0xff] }
 0x3f8   :  { %3890 = vmatpush1.bf16.msra.mxu0 %v6648_v38  ;;  %3954 = vmatpush1.bf16.msra.mxu1 %v6649_v35  ;;  %v6659_v38 = vld [vmem:[#allocation64_spill] sm:$0xff]  ;;  %v6660_v35 = vld [vmem:[#allocation65_spill] sm:$0xff] }
 0x3f9   :  { %3892 = vmatprep.subr.bf16.mxu0 %v6650_v63  ;;  %3956 = vmatprep.subr.bf16.mxu1 %v6651_v49  ;;  %v6661_v63 = vld [vmem:[#allocation66_spill] sm:$0xff]  ;;  %v6662_v49 = vld [vmem:[#allocation67_spill] sm:$0xff] }
 0x3fc   :  { %3894 = vmatpush1.bf16.msra.mxu0 %v6652_v60  ;;  %3958 = vmatpush1.bf16.msra.mxu1 %v6653_v27  ;;  %v6663_v60 = vld [vmem:[#allocation68_spill] sm:$0xff]  ;;  %v6664_v27 = vld [vmem:[#allocation69_spill] sm:$0xff] }
 0x3fd   :  { %3896 = vmatprep.subr.bf16.mxu0 %v6654_v0  ;;  %3960 = vmatprep.subr.bf16.mxu1 %v6655_v31  ;;  %v6665_v0 = vld [vmem:[#allocation70_spill] sm:$0xff]  ;;  %v6666_v31 = vld [vmem:[#allocation71_spill] sm:$0xff] }
 0x400   :  { %3898 = vmatpush1.bf16.msra.mxu0 %v6656_v10  ;;  %3962 = vmatpush1.bf16.msra.mxu1 %v6657_v1  ;;  %v6667_v10 = vld [vmem:[#allocation72_spill] sm:$0xff]  ;;  %v6668_v1 = vld [vmem:[#allocation73_spill] sm:$0xff] }
 0x401   :  { %3900 = vmatprep.subr.bf16.mxu0 %v6658_v26  ;;  %3964 = vmatprep.subr.bf16.mxu1 %v6659_v38  ;;  %v6669_v26 = vld [vmem:[#allocation75_spill] sm:$0xff]  ;;  %v6670_v38 = vld [vmem:[#allocation74_spill] sm:$0xff] }
 0x404   :  { %3902 = vmatpush1.bf16.msra.mxu0 %v6660_v35  ;;  %3966 = vmatpush1.bf16.msra.mxu1 %v6661_v63  ;;  %v6671_v35 = vld [vmem:[#allocation76_spill] sm:$0xff]  ;;  %v6672_v63 = vld [vmem:[#allocation77_spill] sm:$0xff] }
 0x405   :  { %3904 = vmatprep.subr.bf16.mxu0 %v6662_v49  ;;  %3968 = vmatprep.subr.bf16.mxu1 %v6663_v60  ;;  %v6673_v49 = vld [vmem:[#allocation78_spill] sm:$0xff]  ;;  %v6674_v60 = vld [vmem:[#allocation17_spill] sm:$0xff] }
 0x408   :  { %3906 = vmatpush1.bf16.msra.mxu0 %v6664_v27  ;;  %3970 = vmatpush1.bf16.msra.mxu1 %v6665_v0  ;;  %v6675_v27 = vld [vmem:[#allocation18_spill] sm:$0xff]  ;;  %v5731_v0 = vpop.permute.xlu0 %94 }
 0x409   :  { %3908 = vmatprep.subr.bf16.mxu0 %v6666_v31  ;;  %3972 = vmatprep.subr.bf16.mxu1 %v6667_v10  ;;  %6676 = vst [vmem:[#allocation87_spill] sm:$0xff] %v5731_v0 }
 0x40c   :  { %3910 = vmatpush1.bf16.msra.mxu0 %v6668_v1  ;;  %3974 = vmatpush1.bf16.msra.mxu1 %v6669_v26  ;;  %v5733_v31 = vpop.permute.xlu0 %104  ;;  %v6678_v1 = vld [vmem:[#allocation93_spill] sm:$0xff] }
 0x40d   :  { %3912 = vmatprep.subr.bf16.mxu0 %v6670_v38  ;;  %3976 = vmatprep.subr.bf16.mxu1 %v6671_v35  ;;  %6677 = vst [vmem:[#allocation19_spill] sm:$0xff] %v5733_v31  ;;  %v6679_v38 = vld [vmem:[#allocation79_spill] sm:$0xff] }
 0x410   :  { %3914 = vmatpush1.bf16.msra.mxu0 %v6672_v63  ;;  %3978 = vmatpush1.bf16.msra.mxu1 %v6673_v49 }
 0x411   :  { %3980 = vmatprep.subr.bf16.mxu0 %v6674_v60  ;;  %4012 = vmatprep.subr.bf16.mxu1 %v6675_v27 }
 0x423   :  { %v3126_v10 = vpop.xlane.xlu0 %3125 }
 0x424   :  { %v3150_v57 = vadd.f32 %v6678_v1, %v3126_v10 }
 0x426   :  { %3158 = vst.msk [vmem:[%s6228_s8 + $0x2] sm:$0x3] %vm3156_vm1, %v3150_v57 }
 0x486   :  { %v1560_v35 = vpop.f32.mrb[10].mxu0  ;;  %v1631_v63 = vpop.f32.mrb[10].mxu1 }
 0x487   :  { %v1561_v49 = vadd.f32 %v1560_v35, %v6679_v38  ;;  %v1562_v26 = vpop.f32.mrb[11].mxu0  ;;  %v1633_v60 = vpop.f32.mrb[11].mxu1  ;;  %v1632_v57 = vadd.f32 %v1631_v63, %v6681_v17 }
 0x488   :  { %v1563_v27 = vadd.f32 %v1562_v26, %v6606_v12  ;;  %v1634_v62 = vadd.f32 %v1633_v60, %v6680_v56  ;;  %v6682_v26 = vld [vmem:[#allocation91_spill] sm:$0xff] }
 0x489   :  { %v1636_v48 = vsub.f32 0.0, %v1561_v49  ;;  %v6683_v49 = vld [vmem:[#allocation83_spill] sm:$0xff]  ;;  %v143_v63 = vmul.f32 %v6539_v45, %v6682_v26 }
 0x48a   :  { %v1641_v0 = vsub.f32 0.0, %v1563_v27  ;;  %v1647_v10 = vsub.f32 0.0, %v1634_v62  ;;  %v140_v27 = vmul.f32 %v6683_v49, %v6682_v26 }
 0x48b   :  { %v1637_v6 = vmul.f32 1.442695, %v1636_v48  ;;  %v6684_v48 = vld [vmem:[#allocation84_spill] sm:$0xff] }
 0x48c   :  { %v1642_v31 = vmul.f32 1.442695, %v1641_v0  ;;  %v1648_v1 = vmul.f32 1.442695, %v1647_v10  ;;  %v141_v0 = vmul.f32 %v6684_v48, %v6682_v26  ;;  %v190_v60 = vadd.f32 %v6612_v25, %v140_v27 }
 0x48d   :  { %4647 = vpow2.f32 %v1637_v6  ;;  %v6685_v6 = vld [vmem:[#allocation85_spill] sm:$0xff] }
 0x48e   :  { %4649 = vpow2.f32 %v1642_v31  ;;  %v142_v62 = vmul.f32 %v6685_v6, %v6682_v26 }
 0x48f   :  { %4651 = vpow2.f32 %v1648_v1  ;;  %v6687_v1 = vld [vmem:[#allocation89_spill] sm:$0xff] }
 0x490   :  { %4653 = vtanh.f32 %v1632_v57 }
 0x497   :  { %v4648_v21 = vpop.eup %4647 }
 0x498   :  { %v4650_v32 = vpop.eup %4649  ;;  %v1639_v34 = vadd.f32 1.0, %v4648_v21  ;;  %v6686_v21 = vld [vmem:[#allocation88_spill] sm:$0xff] }
 0x499   :  { %v1644_v35 = vadd.f32 1.0, %v4650_v32  ;;  %v191_v31 = vadd.f32 %v6686_v21, %v141_v0  ;;  %v192_v32 = vadd.f32 %v6687_v1, %v142_v62  ;;  %v4652_v57 = vpop.eup %4651 }
 0x49a   :  { %4655 = vrcp.f32 %v1639_v34  ;;  %v6688_v34 = vld [vmem:[#allocation90_spill] sm:$0xff]  ;;  %v4654_v49 = vpop.eup %4653  ;;  %v1650_v38 = vadd.f32 1.0, %v4652_v57 }
 0x49b   :  { %4657 = vrcp.f32 %v1644_v35  ;;  %v193_v10 = vadd.f32 %v6688_v34, %v143_v63  ;;  %v285_v17 = vcombine.low %v190_v60, %v191_v31 }
 0x49c   :  { %4659 = vrcp.f32 %v1650_v38 }
 0x49d   :  { %v286_v48 = vcombine.low %v192_v32, %v193_v10  ;;  %v293_v27 = vrot.slane %v285_v17, %v5337_v58 }
 0x49f   :  { %v300_v62 = vrot.slane %v286_v48, %v5337_v58 }
 0x4a4   :  { %v4656_v56 = vpop.eup %4655 }
 0x4a5   :  { %v4658_v35 = vpop.eup %4657  ;;  %v1653_v12 = vmul.f32 %v4656_v56, %v4654_v49 }
 0x4a6   :  { %v1652_v6 = vmul.f32 %v4658_v35, %v5622_v16  ;;  %v1727_v36 = vpop.f32.mrb[12].mxu0  ;;  %v1798_v26 = vpop.f32.mrb[12].mxu1  ;;  %v301_v16 = vcombine.low %v293_v27, %v300_v62 }
 0x4a7   :  { %v1729_v45 = vpop.f32.mrb[13].mxu0  ;;  %v1800_v0 = vpop.f32.mrb[13].mxu1 }
 0x4a8   :  { %v1807_v21 = vcombine.low %v1727_v36, %v1729_v45  ;;  %v1808_v63 = vcombine.low %v1798_v26, %v1800_v0  ;;  %v5759_v34 = vadd.f32 %v1653_v12, %v1652_v6  ;;  %v4660_v45 = vpop.eup %4659 }
 0x4aa   :  { %v1815_v60 = vrot.slane %v1807_v21, %v5337_v58  ;;  %v1822_v56 = vrot.slane %v1808_v63, %v5337_v58  ;;  %4661 = vtanh.f32 %v5759_v34 }
 0x4ac   :  { %v1823_v49 = vcombine.low %v1815_v60, %v1822_v56 }
 0x4ae   :  { %v1825_v31 = vadd.f32 %v1823_v49, %v301_v16 }
 0x4b0   :  { %v1826_v32 = vsub.f32 0.0, %v1825_v31  ;;  %v1832_v10 = vrot.slane %v1825_v31, 2  ;;  %v1842_v12 = vrot.slane %v1825_v31, 6  ;;  %v1839_v26 = vrot.slane %v1825_v31, 4 }
 0x4b2   :  { %v1827_v17 = vmul.f32 1.442695, %v1826_v32  ;;  %v1834_v57 = vsub.f32 0.0, %v1832_v10  ;;  %v1844_v38 = vsub.f32 0.0, %v1842_v12  ;;  %v6690_v12 = vld [vmem:[#allocation21_spill] sm:$0xff] }
 0x4b4   :  { %v4662_v36 = vpop.eup %4661  ;;  %4663 = vpow2.f32 %v1827_v17  ;;  %v1835_v48 = vmul.f32 1.442695, %v1834_v57  ;;  %v1845_v21 = vmul.f32 1.442695, %v1844_v38  ;;  %v6692_v38 = vld [vmem:[#allocation23_spill] sm:$0xff] }
 0x4b5   :  { %v1656_v6 = vmul.f32 %v4662_v36, %v4660_v45 }
 0x4b6   :  { %4665 = vpow2.f32 %v1835_v48 }
 0x4b7   :  { %1658 = vst [vmem:[#allocation3 + $0x4] sm:$0x3] %v1656_v6  ;;  %1918 = vmatprep.mubr.f32.mxu0 %v1656_v6  ;;  %1989 = vmatprep.mubr.f32.mxu1 %v1656_v6  ;;  %4667 = vpow2.f32 %v1845_v21  ;;  %v6691_v6 = vld [vmem:[#allocation22_spill] sm:$0xff]  ;;  %v6693_v21 = vld [vmem:[#allocation24_spill] sm:$0xff] }
 0x4be   :  { %v4664_v35 = vpop.eup %4663  ;;  %v3102_v27 = vld [vmem:[#allocation3 + $0x4] sm:$0x3] }
 0x4bf   :  { %v1829_v0 = vadd.f32 1.0, %v4664_v35  ;;  %v3115_v62 = vmul.f32 %v5490_v8, %v3102_v27  ;;  %v6694_v35 = vld [vmem:[#allocation25_spill] sm:$0xff]  ;;  %v6696_v27 = vld [vmem:[#allocation27_spill] sm:$0xff] }
 0x4c0   :  { %v4666_v63 = vpop.eup %4665 }
 0x4c1   :  { %4669 = vrcp.f32 %v1829_v0  ;;  %v1837_v60 = vadd.f32 1.0, %v4666_v63  ;;  %v3127_v56 = vsel %vm3120_vm0, %v3115_v62, 0.0  ;;  %v4668_v16 = vpop.eup %4667  ;;  %v6697_v0 = vld [vmem:[#allocation28_spill] sm:$0xff]  ;;  %v6698_v62 = vld [vmem:[#allocation29_spill] sm:$0xff]  ;;  %v6699_v63 = vld [vmem:[#allocation30_spill] sm:$0xff] }
 0x4c2   :  { %4671 = vtanh.f32 %v1839_v26  ;;  %3128 = vadd.xlane.f32.xlu0 %v3127_v56  ;;  %v1847_v17 = vadd.f32 1.0, %v4668_v16  ;;  %v6695_v26 = vld [vmem:[#allocation26_spill] sm:$0xff]  ;;  %v6701_v56 = vld [vmem:[#allocation32_spill] sm:$0xff]  ;;  %v6702_v16 = vld [vmem:[#allocation33_spill] sm:$0xff] }
 0x4c3   :  { %4673 = vrcp.f32 %v1837_v60  ;;  %v6700_v60 = vld [vmem:[#allocation31_spill] sm:$0xff] }
 0x4c4   :  { %4675 = vrcp.f32 %v1847_v17  ;;  %v6706_v17 = vld [vmem:[#allocation37_spill] sm:$0xff] }
 0x4cb   :  { %v4670_v49 = vpop.eup %4669 }
 0x4cc   :  { %v4672_v32 = vpop.eup %4671 }
 0x4cd   :  { %v4674_v10 = vpop.eup %4673  ;;  %v1850_v57 = vmul.f32 %v4672_v32, %v4670_v49  ;;  %v6703_v49 = vld [vmem:[#allocation34_spill] sm:$0xff]  ;;  %v6704_v32 = vld [vmem:[#allocation35_spill] sm:$0xff] }
 0x4ce   :  { %v1849_v31 = vmul.f32 %v4674_v10, %v5630_v50  ;;  %v4676_v8 = vpop.eup %4675  ;;  %v6689_v50 = vld [vmem:[#allocation20_spill] sm:$0xff] }
 0x4cf   :  { %v6705_v10 = vld [vmem:[#allocation36_spill] sm:$0xff] }
 0x4d0   :  { %v5767_v45 = vadd.f32 %v1850_v57, %v1849_v31  ;;  %v6707_v31 = vld [vmem:[#allocation38_spill] sm:$0xff]  ;;  %v6708_v57 = vld [vmem:[#allocation39_spill] sm:$0xff] }
 0x4d2   :  { %4677 = vtanh.f32 %v5767_v45 }
 0x4dc   :  { %v4678_v36 = vpop.eup %4677 }
 0x4dd   :  { %v1853_v48 = vmul.f32 %v4678_v36, %v4676_v8  ;;  %v6709_v8 = vld [vmem:[#allocation40_spill] sm:$0xff]  ;;  %v6710_v36 = vld [vmem:[#allocation41_spill] sm:$0xff] }
 0x4df   :  { %1919 = vmatmul.mubr.f32.vlgmr.msra.gmra.mrb[14].mxu0 %v1853_v48  ;;  %1990 = vmatmul.mubr.f32.vlgmr.msra.gmra.mrb[14].mxu1 %v1853_v48 }
 0x4e0   :  { %3982 = vmatpush1.bf16.msra.mxu0 %v4989_v11  ;;  %4014 = vmatpush1.bf16.msra.mxu1 %v4992_v15 }
 0x4e1   :  { %3984 = vmatprep.subr.bf16.mxu0 %v4996_v19  ;;  %4016 = vmatprep.subr.bf16.mxu1 %v4998_v20 }
 0x4e2   :  { %2085 = vmatprep.mubr.f32.mxu0 %v6471_v44  ;;  %2156 = vmatprep.mubr.f32.mxu1 %v6471_v44 }
 0x4e4   :  { %3986 = vmatpush1.bf16.msra.mxu0 %v5001_v24  ;;  %4018 = vmatpush1.bf16.msra.mxu1 %v5005_v28 }
 0x4e5   :  { %3988 = vmatprep.subr.bf16.mxu0 %v5007_v29  ;;  %4020 = vmatprep.subr.bf16.mxu1 %v5009_v33 }
 0x4e8   :  { %3990 = vmatpush1.bf16.msra.mxu0 %v5012_v37  ;;  %4022 = vmatpush1.bf16.msra.mxu1 %v5016_v41 }
 0x4e9   :  { %3992 = vmatprep.subr.bf16.mxu0 %v5018_v42  ;;  %4024 = vmatprep.subr.bf16.mxu1 %v5021_v46 }
 0x4ec   :  { %3994 = vmatpush1.bf16.msra.mxu0 %v5024_v53  ;;  %4026 = vmatpush1.bf16.msra.mxu1 %v5028_v54 }
 0x4ed   :  { %3996 = vmatprep.subr.bf16.mxu0 %v5030_v55  ;;  %4028 = vmatprep.subr.bf16.mxu1 %v5033_v59 }
 0x4f0   :  { %3998 = vmatpush1.bf16.msra.mxu0 %v5036_v2  ;;  %4030 = vmatpush1.bf16.msra.mxu1 %v5040_v3 }
 0x4f1   :  { %4000 = vmatprep.subr.bf16.mxu0 %v5042_v4  ;;  %4032 = vmatprep.subr.bf16.mxu1 %v5045_v9 }
 0x4f4   :  { %4002 = vmatpush1.bf16.msra.mxu0 %v5048_v18  ;;  %4034 = vmatpush1.bf16.msra.mxu1 %v5052_v22 }
 0x4f5   :  { %4004 = vmatprep.subr.bf16.mxu0 %v5054_v23  ;;  %4036 = vmatprep.subr.bf16.mxu1 %v5060_v30 }
 0x4f8   :  { %4006 = vmatpush1.bf16.msra.mxu0 %v5066_v39  ;;  %4038 = vmatpush1.bf16.msra.mxu1 %v5070_v40 }
 0x4f9   :  { %4008 = vmatprep.subr.bf16.mxu0 %v5072_v43  ;;  %4040 = vmatprep.subr.bf16.mxu1 %v5075_v47 }
 0x4fc   :  { %4010 = vmatpush1.bf16.msra.mxu0 %v5081_v51  ;;  %4042 = vmatpush1.bf16.msra.mxu1 %v5085_v52 }
 0x4fd   :  { %4044 = vmatprep.subr.bf16.mxu0 %v5092_v61  ;;  %4108 = vmatprep.subr.bf16.mxu1 %v5095_v5 }
 0x4ff   :  { %2086 = vmatmul.mubr.f32.vlgmr.msra.gmra.mrb[16].mxu0 %v1853_v48  ;;  %2157 = vmatmul.mubr.f32.vlgmr.msra.gmra.mrb[16].mxu1 %v1853_v48  ;;  %v6711_v48 = vld [vmem:[#allocation42_spill] sm:$0xff] }
 0x500   :  { %4046 = vmatpush1.bf16.msra.mxu0 %v5097_v7  ;;  %4110 = vmatpush1.bf16.msra.mxu1 %v5100_v13 }
 0x501   :  { %4048 = vmatprep.subr.bf16.mxu0 %v6614_v14  ;;  %4112 = vmatprep.subr.bf16.mxu1 %v6689_v50 }
 0x504   :  { %4050 = vmatpush1.bf16.msra.mxu0 %v6690_v12  ;;  %4114 = vmatpush1.bf16.msra.mxu1 %v6691_v6 }
 0x505   :  { %4052 = vmatprep.subr.bf16.mxu0 %v6692_v38  ;;  %4116 = vmatprep.subr.bf16.mxu1 %v6693_v21 }
 0x508   :  { %4054 = vmatpush1.bf16.msra.mxu0 %v6694_v35  ;;  %4118 = vmatpush1.bf16.msra.mxu1 %v6695_v26  ;;  %v6754_v35 = vld [vmem:[#allocation81_spill] sm:$0xff] }
 0x509   :  { %4056 = vmatprep.subr.bf16.mxu0 %v6696_v27  ;;  %4120 = vmatprep.subr.bf16.mxu1 %v6697_v0  ;;  %v6753_v27 = vld [vmem:[#allocation82_spill] sm:$0xff] }
 0x50c   :  { %4058 = vmatpush1.bf16.msra.mxu0 %v6698_v62  ;;  %4122 = vmatpush1.bf16.msra.mxu1 %v6699_v63  ;;  %v6752_v63 = vld [vmem:[#allocation80_spill] sm:$0xff] }
 0x50d   :  { %4060 = vmatprep.subr.bf16.mxu0 %v6700_v60  ;;  %4124 = vmatprep.subr.bf16.mxu1 %v6701_v56  ;;  %v6712_v56 = vld [vmem:[#allocation43_spill] sm:$0xff] }
 0x510   :  { %4062 = vmatpush1.bf16.msra.mxu0 %v6702_v16  ;;  %4126 = vmatpush1.bf16.msra.mxu1 %v6703_v49  ;;  %v6713_v16 = vld [vmem:[#allocation44_spill] sm:$0xff]  ;;  %v6714_v49 = vld [vmem:[#allocation45_spill] sm:$0xff] }
 0x511   :  { %4064 = vmatprep.subr.bf16.mxu0 %v6704_v32  ;;  %4128 = vmatprep.subr.bf16.mxu1 %v6705_v10  ;;  %v6715_v32 = vld [vmem:[#allocation46_spill] sm:$0xff]  ;;  %v6716_v10 = vld [vmem:[#allocation47_spill] sm:$0xff] }
 0x514   :  { %4066 = vmatpush1.bf16.msra.mxu0 %v6706_v17  ;;  %4130 = vmatpush1.bf16.msra.mxu1 %v6707_v31  ;;  %v6717_v17 = vld [vmem:[#allocation48_spill] sm:$0xff]  ;;  %v6718_v31 = vld [vmem:[#allocation49_spill] sm:$0xff] }
 0x515   :  { %4068 = vmatprep.subr.bf16.mxu0 %v6708_v57  ;;  %4132 = vmatprep.subr.bf16.mxu1 %v6709_v8  ;;  %v6719_v57 = vld [vmem:[#allocation50_spill] sm:$0xff]  ;;  %v6720_v8 = vld [vmem:[#allocation51_spill] sm:$0xff] }
 0x518   :  { %4070 = vmatpush1.bf16.msra.mxu0 %v6710_v36  ;;  %4134 = vmatpush1.bf16.msra.mxu1 %v6711_v48  ;;  %v6721_v36 = vld [vmem:[#allocation52_spill] sm:$0xff]  ;;  %v6722_v48 = vld [vmem:[#allocation53_spill] sm:$0xff] }
 0x519   :  { %4072 = vmatprep.subr.bf16.mxu0 %v6712_v56  ;;  %4136 = vmatprep.subr.bf16.mxu1 %v6713_v16  ;;  %v6723_v56 = vld [vmem:[#allocation54_spill] sm:$0xff]  ;;  %v6724_v16 = vld [vmem:[#allocation55_spill] sm:$0xff] }
 0x51c   :  { %4074 = vmatpush1.bf16.msra.mxu0 %v6714_v49  ;;  %4138 = vmatpush1.bf16.msra.mxu1 %v6715_v32  ;;  %v6725_v49 = vld [vmem:[#allocation56_spill] sm:$0xff]  ;;  %v6726_v32 = vld [vmem:[#allocation57_spill] sm:$0xff] }
 0x51d   :  { %4076 = vmatprep.subr.bf16.mxu0 %v6716_v10  ;;  %4140 = vmatprep.subr.bf16.mxu1 %v6717_v17  ;;  %v6727_v10 = vld [vmem:[#allocation58_spill] sm:$0xff]  ;;  %v6728_v17 = vld [vmem:[#allocation59_spill] sm:$0xff] }
 0x520   :  { %4078 = vmatpush1.bf16.msra.mxu0 %v6718_v31  ;;  %4142 = vmatpush1.bf16.msra.mxu1 %v6719_v57  ;;  %v6729_v31 = vld [vmem:[#allocation60_spill] sm:$0xff]  ;;  %v6730_v57 = vld [vmem:[#allocation61_spill] sm:$0xff] }
 0x521   :  { %4080 = vmatprep.subr.bf16.mxu0 %v6720_v8  ;;  %4144 = vmatprep.subr.bf16.mxu1 %v6721_v36  ;;  %v6731_v8 = vld [vmem:[#allocation62_spill] sm:$0xff]  ;;  %v6732_v36 = vld [vmem:[#allocation63_spill] sm:$0xff] }
 0x524   :  { %4082 = vmatpush1.bf16.msra.mxu0 %v6722_v48  ;;  %4146 = vmatpush1.bf16.msra.mxu1 %v6723_v56  ;;  %v6733_v48 = vld [vmem:[#allocation64_spill] sm:$0xff]  ;;  %v6734_v56 = vld [vmem:[#allocation65_spill] sm:$0xff] }
 0x525   :  { %4084 = vmatprep.subr.bf16.mxu0 %v6724_v16  ;;  %4148 = vmatprep.subr.bf16.mxu1 %v6725_v49  ;;  %v6735_v16 = vld [vmem:[#allocation66_spill] sm:$0xff]  ;;  %v6736_v49 = vld [vmem:[#allocation67_spill] sm:$0xff] }
 0x528   :  { %4086 = vmatpush1.bf16.msra.mxu0 %v6726_v32  ;;  %4150 = vmatpush1.bf16.msra.mxu1 %v6727_v10  ;;  %v6737_v32 = vld [vmem:[#allocation68_spill] sm:$0xff]  ;;  %v6738_v10 = vld [vmem:[#allocation69_spill] sm:$0xff] }
 0x529   :  { %4088 = vmatprep.subr.bf16.mxu0 %v6728_v17  ;;  %4152 = vmatprep.subr.bf16.mxu1 %v6729_v31  ;;  %v6739_v17 = vld [vmem:[#allocation70_spill] sm:$0xff]  ;;  %v6740_v31 = vld [vmem:[#allocation71_spill] sm:$0xff] }
 0x52c   :  { %4090 = vmatpush1.bf16.msra.mxu0 %v6730_v57  ;;  %4154 = vmatpush1.bf16.msra.mxu1 %v6731_v8  ;;  %v6741_v57 = vld [vmem:[#allocation72_spill] sm:$0xff]  ;;  %v6742_v8 = vld [vmem:[#allocation73_spill] sm:$0xff] }
 0x52d   :  { %4092 = vmatprep.subr.bf16.mxu0 %v6732_v36  ;;  %4156 = vmatprep.subr.bf16.mxu1 %v6733_v48  ;;  %v6743_v36 = vld [vmem:[#allocation75_spill] sm:$0xff]  ;;  %v6744_v48 = vld [vmem:[#allocation74_spill] sm:$0xff] }
 0x530   :  { %4094 = vmatpush1.bf16.msra.mxu0 %v6734_v56  ;;  %4158 = vmatpush1.bf16.msra.mxu1 %v6735_v16  ;;  %v6745_v56 = vld [vmem:[#allocation76_spill] sm:$0xff]  ;;  %v6746_v16 = vld [vmem:[#allocation77_spill] sm:$0xff] }
 0x531   :  { %4096 = vmatprep.subr.bf16.mxu0 %v6736_v49  ;;  %4160 = vmatprep.subr.bf16.mxu1 %v6737_v32  ;;  %v6747_v49 = vld [vmem:[#allocation78_spill] sm:$0xff]  ;;  %v6748_v32 = vld [vmem:[#allocation17_spill] sm:$0xff] }
 0x534   :  { %4098 = vmatpush1.bf16.msra.mxu0 %v6738_v10  ;;  %4162 = vmatpush1.bf16.msra.mxu1 %v6739_v17  ;;  %v6749_v10 = vld [vmem:[#allocation18_spill] sm:$0xff] }
 0x535   :  { %4100 = vmatprep.subr.bf16.mxu0 %v6740_v31  ;;  %4164 = vmatprep.subr.bf16.mxu1 %v6741_v57  ;;  %v6750_v31 = vld [vmem:[#allocation93_spill] sm:$0xff] }
 0x538   :  { %4102 = vmatpush1.bf16.msra.mxu0 %v6742_v8  ;;  %4166 = vmatpush1.bf16.msra.mxu1 %v6743_v36  ;;  %v6751_v8 = vld [vmem:[#allocation79_spill] sm:$0xff] }
 0x539   :  { %4104 = vmatprep.subr.bf16.mxu0 %v6744_v48  ;;  %4168 = vmatprep.subr.bf16.mxu1 %v6745_v56 }
 0x53c   :  { %4106 = vmatpush1.bf16.msra.mxu0 %v6746_v16  ;;  %4170 = vmatpush1.bf16.msra.mxu1 %v6747_v49 }
 0x53d   :  { %4172 = vmatprep.subr.bf16.mxu0 %v6748_v32  ;;  %4204 = vmatprep.subr.bf16.mxu1 %v6749_v10 }
 0x54f   :  { %v3129_v17 = vpop.xlane.xlu0 %3128 }
 0x550   :  { %v3151_v60 = vadd.f32 %v6750_v31, %v3129_v17 }
 0x552   :  { %3159 = vst.msk [vmem:[%s6228_s8 + $0x4] sm:$0x3] %vm3156_vm1, %v3151_v60 }
 0x5b2   :  { %v1920_v36 = vpop.f32.mrb[14].mxu0  ;;  %v1991_v48 = vpop.f32.mrb[14].mxu1 }
 0x5b3   :  { %v1921_v56 = vadd.f32 %v1920_v36, %v6751_v8  ;;  %v1922_v57 = vpop.f32.mrb[15].mxu0  ;;  %v1993_v16 = vpop.f32.mrb[15].mxu1  ;;  %v1992_v60 = vadd.f32 %v1991_v48, %v6754_v35 }
 0x5b4   :  { %v1923_v49 = vadd.f32 %v1922_v57, %v6752_v63  ;;  %v1994_v26 = vadd.f32 %v1993_v16, %v6753_v27  ;;  %v6755_v57 = vld [vmem:[#allocation87_spill] sm:$0xff]  ;;  %v6759_v16 = vld [vmem:[#allocation86_spill] sm:$0xff] }
 0x5b5   :  { %v1996_v62 = vsub.f32 0.0, %v1921_v56  ;;  %v6756_v56 = vld [vmem:[#allocation83_spill] sm:$0xff] }
 0x5b6   :  { %v2001_v32 = vsub.f32 0.0, %v1923_v49  ;;  %v2007_v17 = vsub.f32 0.0, %v1994_v26  ;;  %v144_v49 = vmul.f32 %v6756_v56, %v6755_v57 }
 0x5b7   :  { %v1997_v0 = vmul.f32 1.442695, %v1996_v62  ;;  %v6757_v62 = vld [vmem:[#allocation84_spill] sm:$0xff] }
 0x5b8   :  { %v2002_v10 = vmul.f32 1.442695, %v2001_v32  ;;  %v2008_v31 = vmul.f32 1.442695, %v2007_v17  ;;  %v145_v32 = vmul.f32 %v6757_v62, %v6755_v57  ;;  %v194_v48 = vadd.f32 %v6612_v25, %v144_v49 }
 0x5b9   :  { %4679 = vpow2.f32 %v1997_v0  ;;  %v6758_v0 = vld [vmem:[#allocation85_spill] sm:$0xff] }
 0x5ba   :  { %4681 = vpow2.f32 %v2002_v10  ;;  %v146_v26 = vmul.f32 %v6758_v0, %v6755_v57  ;;  %v147_v10 = vmul.f32 %v6759_v16, %v6755_v57 }
 0x5bb   :  { %4683 = vpow2.f32 %v2008_v31 }
 0x5bc   :  { %4685 = vtanh.f32 %v1992_v60 }
 0x5c3   :  { %v4680_v21 = vpop.eup %4679 }
 0x5c4   :  { %v4682_v38 = vpop.eup %4681  ;;  %v1999_v6 = vadd.f32 1.0, %v4680_v21  ;;  %v6760_v21 = vld [vmem:[#allocation88_spill] sm:$0xff] }
 0x5c5   :  { %v2004_v36 = vadd.f32 1.0, %v4682_v38  ;;  %v195_v17 = vadd.f32 %v6760_v21, %v145_v32  ;;  %v196_v38 = vadd.f32 %v6687_v1, %v146_v26  ;;  %v4684_v60 = vpop.eup %4683 }
 0x5c6   :  { %4687 = vrcp.f32 %v1999_v6  ;;  %v6761_v6 = vld [vmem:[#allocation90_spill] sm:$0xff]  ;;  %v4686_v56 = vpop.eup %4685  ;;  %v2010_v8 = vadd.f32 1.0, %v4684_v60 }
 0x5c7   :  { %4689 = vrcp.f32 %v2004_v36  ;;  %v197_v31 = vadd.f32 %v6761_v6, %v147_v10  ;;  %v302_v35 = vcombine.low %v194_v48, %v195_v17 }
 0x5c8   :  { %4691 = vrcp.f32 %v2010_v8 }
 0x5c9   :  { %v303_v62 = vcombine.low %v196_v38, %v197_v31  ;;  %v310_v49 = vrot.slane %v302_v35, %v5337_v58 }
 0x5cb   :  { %v317_v26 = vrot.slane %v303_v62, %v5337_v58 }
 0x5d0   :  { %v4688_v27 = vpop.eup %4687 }
 0x5d1   :  { %v4690_v36 = vpop.eup %4689  ;;  %v2013_v63 = vmul.f32 %v4688_v27, %v4686_v56 }
 0x5d2   :  { %v2012_v0 = vmul.f32 %v4690_v36, %v5759_v34  ;;  %v2087_v12 = vpop.f32.mrb[16].mxu0  ;;  %v2158_v57 = vpop.f32.mrb[16].mxu1  ;;  %v318_v34 = vcombine.low %v310_v49, %v317_v26  ;;  %v5900_v26 = vld [vmem:[%s6226_s6] ss:$0 sm:$0xff] }
 0x5d3   :  { %v2089_v16 = vpop.f32.mrb[17].mxu0  ;;  %v2160_v32 = vpop.f32.mrb[17].mxu1 }
 0x5d4   :  { %v2167_v21 = vcombine.low %v2087_v12, %v2089_v16  ;;  %v2168_v10 = vcombine.low %v2158_v57, %v2160_v32  ;;  %v5892_v6 = vadd.f32 %v2013_v63, %v2012_v0  ;;  %v4692_v12 = vpop.eup %4691 }
 0x5d6   :  { %v2175_v48 = vrot.slane %v2167_v21, %v5337_v58  ;;  %v2182_v27 = vrot.slane %v2168_v10, %v5337_v58  ;;  %4693 = vtanh.f32 %v5892_v6 }
 0x5d8   :  { %v2183_v56 = vcombine.low %v2175_v48, %v2182_v27 }
 0x5da   :  { %v2185_v17 = vadd.f32 %v2183_v56, %v318_v34 }
 0x5dc   :  { %v2186_v38 = vsub.f32 0.0, %v2185_v17  ;;  %v2192_v31 = vrot.slane %v2185_v17, 2  ;;  %v2202_v63 = vrot.slane %v2185_v17, 6  ;;  %v2199_v57 = vrot.slane %v2185_v17, 4 }
 0x5de   :  { %v2187_v35 = vmul.f32 1.442695, %v2186_v38  ;;  %v2194_v60 = vsub.f32 0.0, %v2192_v31  ;;  %v2204_v8 = vsub.f32 0.0, %v2202_v63 }
 0x5e0   :  { %v4694_v16 = vpop.eup %4693  ;;  %4695 = vpow2.f32 %v2187_v35  ;;  %v2195_v62 = vmul.f32 1.442695, %v2194_v60  ;;  %v2205_v21 = vmul.f32 1.442695, %v2204_v8  ;;  %v6763_v8 = vld [vmem:[#allocation22_spill] sm:$0xff] }
 0x5e1   :  { %v2016_v0 = vmul.f32 %v4694_v16, %v4692_v12 }
 0x5e2   :  { %4697 = vpow2.f32 %v2195_v62 }
 0x5e3   :  { %2018 = vst [vmem:[#allocation3 + $0x6] sm:$0x3] %v2016_v0  ;;  %2278 = vmatprep.mubr.f32.mxu0 %v2016_v0  ;;  %2349 = vmatprep.mubr.f32.mxu1 %v2016_v0  ;;  %4699 = vpow2.f32 %v2205_v21  ;;  %v6764_v21 = vld [vmem:[#allocation23_spill] sm:$0xff] }
 0x5ea   :  { %v4696_v36 = vpop.eup %4695  ;;  %v3103_v49 = vld [vmem:[#allocation3 + $0x6] sm:$0x3] }
 0x5eb   :  { %v2189_v32 = vadd.f32 1.0, %v4696_v36  ;;  %v3116_v10 = vmul.f32 %v5900_v26, %v3103_v49  ;;  %v6765_v36 = vld [vmem:[#allocation24_spill] sm:$0xff]  ;;  %v6767_v49 = vld [vmem:[#allocation26_spill] sm:$0xff] }
 0x5ec   :  { %v4698_v48 = vpop.eup %4697 }
 0x5ed   :  { %4701 = vrcp.f32 %v2189_v32  ;;  %v2197_v27 = vadd.f32 1.0, %v4698_v48  ;;  %v3130_v34 = vsel %vm3120_vm0, %v3116_v10, 0.0  ;;  %v4700_v56 = vpop.eup %4699  ;;  %v6768_v32 = vld [vmem:[#allocation27_spill] sm:$0xff]  ;;  %v6769_v10 = vld [vmem:[#allocation28_spill] sm:$0xff]  ;;  %v6770_v48 = vld [vmem:[#allocation29_spill] sm:$0xff] }
 0x5ee   :  { %4703 = vtanh.f32 %v2199_v57  ;;  %3131 = vadd.xlane.f32.xlu1 %v3130_v34  ;;  %v2207_v35 = vadd.f32 1.0, %v4700_v56  ;;  %v6766_v57 = vld [vmem:[#allocation25_spill] sm:$0xff]  ;;  %v6772_v34 = vld [vmem:[#allocation31_spill] sm:$0xff]  ;;  %v6773_v56 = vld [vmem:[#allocation32_spill] sm:$0xff] }
 0x5ef   :  { %4705 = vrcp.f32 %v2197_v27  ;;  %v6771_v27 = vld [vmem:[#allocation30_spill] sm:$0xff] }
 0x5f0   :  { %4707 = vrcp.f32 %v2207_v35  ;;  %v6777_v35 = vld [vmem:[#allocation36_spill] sm:$0xff] }
 0x5f7   :  { %v4702_v17 = vpop.eup %4701 }
 0x5f8   :  { %v4704_v38 = vpop.eup %4703 }
 0x5f9   :  { %v4706_v31 = vpop.eup %4705  ;;  %v2210_v12 = vmul.f32 %v4704_v38, %v4702_v17  ;;  %v6774_v17 = vld [vmem:[#allocation33_spill] sm:$0xff]  ;;  %v6775_v38 = vld [vmem:[#allocation34_spill] sm:$0xff] }
 0x5fa   :  { %v2209_v60 = vmul.f32 %v4706_v31, %v5767_v45  ;;  %v4708_v62 = vpop.eup %4707  ;;  %v6762_v45 = vld [vmem:[#allocation21_spill] sm:$0xff]  ;;  %v6776_v31 = vld [vmem:[#allocation35_spill] sm:$0xff] }
 0x5fc   :  { %v5905_v16 = vadd.f32 %v2210_v12, %v2209_v60  ;;  %v6778_v60 = vld [vmem:[#allocation37_spill] sm:$0xff]  ;;  %v6779_v12 = vld [vmem:[#allocation38_spill] sm:$0xff] }
 0x5fe   :  { %4709 = vtanh.f32 %v5905_v16 }
 0x608   :  { %v4710_v63 = vpop.eup %4709 }
 0x609   :  { %v2213_v0 = vmul.f32 %v4710_v63, %v4708_v62  ;;  %v6780_v62 = vld [vmem:[#allocation39_spill] sm:$0xff]  ;;  %v6781_v63 = vld [vmem:[#allocation40_spill] sm:$0xff] }
 0x60b   :  { %2279 = vmatmul.mubr.f32.vlgmr.msra.gmra.mrb[18].mxu0 %v2213_v0  ;;  %2350 = vmatmul.mubr.f32.vlgmr.msra.gmra.mrb[18].mxu1 %v2213_v0 }
 0x60c   :  { %4174 = vmatpush1.bf16.msra.mxu0 %v4989_v11  ;;  %4206 = vmatpush1.bf16.msra.mxu1 %v4992_v15 }
 0x60d   :  { %4176 = vmatprep.subr.bf16.mxu0 %v4996_v19  ;;  %4208 = vmatprep.subr.bf16.mxu1 %v4998_v20 }
 0x60e   :  { %2445 = vmatprep.mubr.f32.mxu0 %v6471_v44  ;;  %2516 = vmatprep.mubr.f32.mxu1 %v6471_v44 }
 0x610   :  { %4178 = vmatpush1.bf16.msra.mxu0 %v5001_v24  ;;  %4210 = vmatpush1.bf16.msra.mxu1 %v5005_v28 }
 0x611   :  { %4180 = vmatprep.subr.bf16.mxu0 %v5007_v29  ;;  %4212 = vmatprep.subr.bf16.mxu1 %v5009_v33 }
 0x614   :  { %4182 = vmatpush1.bf16.msra.mxu0 %v5012_v37  ;;  %4214 = vmatpush1.bf16.msra.mxu1 %v5016_v41 }
 0x615   :  { %4184 = vmatprep.subr.bf16.mxu0 %v5018_v42  ;;  %4216 = vmatprep.subr.bf16.mxu1 %v5021_v46 }
 0x618   :  { %4186 = vmatpush1.bf16.msra.mxu0 %v5024_v53  ;;  %4218 = vmatpush1.bf16.msra.mxu1 %v5028_v54 }
 0x619   :  { %4188 = vmatprep.subr.bf16.mxu0 %v5030_v55  ;;  %4220 = vmatprep.subr.bf16.mxu1 %v5033_v59 }
 0x61c   :  { %4190 = vmatpush1.bf16.msra.mxu0 %v5036_v2  ;;  %4222 = vmatpush1.bf16.msra.mxu1 %v5040_v3 }
 0x61d   :  { %4192 = vmatprep.subr.bf16.mxu0 %v5042_v4  ;;  %4224 = vmatprep.subr.bf16.mxu1 %v5045_v9 }
 0x620   :  { %4194 = vmatpush1.bf16.msra.mxu0 %v5048_v18  ;;  %4226 = vmatpush1.bf16.msra.mxu1 %v5052_v22 }
 0x621   :  { %4196 = vmatprep.subr.bf16.mxu0 %v5054_v23  ;;  %4228 = vmatprep.subr.bf16.mxu1 %v5060_v30 }
 0x624   :  { %4198 = vmatpush1.bf16.msra.mxu0 %v5066_v39  ;;  %4230 = vmatpush1.bf16.msra.mxu1 %v5070_v40 }
 0x625   :  { %4200 = vmatprep.subr.bf16.mxu0 %v5072_v43  ;;  %4232 = vmatprep.subr.bf16.mxu1 %v5075_v47 }
 0x628   :  { %4202 = vmatpush1.bf16.msra.mxu0 %v5081_v51  ;;  %4234 = vmatpush1.bf16.msra.mxu1 %v5085_v52 }
 0x629   :  { %4236 = vmatprep.subr.bf16.mxu0 %v5092_v61  ;;  %4300 = vmatprep.subr.bf16.mxu1 %v5095_v5 }
 0x62b   :  { %2446 = vmatmul.mubr.f32.vlgmr.msra.gmra.mrb[20].mxu0 %v2213_v0  ;;  %2517 = vmatmul.mubr.f32.vlgmr.msra.gmra.mrb[20].mxu1 %v2213_v0  ;;  %v6782_v0 = vld [vmem:[#allocation41_spill] sm:$0xff] }
 0x62c   :  { %4238 = vmatpush1.bf16.msra.mxu0 %v5097_v7  ;;  %4302 = vmatpush1.bf16.msra.mxu1 %v5100_v13 }
 0x62d   :  { %4240 = vmatprep.subr.bf16.mxu0 %v6614_v14  ;;  %4304 = vmatprep.subr.bf16.mxu1 %v6689_v50 }
 0x630   :  { %4242 = vmatpush1.bf16.msra.mxu0 %v6762_v45  ;;  %4306 = vmatpush1.bf16.msra.mxu1 %v6763_v8 }
 0x631   :  { %4244 = vmatprep.subr.bf16.mxu0 %v6764_v21  ;;  %4308 = vmatprep.subr.bf16.mxu1 %v6765_v36  ;;  %v6826_v36 = vld [vmem:[#allocation81_spill] sm:$0xff] }
 0x634   :  { %4246 = vmatpush1.bf16.msra.mxu0 %v6766_v57  ;;  %4310 = vmatpush1.bf16.msra.mxu1 %v6767_v49  ;;  %v6825_v49 = vld [vmem:[#allocation82_spill] sm:$0xff] }
 0x635   :  { %4248 = vmatprep.subr.bf16.mxu0 %v6768_v32  ;;  %4312 = vmatprep.subr.bf16.mxu1 %v6769_v10 }
 0x638   :  { %4250 = vmatpush1.bf16.msra.mxu0 %v6770_v48  ;;  %4314 = vmatpush1.bf16.msra.mxu1 %v6771_v27  ;;  %v6824_v27 = vld [vmem:[#allocation80_spill] sm:$0xff] }
 0x639   :  { %4252 = vmatprep.subr.bf16.mxu0 %v6772_v34  ;;  %4316 = vmatprep.subr.bf16.mxu1 %v6773_v56  ;;  %v6783_v34 = vld [vmem:[#allocation42_spill] sm:$0xff]  ;;  %v6784_v56 = vld [vmem:[#allocation43_spill] sm:$0xff] }
 0x63c   :  { %4254 = vmatpush1.bf16.msra.mxu0 %v6774_v17  ;;  %4318 = vmatpush1.bf16.msra.mxu1 %v6775_v38  ;;  %v6785_v17 = vld [vmem:[#allocation44_spill] sm:$0xff]  ;;  %v6786_v38 = vld [vmem:[#allocation45_spill] sm:$0xff] }
 0x63d   :  { %4256 = vmatprep.subr.bf16.mxu0 %v6776_v31  ;;  %4320 = vmatprep.subr.bf16.mxu1 %v6777_v35  ;;  %v6787_v31 = vld [vmem:[#allocation46_spill] sm:$0xff]  ;;  %v6788_v35 = vld [vmem:[#allocation47_spill] sm:$0xff] }
 0x640   :  { %4258 = vmatpush1.bf16.msra.mxu0 %v6778_v60  ;;  %4322 = vmatpush1.bf16.msra.mxu1 %v6779_v12  ;;  %v6789_v60 = vld [vmem:[#allocation48_spill] sm:$0xff]  ;;  %v6790_v12 = vld [vmem:[#allocation49_spill] sm:$0xff] }
 0x641   :  { %4260 = vmatprep.subr.bf16.mxu0 %v6780_v62  ;;  %4324 = vmatprep.subr.bf16.mxu1 %v6781_v63  ;;  %v6791_v62 = vld [vmem:[#allocation50_spill] sm:$0xff]  ;;  %v6792_v63 = vld [vmem:[#allocation51_spill] sm:$0xff] }
 0x644   :  { %4262 = vmatpush1.bf16.msra.mxu0 %v6782_v0  ;;  %4326 = vmatpush1.bf16.msra.mxu1 %v6783_v34  ;;  %v6793_v0 = vld [vmem:[#allocation52_spill] sm:$0xff]  ;;  %v6794_v34 = vld [vmem:[#allocation53_spill] sm:$0xff] }
 0x645   :  { %4264 = vmatprep.subr.bf16.mxu0 %v6784_v56  ;;  %4328 = vmatprep.subr.bf16.mxu1 %v6785_v17  ;;  %v6795_v56 = vld [vmem:[#allocation54_spill] sm:$0xff]  ;;  %v6796_v17 = vld [vmem:[#allocation55_spill] sm:$0xff] }
 0x648   :  { %4266 = vmatpush1.bf16.msra.mxu0 %v6786_v38  ;;  %4330 = vmatpush1.bf16.msra.mxu1 %v6787_v31  ;;  %v6797_v38 = vld [vmem:[#allocation56_spill] sm:$0xff]  ;;  %v6798_v31 = vld [vmem:[#allocation57_spill] sm:$0xff] }
 0x649   :  { %4268 = vmatprep.subr.bf16.mxu0 %v6788_v35  ;;  %4332 = vmatprep.subr.bf16.mxu1 %v6789_v60  ;;  %v6799_v35 = vld [vmem:[#allocation58_spill] sm:$0xff]  ;;  %v6800_v60 = vld [vmem:[#allocation59_spill] sm:$0xff] }
 0x64c   :  { %4270 = vmatpush1.bf16.msra.mxu0 %v6790_v12  ;;  %4334 = vmatpush1.bf16.msra.mxu1 %v6791_v62  ;;  %v6801_v12 = vld [vmem:[#allocation60_spill] sm:$0xff]  ;;  %v6802_v62 = vld [vmem:[#allocation61_spill] sm:$0xff] }
 0x64d   :  { %4272 = vmatprep.subr.bf16.mxu0 %v6792_v63  ;;  %4336 = vmatprep.subr.bf16.mxu1 %v6793_v0  ;;  %v6803_v63 = vld [vmem:[#allocation62_spill] sm:$0xff]  ;;  %v6804_v0 = vld [vmem:[#allocation63_spill] sm:$0xff] }
 0x650   :  { %4274 = vmatpush1.bf16.msra.mxu0 %v6794_v34  ;;  %4338 = vmatpush1.bf16.msra.mxu1 %v6795_v56  ;;  %v6805_v34 = vld [vmem:[#allocation64_spill] sm:$0xff]  ;;  %v6806_v56 = vld [vmem:[#allocation65_spill] sm:$0xff] }
 0x651   :  { %4276 = vmatprep.subr.bf16.mxu0 %v6796_v17  ;;  %4340 = vmatprep.subr.bf16.mxu1 %v6797_v38  ;;  %v6807_v17 = vld [vmem:[#allocation66_spill] sm:$0xff]  ;;  %v6808_v38 = vld [vmem:[#allocation67_spill] sm:$0xff] }
 0x654   :  { %4278 = vmatpush1.bf16.msra.mxu0 %v6798_v31  ;;  %4342 = vmatpush1.bf16.msra.mxu1 %v6799_v35  ;;  %v6809_v31 = vld [vmem:[#allocation68_spill] sm:$0xff]  ;;  %v6810_v35 = vld [vmem:[#allocation69_spill] sm:$0xff] }
 0x655   :  { %4280 = vmatprep.subr.bf16.mxu0 %v6800_v60  ;;  %4344 = vmatprep.subr.bf16.mxu1 %v6801_v12  ;;  %v6811_v60 = vld [vmem:[#allocation70_spill] sm:$0xff]  ;;  %v6812_v12 = vld [vmem:[#allocation71_spill] sm:$0xff] }
 0x658   :  { %4282 = vmatpush1.bf16.msra.mxu0 %v6802_v62  ;;  %4346 = vmatpush1.bf16.msra.mxu1 %v6803_v63  ;;  %v6813_v62 = vld [vmem:[#allocation72_spill] sm:$0xff]  ;;  %v6814_v63 = vld [vmem:[#allocation73_spill] sm:$0xff] }
 0x659   :  { %4284 = vmatprep.subr.bf16.mxu0 %v6804_v0  ;;  %4348 = vmatprep.subr.bf16.mxu1 %v6805_v34  ;;  %v6815_v0 = vld [vmem:[#allocation75_spill] sm:$0xff]  ;;  %v6816_v34 = vld [vmem:[#allocation74_spill] sm:$0xff] }
 0x65c   :  { %4286 = vmatpush1.bf16.msra.mxu0 %v6806_v56  ;;  %4350 = vmatpush1.bf16.msra.mxu1 %v6807_v17  ;;  %v6817_v56 = vld [vmem:[#allocation76_spill] sm:$0xff]  ;;  %v6818_v17 = vld [vmem:[#allocation77_spill] sm:$0xff] }
 0x65d   :  { %4288 = vmatprep.subr.bf16.mxu0 %v6808_v38  ;;  %4352 = vmatprep.subr.bf16.mxu1 %v6809_v31  ;;  %v6819_v38 = vld [vmem:[#allocation78_spill] sm:$0xff]  ;;  %v6820_v31 = vld [vmem:[#allocation17_spill] sm:$0xff] }
 0x660   :  { %4290 = vmatpush1.bf16.msra.mxu0 %v6810_v35  ;;  %4354 = vmatpush1.bf16.msra.mxu1 %v6811_v60  ;;  %v6821_v35 = vld [vmem:[#allocation18_spill] sm:$0xff] }
 0x661   :  { %4292 = vmatprep.subr.bf16.mxu0 %v6812_v12  ;;  %4356 = vmatprep.subr.bf16.mxu1 %v6813_v62  ;;  %v6006_v12 = vld [vmem:[#allocation4] ss:$0 sm:$0xff] }
 0x662   :  { %6822 = vst [vmem:[#allocation91_spill] sm:$0xff] %v6006_v12 }
 0x664   :  { %4294 = vmatpush1.bf16.msra.mxu0 %v6814_v63  ;;  %4358 = vmatpush1.bf16.msra.mxu1 %v6815_v0  ;;  %v6823_v0 = vld [vmem:[#allocation79_spill] sm:$0xff] }
 0x665   :  { %4296 = vmatprep.subr.bf16.mxu0 %v6816_v34  ;;  %4360 = vmatprep.subr.bf16.mxu1 %v6817_v56 }
 0x668   :  { %4298 = vmatpush1.bf16.msra.mxu0 %v6818_v17  ;;  %4362 = vmatpush1.bf16.msra.mxu1 %v6819_v38 }
 0x669   :  { %4364 = vmatprep.subr.bf16.mxu0 %v6820_v31  ;;  %4396 = vmatprep.subr.bf16.mxu1 %v6821_v35 }
 0x67b   :  { %v3132_v60 = vpop.xlane.xlu1 %3131 }
 0x67c   :  { %v3152_v62 = vadd.f32 %v6006_v12, %v3132_v60 }
 0x67e   :  { %3160 = vst.msk [vmem:[%s6228_s8 + $0x6] sm:$0x3] %vm3156_vm1, %v3152_v62 }
 0x6de   :  { %v2280_v34 = vpop.f32.mrb[18].mxu0  ;;  %v2351_v56 = vpop.f32.mrb[18].mxu1 }
 0x6df   :  { %v2281_v17 = vadd.f32 %v2280_v34, %v6823_v0  ;;  %v2282_v63 = vpop.f32.mrb[19].mxu0  ;;  %v2353_v38 = vpop.f32.mrb[19].mxu1  ;;  %v2352_v62 = vadd.f32 %v2351_v56, %v6826_v36 }
 0x6e0   :  { %v2283_v31 = vadd.f32 %v2282_v63, %v6824_v27  ;;  %v2354_v57 = vadd.f32 %v2353_v38, %v6825_v49  ;;  %v6827_v63 = vld [vmem:[#allocation92_spill] sm:$0xff] }
 0x6e1   :  { %v2356_v48 = vsub.f32 0.0, %v2281_v17  ;;  %v6828_v17 = vld [vmem:[#allocation83_spill] sm:$0xff] }
 0x6e2   :  { %v2361_v35 = vsub.f32 0.0, %v2283_v31  ;;  %v2367_v60 = vsub.f32 0.0, %v2354_v57  ;;  %v148_v31 = vmul.f32 %v6828_v17, %v6827_v63 }
 0x6e3   :  { %v2357_v10 = vmul.f32 1.442695, %v2356_v48  ;;  %v6829_v48 = vld [vmem:[#allocation84_spill] sm:$0xff] }
 0x6e4   :  { %v2362_v32 = vmul.f32 1.442695, %v2361_v35  ;;  %v2368_v12 = vmul.f32 1.442695, %v2367_v60  ;;  %v149_v35 = vmul.f32 %v6829_v48, %v6827_v63  ;;  %v198_v38 = vadd.f32 %v6612_v25, %v148_v31 }
 0x6e5   :  { %4711 = vpow2.f32 %v2357_v10  ;;  %v6831_v10 = vld [vmem:[#allocation86_spill] sm:$0xff] }
 0x6e6   :  { %4713 = vpow2.f32 %v2362_v32  ;;  %v6830_v32 = vld [vmem:[#allocation85_spill] sm:$0xff]  ;;  %v151_v56 = vmul.f32 %v6831_v10, %v6827_v63 }
 0x6e7   :  { %4715 = vpow2.f32 %v2368_v12  ;;  %v150_v57 = vmul.f32 %v6830_v32, %v6827_v63 }
 0x6e8   :  { %4717 = vtanh.f32 %v2352_v62 }
 0x6ef   :  { %v4712_v21 = vpop.eup %4711 }
 0x6f0   :  { %v4714_v8 = vpop.eup %4713  ;;  %v2359_v45 = vadd.f32 1.0, %v4712_v21  ;;  %v6832_v21 = vld [vmem:[#allocation88_spill] sm:$0xff] }
 0x6f1   :  { %v2364_v34 = vadd.f32 1.0, %v4714_v8  ;;  %v199_v12 = vadd.f32 %v6832_v21, %v149_v35  ;;  %v200_v8 = vadd.f32 %v6687_v1, %v150_v57  ;;  %v4716_v62 = vpop.eup %4715 }
 0x6f2   :  { %4719 = vrcp.f32 %v2359_v45  ;;  %v6833_v45 = vld [vmem:[#allocation90_spill] sm:$0xff]  ;;  %v4718_v17 = vpop.eup %4717  ;;  %v2370_v0 = vadd.f32 1.0, %v4716_v62 }
 0x6f3   :  { %4721 = vrcp.f32 %v2364_v34  ;;  %v201_v60 = vadd.f32 %v6833_v45, %v151_v56  ;;  %v319_v36 = vcombine.low %v198_v38, %v199_v12 }
 0x6f4   :  { %4723 = vrcp.f32 %v2370_v0 }
 0x6f5   :  { %v320_v48 = vcombine.low %v200_v8, %v201_v60  ;;  %v327_v31 = vrot.slane %v319_v36, %v5337_v58 }
 0x6f7   :  { %v334_v57 = vrot.slane %v320_v48, %v5337_v58 }
 0x6fc   :  { %v4720_v49 = vpop.eup %4719 }
 0x6fd   :  { %v4722_v34 = vpop.eup %4721  ;;  %v2373_v27 = vmul.f32 %v4720_v49, %v4718_v17 }
 0x6fe   :  { %v2372_v32 = vmul.f32 %v4722_v34, %v5892_v6  ;;  %v2447_v50 = vpop.f32.mrb[20].mxu0  ;;  %v2518_v63 = vpop.f32.mrb[20].mxu1  ;;  %v335_v6 = vcombine.low %v327_v31, %v334_v57 }
 0x6ff   :  { %v2449_v10 = vpop.f32.mrb[21].mxu0  ;;  %v2520_v35 = vpop.f32.mrb[21].mxu1 }
 0x700   :  { %v2527_v21 = vcombine.low %v2447_v50, %v2449_v10  ;;  %v2528_v56 = vcombine.low %v2518_v63, %v2520_v35  ;;  %v6032_v45 = vadd.f32 %v2373_v27, %v2372_v32  ;;  %v4724_v50 = vpop.eup %4723 }
 0x702   :  { %v2535_v38 = vrot.slane %v2527_v21, %v5337_v58  ;;  %v2542_v49 = vrot.slane %v2528_v56, %v5337_v58  ;;  %4725 = vtanh.f32 %v6032_v45 }
 0x704   :  { %v2543_v17 = vcombine.low %v2535_v38, %v2542_v49 }
 0x706   :  { %v2545_v12 = vadd.f32 %v2543_v17, %v335_v6 }
 0x708   :  { %v2546_v8 = vsub.f32 0.0, %v2545_v12  ;;  %v2552_v60 = vrot.slane %v2545_v12, 2  ;;  %v2562_v27 = vrot.slane %v2545_v12, 6  ;;  %v2559_v63 = vrot.slane %v2545_v12, 4 }
 0x70a   :  { %v2547_v36 = vmul.f32 1.442695, %v2546_v8  ;;  %v2554_v62 = vsub.f32 0.0, %v2552_v60  ;;  %v2564_v0 = vsub.f32 0.0, %v2562_v27 }
 0x70c   :  { %v4726_v10 = vpop.eup %4725  ;;  %4727 = vpow2.f32 %v2547_v36  ;;  %v2555_v48 = vmul.f32 1.442695, %v2554_v62  ;;  %v2565_v21 = vmul.f32 1.442695, %v2564_v0  ;;  %v6872_v0 = vld [vmem:[#allocation58_spill] sm:$0xff] }
 0x70d   :  { %v2376_v32 = vmul.f32 %v4726_v10, %v4724_v50 }
 0x70e   :  { %4729 = vpow2.f32 %v2555_v48 }
 0x70f   :  { %2378 = vst [vmem:[#allocation3 + $0x8] sm:$0x3] %v2376_v32  ;;  %2638 = vmatprep.mubr.f32.mxu0 %v2376_v32  ;;  %2709 = vmatprep.mubr.f32.mxu1 %v2376_v32  ;;  %4731 = vpow2.f32 %v2565_v21  ;;  %v6871_v32 = vld [vmem:[#allocation57_spill] sm:$0xff]  ;;  %v6873_v21 = vld [vmem:[#allocation59_spill] sm:$0xff] }
 0x716   :  { %v4728_v34 = vpop.eup %4727  ;;  %v3104_v31 = vld [vmem:[#allocation3 + $0x8] sm:$0x3] }
 0x717   :  { %v2549_v35 = vadd.f32 1.0, %v4728_v34  ;;  %v3117_v57 = vmul.f32 %v5900_v26, %v3104_v31  ;;  %v6874_v34 = vld [vmem:[#allocation60_spill] sm:$0xff]  ;;  %v6876_v31 = vld [vmem:[#allocation62_spill] sm:$0xff] }
 0x718   :  { %v4730_v56 = vpop.eup %4729 }
 0x719   :  { %4733 = vrcp.f32 %v2549_v35  ;;  %v2557_v38 = vadd.f32 1.0, %v4730_v56  ;;  %v3133_v49 = vsel %vm3120_vm0, %v3117_v57, 0.0  ;;  %v4732_v6 = vpop.eup %4731  ;;  %v6877_v35 = vld [vmem:[#allocation63_spill] sm:$0xff]  ;;  %v6878_v57 = vld [vmem:[#allocation64_spill] sm:$0xff]  ;;  %v6879_v56 = vld [vmem:[#allocation65_spill] sm:$0xff] }
 0x71a   :  { %4735 = vtanh.f32 %v2559_v63  ;;  %3134 = vadd.xlane.f32.xlu0 %v3133_v49  ;;  %v2567_v36 = vadd.f32 1.0, %v4732_v6  ;;  %v6875_v63 = vld [vmem:[#allocation61_spill] sm:$0xff]  ;;  %v6881_v49 = vld [vmem:[#allocation67_spill] sm:$0xff]  ;;  %v6882_v6 = vld [vmem:[#allocation68_spill] sm:$0xff] }
 0x71b   :  { %4737 = vrcp.f32 %v2557_v38  ;;  %v6880_v38 = vld [vmem:[#allocation66_spill] sm:$0xff] }
 0x71c   :  { %4739 = vrcp.f32 %v2567_v36  ;;  %v6886_v36 = vld [vmem:[#allocation72_spill] sm:$0xff] }
 0x723   :  { %v4734_v17 = vpop.eup %4733 }
 0x724   :  { %v4736_v8 = vpop.eup %4735 }
 0x725   :  { %v4738_v60 = vpop.eup %4737  ;;  %v2570_v62 = vmul.f32 %v4736_v8, %v4734_v17  ;;  %v6883_v17 = vld [vmem:[#allocation69_spill] sm:$0xff]  ;;  %v6884_v8 = vld [vmem:[#allocation70_spill] sm:$0xff] }
 0x726   :  { %v2569_v12 = vmul.f32 %v4738_v60, %v5905_v16  ;;  %v4740_v10 = vpop.eup %4739  ;;  %v6870_v16 = vld [vmem:[#allocation56_spill] sm:$0xff]  ;;  %v6885_v60 = vld [vmem:[#allocation71_spill] sm:$0xff] }
 0x728   :  { %v6040_v50 = vadd.f32 %v2570_v62, %v2569_v12  ;;  %v6887_v12 = vld [vmem:[#allocation73_spill] sm:$0xff]  ;;  %v6888_v62 = vld [vmem:[#allocation75_spill] sm:$0xff] }
 0x72a   :  { %4741 = vtanh.f32 %v6040_v50 }
 0x734   :  { %v4742_v48 = vpop.eup %4741 }
 0x735   :  { %v2573_v27 = vmul.f32 %v4742_v48, %v4740_v10  ;;  %v6889_v10 = vld [vmem:[#allocation74_spill] sm:$0xff]  ;;  %v6890_v48 = vld [vmem:[#allocation76_spill] sm:$0xff] }
 0x737   :  { %2639 = vmatmul.mubr.f32.vlgmr.msra.gmra.mrb[22].mxu0 %v2573_v27  ;;  %2710 = vmatmul.mubr.f32.vlgmr.msra.gmra.mrb[22].mxu1 %v2573_v27 }
 0x738   :  { %4366 = vmatpush1.bf16.msra.mxu0 %v4989_v11  ;;  %4398 = vmatpush1.bf16.msra.mxu1 %v4992_v15  ;;  %v6834_v11 = vld [vmem:[#allocation20_spill] sm:$0xff]  ;;  %v6835_v15 = vld [vmem:[#allocation21_spill] sm:$0xff] }
 0x739   :  { %4368 = vmatprep.subr.bf16.mxu0 %v4996_v19  ;;  %4400 = vmatprep.subr.bf16.mxu1 %v4998_v20  ;;  %v6836_v19 = vld [vmem:[#allocation22_spill] sm:$0xff]  ;;  %v6837_v20 = vld [vmem:[#allocation23_spill] sm:$0xff] }
 0x73a   :  { %2805 = vmatprep.mubr.f32.mxu0 %v6471_v44  ;;  %2876 = vmatprep.mubr.f32.mxu1 %v6471_v44  ;;  %v6868_v44 = vld [vmem:[#allocation54_spill] sm:$0xff] }
 0x73c   :  { %4370 = vmatpush1.bf16.msra.mxu0 %v5001_v24  ;;  %4402 = vmatpush1.bf16.msra.mxu1 %v5005_v28  ;;  %v6838_v24 = vld [vmem:[#allocation24_spill] sm:$0xff]  ;;  %v6839_v28 = vld [vmem:[#allocation25_spill] sm:$0xff] }
 0x73d   :  { %4372 = vmatprep.subr.bf16.mxu0 %v5007_v29  ;;  %4404 = vmatprep.subr.bf16.mxu1 %v5009_v33  ;;  %v6840_v29 = vld [vmem:[#allocation26_spill] sm:$0xff]  ;;  %v6841_v33 = vld [vmem:[#allocation27_spill] sm:$0xff] }
 0x740   :  { %4374 = vmatpush1.bf16.msra.mxu0 %v5012_v37  ;;  %4406 = vmatpush1.bf16.msra.mxu1 %v5016_v41  ;;  %v6842_v37 = vld [vmem:[#allocation28_spill] sm:$0xff]  ;;  %v6843_v41 = vld [vmem:[#allocation29_spill] sm:$0xff] }
 0x741   :  { %4376 = vmatprep.subr.bf16.mxu0 %v5018_v42  ;;  %4408 = vmatprep.subr.bf16.mxu1 %v5021_v46  ;;  %v6844_v42 = vld [vmem:[#allocation30_spill] sm:$0xff]  ;;  %v6845_v46 = vld [vmem:[#allocation31_spill] sm:$0xff] }
 0x744   :  { %4378 = vmatpush1.bf16.msra.mxu0 %v5024_v53  ;;  %4410 = vmatpush1.bf16.msra.mxu1 %v5028_v54  ;;  %v6846_v53 = vld [vmem:[#allocation32_spill] sm:$0xff]  ;;  %v6847_v54 = vld [vmem:[#allocation33_spill] sm:$0xff] }
 0x745   :  { %4380 = vmatprep.subr.bf16.mxu0 %v5030_v55  ;;  %4412 = vmatprep.subr.bf16.mxu1 %v5033_v59  ;;  %v6848_v55 = vld [vmem:[#allocation34_spill] sm:$0xff]  ;;  %v6849_v59 = vld [vmem:[#allocation35_spill] sm:$0xff] }
 0x748   :  { %4382 = vmatpush1.bf16.msra.mxu0 %v5036_v2  ;;  %4414 = vmatpush1.bf16.msra.mxu1 %v5040_v3  ;;  %v6850_v2 = vld [vmem:[#allocation36_spill] sm:$0xff]  ;;  %v6851_v3 = vld [vmem:[#allocation37_spill] sm:$0xff] }
 0x749   :  { %4384 = vmatprep.subr.bf16.mxu0 %v5042_v4  ;;  %4416 = vmatprep.subr.bf16.mxu1 %v5045_v9  ;;  %v6852_v4 = vld [vmem:[#allocation38_spill] sm:$0xff]  ;;  %v6853_v9 = vld [vmem:[#allocation39_spill] sm:$0xff] }
 0x74c   :  { %4386 = vmatpush1.bf16.msra.mxu0 %v5048_v18  ;;  %4418 = vmatpush1.bf16.msra.mxu1 %v5052_v22  ;;  %v6854_v18 = vld [vmem:[#allocation40_spill] sm:$0xff]  ;;  %v6855_v22 = vld [vmem:[#allocation41_spill] sm:$0xff] }
 0x74d   :  { %4388 = vmatprep.subr.bf16.mxu0 %v5054_v23  ;;  %4420 = vmatprep.subr.bf16.mxu1 %v5060_v30  ;;  %v6856_v23 = vld [vmem:[#allocation42_spill] sm:$0xff]  ;;  %v6857_v30 = vld [vmem:[#allocation43_spill] sm:$0xff] }
 0x750   :  { %4390 = vmatpush1.bf16.msra.mxu0 %v5066_v39  ;;  %4422 = vmatpush1.bf16.msra.mxu1 %v5070_v40  ;;  %v6858_v39 = vld [vmem:[#allocation44_spill] sm:$0xff]  ;;  %v6859_v40 = vld [vmem:[#allocation45_spill] sm:$0xff] }
 0x751   :  { %4392 = vmatprep.subr.bf16.mxu0 %v5072_v43  ;;  %4424 = vmatprep.subr.bf16.mxu1 %v5075_v47  ;;  %v6860_v43 = vld [vmem:[#allocation46_spill] sm:$0xff]  ;;  %v6861_v47 = vld [vmem:[#allocation47_spill] sm:$0xff] }
 0x754   :  { %4394 = vmatpush1.bf16.msra.mxu0 %v5081_v51  ;;  %4426 = vmatpush1.bf16.msra.mxu1 %v5085_v52  ;;  %v6862_v51 = vld [vmem:[#allocation48_spill] sm:$0xff]  ;;  %v6863_v52 = vld [vmem:[#allocation49_spill] sm:$0xff] }
 0x755   :  { %4428 = vmatprep.subr.bf16.mxu0 %v5092_v61  ;;  %4492 = vmatprep.subr.bf16.mxu1 %v5095_v5  ;;  %v6864_v61 = vld [vmem:[#allocation50_spill] sm:$0xff]  ;;  %v6865_v5 = vld [vmem:[#allocation51_spill] sm:$0xff] }
 0x757   :  { %2806 = vmatmul.mubr.f32.vlgmr.msra.gmra.mrb[24].mxu0 %v2573_v27  ;;  %2877 = vmatmul.mubr.f32.vlgmr.msra.gmra.mrb[24].mxu1 %v2573_v27  ;;  %v6891_v27 = vld [vmem:[#allocation77_spill] sm:$0xff] }
 0x758   :  { %4430 = vmatpush1.bf16.msra.mxu0 %v5097_v7  ;;  %4494 = vmatpush1.bf16.msra.mxu1 %v5100_v13  ;;  %v6866_v7 = vld [vmem:[#allocation52_spill] sm:$0xff]  ;;  %v6867_v13 = vld [vmem:[#allocation53_spill] sm:$0xff] }
 0x759   :  { %4432 = vmatprep.subr.bf16.mxu0 %v6614_v14  ;;  %4496 = vmatprep.subr.bf16.mxu1 %v6834_v11  ;;  %v6869_v14 = vld [vmem:[#allocation55_spill] sm:$0xff]  ;;  %v6892_v11 = vld [vmem:[#allocation78_spill] sm:$0xff] }
 0x75c   :  { %4434 = vmatpush1.bf16.msra.mxu0 %v6835_v15  ;;  %4498 = vmatpush1.bf16.msra.mxu1 %v6836_v19  ;;  %v6893_v19 = vld [vmem:[#allocation91_spill] sm:$0xff] }
 0x75d   :  { %4436 = vmatprep.subr.bf16.mxu0 %v6837_v20  ;;  %4500 = vmatprep.subr.bf16.mxu1 %v6838_v24 }
 0x760   :  { %4438 = vmatpush1.bf16.msra.mxu0 %v6839_v28  ;;  %4502 = vmatpush1.bf16.msra.mxu1 %v6840_v29  ;;  %v6894_v29 = vld [vmem:[#allocation79_spill] sm:$0xff] }
 0x761   :  { %4440 = vmatprep.subr.bf16.mxu0 %v6841_v33  ;;  %4504 = vmatprep.subr.bf16.mxu1 %v6842_v37 }
 0x764   :  { %4442 = vmatpush1.bf16.msra.mxu0 %v6843_v41  ;;  %4506 = vmatpush1.bf16.msra.mxu1 %v6844_v42  ;;  %v6895_v42 = vld [vmem:[#allocation80_spill] sm:$0xff] }
 0x765   :  { %4444 = vmatprep.subr.bf16.mxu0 %v6845_v46  ;;  %4508 = vmatprep.subr.bf16.mxu1 %v6846_v53 }
 0x768   :  { %4446 = vmatpush1.bf16.msra.mxu0 %v6847_v54  ;;  %4510 = vmatpush1.bf16.msra.mxu1 %v6848_v55 }
 0x769   :  { %4448 = vmatprep.subr.bf16.mxu0 %v6849_v59  ;;  %4512 = vmatprep.subr.bf16.mxu1 %v6850_v2  ;;  %v6896_v2 = vld [vmem:[#allocation82_spill] sm:$0xff] }
 0x76c   :  { %4450 = vmatpush1.bf16.msra.mxu0 %v6851_v3  ;;  %4514 = vmatpush1.bf16.msra.mxu1 %v6852_v4 }
 0x76d   :  { %4452 = vmatprep.subr.bf16.mxu0 %v6853_v9  ;;  %4516 = vmatprep.subr.bf16.mxu1 %v6854_v18  ;;  %v6897_v18 = vld [vmem:[#allocation81_spill] sm:$0xff] }
 0x770   :  { %4454 = vmatpush1.bf16.msra.mxu0 %v6855_v22  ;;  %4518 = vmatpush1.bf16.msra.mxu1 %v6856_v23 }
 0x771   :  { %4456 = vmatprep.subr.bf16.mxu0 %v6857_v30  ;;  %4520 = vmatprep.subr.bf16.mxu1 %v6858_v39 }
 0x774   :  { %4458 = vmatpush1.bf16.msra.mxu0 %v6859_v40  ;;  %4522 = vmatpush1.bf16.msra.mxu1 %v6860_v43  ;;  %v6898_v43 = vld [vmem:[#allocation19_spill] sm:$0xff] }
 0x775   :  { %4460 = vmatprep.subr.bf16.mxu0 %v6861_v47  ;;  %4524 = vmatprep.subr.bf16.mxu1 %v6862_v51  ;;  %v6899_v47 = vld [vmem:[#allocation83_spill] sm:$0xff] }
 0x776   :  { %v152_v51 = vmul.f32 %v6899_v47, %v6898_v43 }
 0x778   :  { %4462 = vmatpush1.bf16.msra.mxu0 %v6863_v52  ;;  %4526 = vmatpush1.bf16.msra.mxu1 %v6864_v61  ;;  %v6900_v52 = vld [vmem:[#allocation84_spill] sm:$0xff] }
 0x779   :  { %4464 = vmatprep.subr.bf16.mxu0 %v6865_v5  ;;  %4528 = vmatprep.subr.bf16.mxu1 %v6866_v7  ;;  %v153_v61 = vmul.f32 %v6900_v52, %v6898_v43  ;;  %v6901_v5 = vld [vmem:[#allocation85_spill] sm:$0xff] }
 0x77a   :  { %v154_v7 = vmul.f32 %v6901_v5, %v6898_v43 }
 0x77c   :  { %4466 = vmatpush1.bf16.msra.mxu0 %v6867_v13  ;;  %4530 = vmatpush1.bf16.msra.mxu1 %v6868_v44  ;;  %v6902_v13 = vld [vmem:[#allocation86_spill] sm:$0xff] }
 0x77d   :  { %4468 = vmatprep.subr.bf16.mxu0 %v6869_v14  ;;  %4532 = vmatprep.subr.bf16.mxu1 %v6870_v16  ;;  %v155_v44 = vmul.f32 %v6902_v13, %v6898_v43  ;;  %v202_v14 = vadd.f32 %v6612_v25, %v152_v51  ;;  %v6903_v16 = vld [vmem:[#allocation88_spill] sm:$0xff] }
 0x780   :  { %4470 = vmatpush1.bf16.msra.mxu0 %v6871_v32  ;;  %4534 = vmatpush1.bf16.msra.mxu1 %v6872_v0  ;;  %v203_v32 = vadd.f32 %v6903_v16, %v153_v61  ;;  %v204_v0 = vadd.f32 %v6687_v1, %v154_v7 }
 0x781   :  { %4472 = vmatprep.subr.bf16.mxu0 %v6873_v21  ;;  %4536 = vmatprep.subr.bf16.mxu1 %v6874_v34  ;;  %v6904_v21 = vld [vmem:[#allocation90_spill] sm:$0xff] }
 0x782   :  { %v205_v34 = vadd.f32 %v6904_v21, %v155_v44 }
 0x784   :  { %4474 = vmatpush1.bf16.msra.mxu0 %v6875_v63  ;;  %4538 = vmatpush1.bf16.msra.mxu1 %v6876_v31 }
 0x785   :  { %4476 = vmatprep.subr.bf16.mxu0 %v6877_v35  ;;  %4540 = vmatprep.subr.bf16.mxu1 %v6878_v57  ;;  %v336_v35 = vcombine.low %v202_v14, %v203_v32 }
 0x787   :  { %v344_v25 = vrot.slane %v336_v35, %v5337_v58 }
 0x788   :  { %4478 = vmatpush1.bf16.msra.mxu0 %v6879_v56  ;;  %4542 = vmatpush1.bf16.msra.mxu1 %v6880_v38  ;;  %v337_v56 = vcombine.low %v204_v0, %v205_v34 }
 0x789   :  { %4480 = vmatprep.subr.bf16.mxu0 %v6881_v49  ;;  %4544 = vmatprep.subr.bf16.mxu1 %v6882_v6 }
 0x78a   :  { %v351_v1 = vrot.slane %v337_v56, %v5337_v58 }
 0x78c   :  { %4482 = vmatpush1.bf16.msra.mxu0 %v6883_v17  ;;  %4546 = vmatpush1.bf16.msra.mxu1 %v6884_v8 }
 0x78d   :  { %4484 = vmatprep.subr.bf16.mxu0 %v6885_v60  ;;  %4548 = vmatprep.subr.bf16.mxu1 %v6886_v36 }
 0x790   :  { %4486 = vmatpush1.bf16.msra.mxu0 %v6887_v12  ;;  %4550 = vmatpush1.bf16.msra.mxu1 %v6888_v62 }
 0x791   :  { %4488 = vmatprep.subr.bf16.mxu0 %v6889_v10  ;;  %4552 = vmatprep.subr.bf16.mxu1 %v6890_v48 }
 0x794   :  { %4490 = vmatpush1.bf16.msra.mxu0 %v6891_v27  ;;  %4554 = vmatpush1.bf16.msra.mxu1 %v6892_v11 }
 0x7a7   :  { %v3135_v15 = vpop.xlane.xlu0 %3134 }
 0x7a8   :  { %v3153_v20 = vadd.f32 %v6893_v19, %v3135_v15 }
 0x7aa   :  { %3161 = vst.msk [vmem:[%s6228_s8 + $0x8] sm:$0x3] %vm3156_vm1, %v3153_v20 }
 0x80a   :  { %v2640_v24 = vpop.f32.mrb[22].mxu0  ;;  %v2711_v28 = vpop.f32.mrb[22].mxu1 }
 0x80b   :  { %v2641_v33 = vadd.f32 %v2640_v24, %v6894_v29  ;;  %v2642_v37 = vpop.f32.mrb[23].mxu0  ;;  %v2713_v41 = vpop.f32.mrb[23].mxu1  ;;  %v2712_v22 = vadd.f32 %v2711_v28, %v6897_v18 }
 0x80c   :  { %v2643_v46 = vadd.f32 %v2642_v37, %v6895_v42  ;;  %v2714_v3 = vadd.f32 %v2713_v41, %v6896_v2 }
 0x80d   :  { %v2716_v53 = vsub.f32 0.0, %v2641_v33 }
 0x80e   :  { %v2721_v54 = vsub.f32 0.0, %v2643_v46  ;;  %v2727_v4 = vsub.f32 0.0, %v2714_v3 }
 0x80f   :  { %v2717_v55 = vmul.f32 1.442695, %v2716_v53 }
 0x810   :  { %v2722_v59 = vmul.f32 1.442695, %v2721_v54  ;;  %v2728_v9 = vmul.f32 1.442695, %v2727_v4 }
 0x811   :  { %4743 = vpow2.f32 %v2717_v55 }
 0x812   :  { %4745 = vpow2.f32 %v2722_v59 }
 0x813   :  { %4747 = vpow2.f32 %v2728_v9 }
 0x814   :  { %4749 = vtanh.f32 %v2712_v22 }
 0x81b   :  { %v4744_v23 = vpop.eup %4743 }
 0x81c   :  { %v4746_v30 = vpop.eup %4745  ;;  %v2719_v39 = vadd.f32 1.0, %v4744_v23 }
 0x81d   :  { %v2724_v40 = vadd.f32 1.0, %v4746_v30  ;;  %v4748_v63 = vpop.eup %4747 }
 0x81e   :  { %4751 = vrcp.f32 %v2719_v39  ;;  %v4750_v31 = vpop.eup %4749  ;;  %v2730_v6 = vadd.f32 1.0, %v4748_v63 }
 0x81f   :  { %4753 = vrcp.f32 %v2724_v40 }
 0x820   :  { %4755 = vrcp.f32 %v2730_v6 }
 0x828   :  { %v4752_v57 = vpop.eup %4751 }
 0x829   :  { %v4754_v38 = vpop.eup %4753  ;;  %v2733_v49 = vmul.f32 %v4752_v57, %v4750_v31 }
 0x82a   :  { %v2732_v17 = vmul.f32 %v4754_v38, %v6032_v45  ;;  %v2807_v8 = vpop.f32.mrb[24].mxu0  ;;  %v2878_v60 = vpop.f32.mrb[24].mxu1  ;;  %v352_v45 = vcombine.low %v344_v25, %v351_v1 }
 0x82b   :  { %v2809_v36 = vpop.f32.mrb[25].mxu0  ;;  %v2880_v12 = vpop.f32.mrb[25].mxu1 }
 0x82c   :  { %v2887_v62 = vcombine.low %v2807_v8, %v2809_v36  ;;  %v2888_v10 = vcombine.low %v2878_v60, %v2880_v12  ;;  %v6163_v48 = vadd.f32 %v2733_v49, %v2732_v17  ;;  %v4756_v41 = vpop.eup %4755 }
 0x82e   :  { %v2895_v27 = vrot.slane %v2887_v62, %v5337_v58  ;;  %v2902_v11 = vrot.slane %v2888_v10, %v5337_v58  ;;  %4757 = vtanh.f32 %v6163_v48 }
 0x830   :  { %v2903_v15 = vcombine.low %v2895_v27, %v2902_v11 }
 0x832   :  { %v2905_v20 = vadd.f32 %v2903_v15, %v352_v45 }
 0x834   :  { %v2906_v24 = vsub.f32 0.0, %v2905_v20  ;;  %v2912_v28 = vrot.slane %v2905_v20, 2  ;;  %v2922_v54 = vrot.slane %v2905_v20, 6  ;;  %v2919_v4 = vrot.slane %v2905_v20, 4 }
 0x836   :  { %v2907_v33 = vmul.f32 1.442695, %v2906_v24  ;;  %v2914_v37 = vsub.f32 0.0, %v2912_v28  ;;  %v2924_v58 = vsub.f32 0.0, %v2922_v54 }
 0x838   :  { %v4758_v46 = vpop.eup %4757  ;;  %4759 = vpow2.f32 %v2907_v33  ;;  %v2915_v53 = vmul.f32 1.442695, %v2914_v37  ;;  %v2925_v59 = vmul.f32 1.442695, %v2924_v58 }
 0x839   :  { %v2736_v55 = vmul.f32 %v4758_v46, %v4756_v41 }
 0x83a   :  { %4761 = vpow2.f32 %v2915_v53 }
 0x83b   :  { %2738 = vst [vmem:[#allocation3 + $0xa] sm:$0x3] %v2736_v55  ;;  %2998 = vmatprep.mubr.f32.mxu0 %v2736_v55  ;;  %3069 = vmatprep.mubr.f32.mxu1 %v2736_v55  ;;  %4763 = vpow2.f32 %v2925_v59 }
 0x842   :  { %v4760_v3 = vpop.eup %4759  ;;  %v3105_v9 = vld [vmem:[#allocation3 + $0xa] sm:$0x3] }
 0x843   :  { %v2909_v22 = vadd.f32 1.0, %v4760_v3  ;;  %v3118_v23 = vmul.f32 %v5900_v26, %v3105_v9 }
 0x844   :  { %v4762_v30 = vpop.eup %4761 }
 0x845   :  { %4765 = vrcp.f32 %v2909_v22  ;;  %v2917_v39 = vadd.f32 1.0, %v4762_v30  ;;  %v3136_v40 = vsel %vm3120_vm0, %v3118_v23, 0.0  ;;  %v4764_v43 = vpop.eup %4763 }
 0x846   :  { %4767 = vtanh.f32 %v2919_v4  ;;  %3137 = vadd.xlane.f32.xlu1 %v3136_v40  ;;  %v2927_v61 = vadd.f32 1.0, %v4764_v43 }
 0x847   :  { %4769 = vrcp.f32 %v2917_v39 }
 0x848   :  { %4771 = vrcp.f32 %v2927_v61 }
 0x84f   :  { %v4766_v47 = vpop.eup %4765 }
 0x850   :  { %v4768_v51 = vpop.eup %4767 }
 0x851   :  { %v4770_v52 = vpop.eup %4769  ;;  %v2930_v7 = vmul.f32 %v4768_v51, %v4766_v47 }
 0x852   :  { %v2929_v5 = vmul.f32 %v4770_v52, %v6040_v50  ;;  %v4772_v44 = vpop.eup %4771 }
 0x854   :  { %v2931_v13 = vadd.f32 %v2930_v7, %v2929_v5 }
 0x856   :  { %4773 = vtanh.f32 %v2931_v13  ;;  %3168 = vst.msk [vmem:[#allocation11] sm:$0x3] %vm3164_vm2, %v2931_v13 }
 0x860   :  { %v4774_v14 = vpop.eup %4773 }
 0x861   :  { %v2933_v16 = vmul.f32 %v4774_v14, %v4772_v44 }
 0x863   :  { %2999 = vmatmul.mubr.f32.vlgmr.msra.gmra.mrb[26].mxu0 %v2933_v16  ;;  %3070 = vmatmul.mubr.f32.vlgmr.msra.gmra.mrb[26].mxu1 %v2933_v16  ;;  %3165 = vst.msk [vmem:[#allocation10] sm:$0x3] %vm3164_vm2, %v2933_v16 }
 0x8d3   :  { %v3138_v32 = vpop.xlane.xlu1 %3137 }
 0x8d4   :  { %v3154_v0 = vadd.f32 %v6893_v19, %v3138_v32 }
 0x8d6   :  { %3162 = vst.msk [vmem:[%s6228_s8 + $0xa] sm:$0x3] %vm3156_vm1, %v3154_v0 }
 0x936   :  { %v3000_v50 = vpop.f32.mrb[26].mxu0  ;;  %v3071_v21 = vpop.f32.mrb[26].mxu1 }
 0x937   :  { %v3001_v34 = vadd.f32 %v3000_v50, %v6894_v29  ;;  %v3002_v63 = vpop.f32.mrb[27].mxu0  ;;  %v3073_v31 = vpop.f32.mrb[27].mxu1  ;;  %v3072_v60 = vadd.f32 %v3071_v21, %v6897_v18 }
 0x938   :  { %v3003_v35 = vadd.f32 %v3002_v63, %v6895_v42  ;;  %v3074_v6 = vadd.f32 %v3073_v31, %v6896_v2 }
 0x939   :  { %v3076_v57 = vsub.f32 0.0, %v3001_v34 }
 0x93a   :  { %v3081_v56 = vsub.f32 0.0, %v3003_v35  ;;  %v3087_v17 = vsub.f32 0.0, %v3074_v6 }
 0x93b   :  { %v3077_v38 = vmul.f32 1.442695, %v3076_v57 }
 0x93c   :  { %v3082_v49 = vmul.f32 1.442695, %v3081_v56  ;;  %v3088_v8 = vmul.f32 1.442695, %v3087_v17 }
 0x93d   :  { %4775 = vpow2.f32 %v3077_v38 }
 0x93e   :  { %4777 = vpow2.f32 %v3082_v49 }
 0x93f   :  { %4779 = vpow2.f32 %v3088_v8 }
 0x940   :  { %4781 = vtanh.f32 %v3072_v60 }
 0x947   :  { %v4776_v36 = vpop.eup %4775 }
 0x948   :  { %v4778_v25 = vpop.eup %4777  ;;  %v3079_v12 = vadd.f32 1.0, %v4776_v36 }
 0x949   :  { %v3084_v29 = vadd.f32 1.0, %v4778_v25  ;;  %v4780_v42 = vpop.eup %4779 }
 0x94a   :  { %4783 = vrcp.f32 %v3079_v12  ;;  %v4782_v62 = vpop.eup %4781  ;;  %v3090_v2 = vadd.f32 1.0, %v4780_v42 }
 0x94b   :  { %4785 = vrcp.f32 %v3084_v29 }
 0x94c   :  { %4787 = vrcp.f32 %v3090_v2 }
 0x954   :  { %v4784_v1 = vpop.eup %4783 }
 0x955   :  { %v4786_v10 = vpop.eup %4785  ;;  %v3093_v27 = vmul.f32 %v4784_v1, %v4782_v62 }
 0x956   :  { %v3092_v11 = vmul.f32 %v4786_v10, %v6163_v48  ;;  %v4788_v18 = vpop.eup %4787 }
 0x958   :  { %v3094_v45 = vadd.f32 %v3093_v27, %v3092_v11 }
 0x95a   :  { %4789 = vtanh.f32 %v3094_v45  ;;  %3170 = vst.msk [vmem:[#allocation11 + $0x2] sm:$0x3] %vm3164_vm2, %v3094_v45 }
 0x964   :  { %v4790_v15 = vpop.eup %4789 }
 0x965   :  { %v3096_v20 = vmul.f32 %v4790_v15, %v4788_v18 }
 0x967   :  { %3098 = vst [vmem:[#allocation3 + $0xc] sm:$0x3] %v3096_v20  ;;  %3167 = vst.msk [vmem:[#allocation10 + $0x2] sm:$0x3] %vm3164_vm2, %v3096_v20 }
 0x96e   :  { %v3106_v24 = vld [vmem:[#allocation3 + $0xc] sm:$0x3] }
 0x96f   :  { %v3119_v28 = vmul.f32 %v5900_v26, %v3106_v24 }
 0x971   :  { %v3139_v33 = vsel %vm3120_vm0, %v3119_v28, 0.0 }
 0x972   :  { %3140 = vadd.xlane.f32.xlu0 %v3139_v33 }
 0x973   :  { %4848 = shalt.err (!%p4845_p6)
}
 0x974   :  { %s4849_s12 = scalar_lea.hbm %s6229_s9, 64 }
 0x975   :  { %p4850_p7 = scmp.ne.s32.totalorder %s6229_s9, %s4849_s12  ;;  %p4853_p8 = scmp.lt.u32.totalorder %s4849_s12, %s6229_s9 }
 0x977   :  { %p4855_p9 = pnand %p4853_p8, %p4850_p7 }
 0x979   :  { %4858 = shalt.err (!%p4855_p9)
}
 0x97a   :  { %s4898_s5 = smov 2   ;;  %s4859_s2 = scalar_lea.vmem %s3191_s1, 64 }
 0x97b   :  { %3184 = dma.vmem_to_hbm [thread:$0]  %s3179_s28, 64, %s6229_s9, [#allocation7], %s4891_s25, %s4891_s25, %s4898_s5  }
 0x97c   :  { %p4860_p10 = scmp.ne.s32.totalorder %s3191_s1, %s4859_s2  ;;  %p4864_p11 = scmp.lt.s32.totalorder %s3191_s1, %s3191_s1 }
 0x97d   :  { %p4865_p12 = scmp.lt.s32.totalorder %s4859_s2, %s4859_s2 }
 0x97f   :  { %p4866_p13 = por %p4865_p12, %p4864_p11 }
 0x981   :  { %p4867_p0 = pnand %p4866_p13, %p4860_p10 }
 0x983   :  { %4870 = shalt.err (!%p4867_p0)
}
 0x984   :  { %s4871_s19 = scalar_lea.hbm %s6230_s10, 64 }
 0x985   :  { %p4872_p1 = scmp.ne.s32.totalorder %s6230_s10, %s4871_s19  ;;  %p4875_p2 = scmp.lt.u32.totalorder %s4871_s19, %s6230_s10 }
 0x987   :  { %p4877_p3 = pnand %p4875_p2, %p4872_p1 }
 0x989   :  { %4880 = shalt.err (!%p4877_p3)
}
 0x98a   :  { %3196 = dma.vmem_to_hbm [thread:$0]  %s3191_s1, 64, %s6230_s10, [#allocation12], %s4891_s25, %s4891_s25, %s4898_s5  }
 0x9ff   :  { %v3141_v26 = vpop.xlane.xlu0 %3140 }
 0xa00   :  { %v3155_v48 = vadd.f32 %v6893_v19, %v3141_v26 }
 0xa02   :  { %3163 = vst.msk [vmem:[%s6228_s8 + $0xc] sm:$0x3] %vm3156_vm1, %v3155_v48 }
 0xa03   :  { %4885 = dma.done.wait [#allocation7], 64  }
 0xa04   :  { %4886 = vsyncadd [#allocation7], 4294967232 }
 0xa05   :  { %4887 = dma.done.wait [#allocation12], 64  }
 0xa06   :  { %4888 = vsyncadd [#allocation12], 4294967232 }
 0xa07   :  { %3205 = vsyncpa [#allocation6], 1 }
 0xa08   :  { %3206 = vsyncpa [#allocation9], 1 }
 0xa09   :  { %3207 = vsyncpa [#allocation7], 1 }
 0xa0a   :  { %3208 = vsyncpa [#allocation12], 1 }

</bundles_post_ra>
